<compile_context>
chip_gen: v7x
topology: tpu7x:2x2x1
jax: 0.10.0
libtpu: 0.0.40
codegen_flags: <defaults>
</compile_context>

<pallas_src>
import jax
import jax.numpy as jnp
from jax.experimental import pallas as pl
from jax.experimental.pallas import tpu as pltpu

GROUPS = 8
EPS = 1e-5          # torch.nn.GroupNorm default
NEG_SLOPE = 0.2     # torch.nn.LeakyReLU(0.2)


def _residual_block_kernel(xpad_ref, x_ref, w1_ref, b1_ref, g1_ref, be1_ref,
                           w2_ref, b2_ref, g2_ref, be2_ref, gmat_ref,
                           out_ref, hpad_ref, slab_ref):
    _, Hp2, Wp2, C = xpad_ref.shape
    H, W = Hp2 - 2, Wp2 - 2
    HW = H * W

    def build_slab(patch_src):
        # im2col: slab[:, k*C:(k+1)*C] = shifted patch for tap k = dy*3+dx.
        # patch_src is a Ref / Ref-view; static slices load only the tile needed.
        for dy in range(3):
            for dx in range(3):
                k = dy * 3 + dx
                patch = patch_src[dy:dy + H, dx:dx + W, :].astype(jnp.float32)
                slab_ref[:, k * C:(k + 1) * C] = patch.reshape(HW, C)

    def conv3x3(w_ref, b_ref):
        # single MXU matmul with K = 9*C (instead of 9 K=C pushes)
        return jnp.dot(slab_ref[...], w_ref[...],
                       preferred_element_type=jnp.float32) + b_ref[...]

    def group_norm(h, gamma, beta):
        # per-channel sums, then one (2,C)x(C,C) dot averages both stats per group
        s = jnp.concatenate([jnp.sum(h, axis=0, keepdims=True),
                             jnp.sum(h * h, axis=0, keepdims=True)], axis=0)
        m = jnp.dot(s, gmat_ref[...], preferred_element_type=jnp.float32)
        mean = m[0:1, :]
        var = m[1:2, :] - mean * mean
        return (h - mean) * jax.lax.rsqrt(var + EPS) * gamma + beta

    # --- conv1 + GroupNorm1 + LeakyReLU(0.2) ---
    build_slab(xpad_ref.at[0])                      # ref view, no full-image load
    h = conv3x3(w1_ref, b1_ref)
    h = group_norm(h, g1_ref[...], be1_ref[...])
    h = jnp.where(h > 0, h, NEG_SLOPE * h)

    # --- zero-pad h into the scratch (border strips only) for conv2 ---
    hpad_ref[0:1] = jnp.zeros((1, W + 2, C), jnp.float32)
    hpad_ref[H + 1:H + 2] = jnp.zeros((1, W + 2, C), jnp.float32)
    hpad_ref[1:H + 1, 0:1, :] = jnp.zeros((H, 1, C), jnp.float32)
    hpad_ref[1:H + 1, W + 1:W + 2, :] = jnp.zeros((H, 1, C), jnp.float32)
    hpad_ref[1:H + 1, 1:W + 1, :] = h.reshape(H, W, C)

    # --- conv2 + GroupNorm2 ---
    build_slab(hpad_ref)
    h2 = conv3x3(w2_ref, b2_ref)
    h2 = group_norm(h2, g2_ref[...], be2_ref[...])

    # --- residual add from the unpadded input (no offset-1 relayout of xpad) ---
    out_ref[0] = (x_ref[0].astype(jnp.float32)
                  + h2.reshape(H, W, C)).astype(out_ref.dtype)


def _make_gmat(C, H, W):
    """(C,C) matrix: gmat[ci,co] = 1/(Cg*H*W) if same group else 0 (host-built)."""
    Cg = C // GROUPS
    row_g = jnp.arange(C)[:, None] // Cg
    col_g = jnp.arange(C)[None, :] // Cg
    return jnp.where(row_g == col_g, 1.0 / (Cg * H * W), 0.0).astype(jnp.float32)


@jax.jit
def residual_block(x_nchw, params):
    """x_nchw: (N, C, H, W) float32, params: (w1,b1,g1,be1,w2,b2,g2,be2)."""
    w1, b1, g1, be1, w2, b2, g2, be2 = params
    N, C, H, W = x_nchw.shape
    x = jnp.transpose(x_nchw, (0, 2, 3, 1))                   # NHWC
    xpad = jnp.pad(x, ((0, 0), (1, 1), (1, 1), (0, 0)))
    gmat = _make_gmat(C, H, W)

    flat = lambda p: p.reshape(1, C)
    param_spec = pl.BlockSpec((1, C), lambda n: (0, 0))
    weight_spec = pl.BlockSpec((9 * C, C), lambda n: (0, 0))

    kernel = pl.pallas_call(
        _residual_block_kernel,
        out_shape=jax.ShapeDtypeStruct((N, H, W, C), x.dtype),
        grid_spec=pltpu.PrefetchScalarGridSpec(
            num_scalar_prefetch=0,
            grid=(N,),
            in_specs=[
                pl.BlockSpec((1, H + 2, W + 2, C), lambda n: (n, 0, 0, 0)),  # padded x
                pl.BlockSpec((1, H, W, C), lambda n: (n, 0, 0, 0)),          # residual x
                weight_spec, param_spec, param_spec, param_spec,             # conv1/GN1
                weight_spec, param_spec, param_spec, param_spec,             # conv2/GN2
                pl.BlockSpec((C, C), lambda n: (0, 0)),                      # gmat
            ],
            out_specs=pl.BlockSpec((1, H, W, C), lambda n: (n, 0, 0, 0)),
            scratch_shapes=[
                pltpu.VMEM((H + 2, W + 2, C), jnp.float32),   # zero-padded conv2 input
                pltpu.VMEM((H * W, 9 * C), jnp.float32),      # shared im2col slab
            ],
        ),
        compiler_params=pltpu.CompilerParams(
            dimension_semantics=("parallel",)),
    )
    out_nhwc = kernel(xpad, x,
                      w1.reshape(9 * C, C), flat(b1), flat(g1), flat(be1),
                      w2.reshape(9 * C, C), flat(b2), flat(g2), flat(be2),
                      gmat)
    return jnp.transpose(out_nhwc, (0, 3, 1, 2))               # back to NCHW


def make_params(key, channels):
    """Deterministic synthetic parameters.  Conv weights kept in HWIO layout
    (equivalent to torch (Cout,Cin,kh,kw).transpose(2,3,1,0))."""
    k = jax.random.split(key, 8)
    w1 = jax.random.normal(k[0], (3, 3, channels, channels), jnp.float32) * 0.1
    b1 = jax.random.normal(k[1], (channels,), jnp.float32) * 0.1
    g1 = 1.0 + 0.1 * jax.random.normal(k[2], (channels,), jnp.float32)
    be1 = 0.1 * jax.random.normal(k[3], (channels,), jnp.float32)
    w2 = jax.random.normal(k[4], (3, 3, channels, channels), jnp.float32) * 0.1
    b2 = jax.random.normal(k[5], (channels,), jnp.float32) * 0.1
    g2 = 1.0 + 0.1 * jax.random.normal(k[6], (channels,), jnp.float32)
    be2 = 0.1 * jax.random.normal(k[7], (channels,), jnp.float32)
    return (w1, b1, g1, be1, w2, b2, g2, be2)


def ref_forward(x_nchw, params):
    """Pure-JAX reference matching torch semantics (cross-correlation convs,
    GroupNorm over (C/G, H, W) per sample/group, LeakyReLU(0.2), residual)."""
    w1, b1, g1, be1, w2, b2, g2, be2 = params

    def conv(x, w, b):
        y = jax.lax.conv_general_dilated(
            x, w, window_strides=(1, 1), padding='SAME',
            dimension_numbers=('NCHW', 'HWIO', 'NCHW'))
        return y + b[None, :, None, None]

    def gn(x, gamma, beta):
        N, C, H, W = x.shape
        xg = x.reshape(N, GROUPS, C // GROUPS, H, W)
        mean = xg.mean(axis=(2, 3, 4), keepdims=True)
        var = ((xg - mean) ** 2).mean(axis=(2, 3, 4), keepdims=True)
        xn = ((xg - mean) / jnp.sqrt(var + EPS)).reshape(N, C, H, W)
        return xn * gamma[None, :, None, None] + beta[None, :, None, None]

    h = conv(x_nchw, w1, b1)
    h = gn(h, g1, be1)
    h = jnp.where(h > 0, h, NEG_SLOPE * h)
    h = conv(h, w2, b2)
    h = gn(h, g2, be2)
    return x_nchw + h


if __name__ == "__main__":
    N, C, H, W = 2, 16, 16, 16            # C divisible by 8 for GroupNorm(8, C)
    key = jax.random.PRNGKey(0)
    kx, kp = jax.random.split(key)
    x = jax.random.normal(kx, (N, C, H, W), jnp.float32)
    params = make_params(kp, C)

    out = residual_block(x, params)
    out = jax.block_until_ready(out)

    ref = ref_forward(x, params)
    assert out.shape == x.shape and out.dtype == x.dtype
    max_err = float(jnp.max(jnp.abs(out - ref)))
    if not bool(jnp.allclose(out, ref, rtol=1e-3, atol=1e-3)):
        raise AssertionError(f"Pallas kernel mismatch, max abs err = {max_err}")
    print("KERNEL_OK")
</pallas_src>

<mosaic_0001>
module attributes {stable_mosaic.version = 11 : i64} {
  func.func @_residual_block_kernel(%arg0: i32, %arg1: memref<1x18x18x16xf32, #tpu.memory_space<vmem>>, %arg2: memref<1x16x16x16xf32, #tpu.memory_space<vmem>>, %arg3: memref<144x16xf32, #tpu.memory_space<vmem>>, %arg4: memref<1x16xf32, #tpu.memory_space<vmem>>, %arg5: memref<1x16xf32, #tpu.memory_space<vmem>>, %arg6: memref<1x16xf32, #tpu.memory_space<vmem>>, %arg7: memref<144x16xf32, #tpu.memory_space<vmem>>, %arg8: memref<1x16xf32, #tpu.memory_space<vmem>>, %arg9: memref<1x16xf32, #tpu.memory_space<vmem>>, %arg10: memref<1x16xf32, #tpu.memory_space<vmem>>, %arg11: memref<16x16xf32, #tpu.memory_space<vmem>>, %arg12: memref<1x16x16x16xf32, #tpu.memory_space<vmem>>, %arg13: memref<18x18x16xf32, #tpu.memory_space<vmem>>, %arg14: memref<256x144xf32, #tpu.memory_space<vmem>>) attributes {dimension_semantics = [#tpu.dimension_semantics<parallel>], iteration_bounds = array<i64: 2>, scalar_prefetch = 0 : i64, scratch_operands = 2 : i64, tpu.core_type = #tpu.core_type<tc>, window_params = [{transform_indices = @transform_0, window_bounds = array<i64: 1, 18, 18, 16>}, {transform_indices = @transform_1, window_bounds = array<i64: 1, 16, 16, 16>}, {pipeline_mode = #tpu.pipeline_mode<synchronous>, transform_indices = @transform_2, window_bounds = array<i64: 144, 16>}, {pipeline_mode = #tpu.pipeline_mode<synchronous>, transform_indices = @transform_3, window_bounds = array<i64: 1, 16>}, {pipeline_mode = #tpu.pipeline_mode<synchronous>, transform_indices = @transform_4, window_bounds = array<i64: 1, 16>}, {pipeline_mode = #tpu.pipeline_mode<synchronous>, transform_indices = @transform_5, window_bounds = array<i64: 1, 16>}, {pipeline_mode = #tpu.pipeline_mode<synchronous>, transform_indices = @transform_6, window_bounds = array<i64: 144, 16>}, {pipeline_mode = #tpu.pipeline_mode<synchronous>, transform_indices = @transform_7, window_bounds = array<i64: 1, 16>}, {pipeline_mode = #tpu.pipeline_mode<synchronous>, transform_indices = @transform_8, window_bounds = array<i64: 1, 16>}, {pipeline_mode = #tpu.pipeline_mode<synchronous>, transform_indices = @transform_9, window_bounds = array<i64: 1, 16>}, {pipeline_mode = #tpu.pipeline_mode<synchronous>, transform_indices = @transform_10, window_bounds = array<i64: 16, 16>}, {transform_indices = @transform_11, window_bounds = array<i64: 1, 16, 16, 16>}]} {
    %c0_i32 = arith.constant 0 : i32
    %c0_i32_0 = arith.constant 0 : i32
    %c0_i32_1 = arith.constant 0 : i32
    %c0_i32_2 = arith.constant 0 : i32
    %0 = tpu.memref_slice %arg1[%c0_i32, %c0_i32_0, %c0_i32_1, %c0_i32_2] : memref<1x18x18x16xf32, #tpu.memory_space<vmem>> -> memref<1x18x18x16xf32, #tpu.memory_space<vmem>>
    %1 = tpu.memref_squeeze %0 : memref<1x18x18x16xf32, #tpu.memory_space<vmem>> -> memref<18x18x16xf32, #tpu.memory_space<vmem>>
    %c0 = arith.constant 0 : index
    %c0_3 = arith.constant 0 : index
    %c0_4 = arith.constant 0 : index
    %2 = vector.load %1[%c0, %c0_3, %c0_4] : memref<18x18x16xf32, #tpu.memory_space<vmem>>, vector<16x16x16xf32>
    %3 = vector.shape_cast %2 : vector<16x16x16xf32> to vector<256x16xf32>
    %c0_5 = arith.constant 0 : index
    %c0_6 = arith.constant 0 : index
    %4 = vector.load %arg14[%c0_5, %c0_6] : memref<256x144xf32, #tpu.memory_space<vmem>>, vector<256x16xf32>
    tpu.vector_store %arg14[%c0_5, %c0_6], %3 {strides = array<i32>} : memref<256x144xf32, #tpu.memory_space<vmem>>, vector<256x16xf32>,
    %c0_i32_7 = arith.constant 0 : i32
    %c0_i32_8 = arith.constant 0 : i32
    %c0_i32_9 = arith.constant 0 : i32
    %c0_i32_10 = arith.constant 0 : i32
    %5 = tpu.memref_slice %arg1[%c0_i32_7, %c0_i32_8, %c0_i32_9, %c0_i32_10] : memref<1x18x18x16xf32, #tpu.memory_space<vmem>> -> memref<1x18x18x16xf32, #tpu.memory_space<vmem>>
    %6 = tpu.memref_squeeze %5 : memref<1x18x18x16xf32, #tpu.memory_space<vmem>> -> memref<18x18x16xf32, #tpu.memory_space<vmem>>
    %c0_11 = arith.constant 0 : index
    %c1 = arith.constant 1 : index
    %c0_12 = arith.constant 0 : index
    %7 = vector.load %6[%c0_11, %c1, %c0_12] : memref<18x18x16xf32, #tpu.memory_space<vmem>>, vector<16x16x16xf32>
    %8 = vector.shape_cast %7 : vector<16x16x16xf32> to vector<256x16xf32>
    %c0_13 = arith.constant 0 : index
    %c16 = arith.constant 16 : index
    %9 = vector.load %arg14[%c0_13, %c16] : memref<256x144xf32, #tpu.memory_space<vmem>>, vector<256x16xf32>
    tpu.vector_store %arg14[%c0_13, %c16], %8 {strides = array<i32>} : memref<256x144xf32, #tpu.memory_space<vmem>>, vector<256x16xf32>,
    %c0_i32_14 = arith.constant 0 : i32
    %c0_i32_15 = arith.constant 0 : i32
    %c0_i32_16 = arith.constant 0 : i32
    %c0_i32_17 = arith.constant 0 : i32
    %10 = tpu.memref_slice %arg1[%c0_i32_14, %c0_i32_15, %c0_i32_16, %c0_i32_17] : memref<1x18x18x16xf32, #tpu.memory_space<vmem>> -> memref<1x18x18x16xf32, #tpu.memory_space<vmem>>
    %11 = tpu.memref_squeeze %10 : memref<1x18x18x16xf32, #tpu.memory_space<vmem>> -> memref<18x18x16xf32, #tpu.memory_space<vmem>>
    %c0_18 = arith.constant 0 : index
    %c2 = arith.constant 2 : index
    %c0_19 = arith.constant 0 : index
    %12 = vector.load %11[%c0_18, %c2, %c0_19] : memref<18x18x16xf32, #tpu.memory_space<vmem>>, vector<16x16x16xf32>
    %13 = vector.shape_cast %12 : vector<16x16x16xf32> to vector<256x16xf32>
    %c0_20 = arith.constant 0 : index
    %c32 = arith.constant 32 : index
    %14 = vector.load %arg14[%c0_20, %c32] : memref<256x144xf32, #tpu.memory_space<vmem>>, vector<256x16xf32>
    tpu.vector_store %arg14[%c0_20, %c32], %13 {strides = array<i32>} : memref<256x144xf32, #tpu.memory_space<vmem>>, vector<256x16xf32>,
    %c0_i32_21 = arith.constant 0 : i32
    %c0_i32_22 = arith.constant 0 : i32
    %c0_i32_23 = arith.constant 0 : i32
    %c0_i32_24 = arith.constant 0 : i32
    %15 = tpu.memref_slice %arg1[%c0_i32_21, %c0_i32_22, %c0_i32_23, %c0_i32_24] : memref<1x18x18x16xf32, #tpu.memory_space<vmem>> -> memref<1x18x18x16xf32, #tpu.memory_space<vmem>>
    %16 = tpu.memref_squeeze %15 : memref<1x18x18x16xf32, #tpu.memory_space<vmem>> -> memref<18x18x16xf32, #tpu.memory_space<vmem>>
    %c1_25 = arith.constant 1 : index
    %c0_26 = arith.constant 0 : index
    %c0_27 = arith.constant 0 : index
    %17 = vector.load %16[%c1_25, %c0_26, %c0_27] : memref<18x18x16xf32, #tpu.memory_space<vmem>>, vector<16x16x16xf32>
    %18 = vector.shape_cast %17 : vector<16x16x16xf32> to vector<256x16xf32>
    %c0_28 = arith.constant 0 : index
    %c48 = arith.constant 48 : index
    %19 = vector.load %arg14[%c0_28, %c48] : memref<256x144xf32, #tpu.memory_space<vmem>>, vector<256x16xf32>
    tpu.vector_store %arg14[%c0_28, %c48], %18 {strides = array<i32>} : memref<256x144xf32, #tpu.memory_space<vmem>>, vector<256x16xf32>,
    %c0_i32_29 = arith.constant 0 : i32
    %c0_i32_30 = arith.constant 0 : i32
    %c0_i32_31 = arith.constant 0 : i32
    %c0_i32_32 = arith.constant 0 : i32
    %20 = tpu.memref_slice %arg1[%c0_i32_29, %c0_i32_30, %c0_i32_31, %c0_i32_32] : memref<1x18x18x16xf32, #tpu.memory_space<vmem>> -> memref<1x18x18x16xf32, #tpu.memory_space<vmem>>
    %21 = tpu.memref_squeeze %20 : memref<1x18x18x16xf32, #tpu.memory_space<vmem>> -> memref<18x18x16xf32, #tpu.memory_space<vmem>>
    %c1_33 = arith.constant 1 : index
    %c1_34 = arith.constant 1 : index
    %c0_35 = arith.constant 0 : index
    %22 = vector.load %21[%c1_33, %c1_34, %c0_35] : memref<18x18x16xf32, #tpu.memory_space<vmem>>, vector<16x16x16xf32>
    %23 = vector.shape_cast %22 : vector<16x16x16xf32> to vector<256x16xf32>
    %c0_36 = arith.constant 0 : index
    %c64 = arith.constant 64 : index
    %24 = vector.load %arg14[%c0_36, %c64] : memref<256x144xf32, #tpu.memory_space<vmem>>, vector<256x16xf32>
    tpu.vector_store %arg14[%c0_36, %c64], %23 {strides = array<i32>} : memref<256x144xf32, #tpu.memory_space<vmem>>, vector<256x16xf32>,
    %c0_i32_37 = arith.constant 0 : i32
    %c0_i32_38 = arith.constant 0 : i32
    %c0_i32_39 = arith.constant 0 : i32
    %c0_i32_40 = arith.constant 0 : i32
    %25 = tpu.memref_slice %arg1[%c0_i32_37, %c0_i32_38, %c0_i32_39, %c0_i32_40] : memref<1x18x18x16xf32, #tpu.memory_space<vmem>> -> memref<1x18x18x16xf32, #tpu.memory_space<vmem>>
    %26 = tpu.memref_squeeze %25 : memref<1x18x18x16xf32, #tpu.memory_space<vmem>> -> memref<18x18x16xf32, #tpu.memory_space<vmem>>
    %c1_41 = arith.constant 1 : index
    %c2_42 = arith.constant 2 : index
    %c0_43 = arith.constant 0 : index
    %27 = vector.load %26[%c1_41, %c2_42, %c0_43] : memref<18x18x16xf32, #tpu.memory_space<vmem>>, vector<16x16x16xf32>
    %28 = vector.shape_cast %27 : vector<16x16x16xf32> to vector<256x16xf32>
    %c0_44 = arith.constant 0 : index
    %c80 = arith.constant 80 : index
    %29 = vector.load %arg14[%c0_44, %c80] : memref<256x144xf32, #tpu.memory_space<vmem>>, vector<256x16xf32>
    tpu.vector_store %arg14[%c0_44, %c80], %28 {strides = array<i32>} : memref<256x144xf32, #tpu.memory_space<vmem>>, vector<256x16xf32>,
    %c0_i32_45 = arith.constant 0 : i32
    %c0_i32_46 = arith.constant 0 : i32
    %c0_i32_47 = arith.constant 0 : i32
    %c0_i32_48 = arith.constant 0 : i32
    %30 = tpu.memref_slice %arg1[%c0_i32_45, %c0_i32_46, %c0_i32_47, %c0_i32_48] : memref<1x18x18x16xf32, #tpu.memory_space<vmem>> -> memref<1x18x18x16xf32, #tpu.memory_space<vmem>>
    %31 = tpu.memref_squeeze %30 : memref<1x18x18x16xf32, #tpu.memory_space<vmem>> -> memref<18x18x16xf32, #tpu.memory_space<vmem>>
    %c2_49 = arith.constant 2 : index
    %c0_50 = arith.constant 0 : index
    %c0_51 = arith.constant 0 : index
    %32 = vector.load %31[%c2_49, %c0_50, %c0_51] : memref<18x18x16xf32, #tpu.memory_space<vmem>>, vector<16x16x16xf32>
    %33 = vector.shape_cast %32 : vector<16x16x16xf32> to vector<256x16xf32>
    %c0_52 = arith.constant 0 : index
    %c96 = arith.constant 96 : index
    %34 = vector.load %arg14[%c0_52, %c96] : memref<256x144xf32, #tpu.memory_space<vmem>>, vector<256x16xf32>
    tpu.vector_store %arg14[%c0_52, %c96], %33 {strides = array<i32>} : memref<256x144xf32, #tpu.memory_space<vmem>>, vector<256x16xf32>,
    %c0_i32_53 = arith.constant 0 : i32
    %c0_i32_54 = arith.constant 0 : i32
    %c0_i32_55 = arith.constant 0 : i32
    %c0_i32_56 = arith.constant 0 : i32
    %35 = tpu.memref_slice %arg1[%c0_i32_53, %c0_i32_54, %c0_i32_55, %c0_i32_56] : memref<1x18x18x16xf32, #tpu.memory_space<vmem>> -> memref<1x18x18x16xf32, #tpu.memory_space<vmem>>
    %36 = tpu.memref_squeeze %35 : memref<1x18x18x16xf32, #tpu.memory_space<vmem>> -> memref<18x18x16xf32, #tpu.memory_space<vmem>>
    %c2_57 = arith.constant 2 : index
    %c1_58 = arith.constant 1 : index
    %c0_59 = arith.constant 0 : index
    %37 = vector.load %36[%c2_57, %c1_58, %c0_59] : memref<18x18x16xf32, #tpu.memory_space<vmem>>, vector<16x16x16xf32>
    %38 = vector.shape_cast %37 : vector<16x16x16xf32> to vector<256x16xf32>
    %c0_60 = arith.constant 0 : index
    %c112 = arith.constant 112 : index
    %39 = vector.load %arg14[%c0_60, %c112] : memref<256x144xf32, #tpu.memory_space<vmem>>, vector<256x16xf32>
    tpu.vector_store %arg14[%c0_60, %c112], %38 {strides = array<i32>} : memref<256x144xf32, #tpu.memory_space<vmem>>, vector<256x16xf32>,
    %c0_i32_61 = arith.constant 0 : i32
    %c0_i32_62 = arith.constant 0 : i32
    %c0_i32_63 = arith.constant 0 : i32
    %c0_i32_64 = arith.constant 0 : i32
    %40 = tpu.memref_slice %arg1[%c0_i32_61, %c0_i32_62, %c0_i32_63, %c0_i32_64] : memref<1x18x18x16xf32, #tpu.memory_space<vmem>> -> memref<1x18x18x16xf32, #tpu.memory_space<vmem>>
    %41 = tpu.memref_squeeze %40 : memref<1x18x18x16xf32, #tpu.memory_space<vmem>> -> memref<18x18x16xf32, #tpu.memory_space<vmem>>
    %c2_65 = arith.constant 2 : index
    %c2_66 = arith.constant 2 : index
    %c0_67 = arith.constant 0 : index
    %42 = vector.load %41[%c2_65, %c2_66, %c0_67] : memref<18x18x16xf32, #tpu.memory_space<vmem>>, vector<16x16x16xf32>
    %43 = vector.shape_cast %42 : vector<16x16x16xf32> to vector<256x16xf32>
    %c0_68 = arith.constant 0 : index
    %c128 = arith.constant 128 : index
    %44 = vector.load %arg14[%c0_68, %c128] : memref<256x144xf32, #tpu.memory_space<vmem>>, vector<256x16xf32>
    tpu.vector_store %arg14[%c0_68, %c128], %43 {strides = array<i32>} : memref<256x144xf32, #tpu.memory_space<vmem>>, vector<256x16xf32>,
    %c0_69 = arith.constant 0 : index
    %c0_70 = arith.constant 0 : index
    %45 = vector.load %arg14[%c0_69, %c0_70] : memref<256x144xf32, #tpu.memory_space<vmem>>, vector<256x144xf32>
    %c0_71 = arith.constant 0 : index
    %c0_72 = arith.constant 0 : index
    %46 = vector.load %arg3[%c0_71, %c0_72] : memref<144x16xf32, #tpu.memory_space<vmem>>, vector<144x16xf32>
    %cst = arith.constant dense<0.000000e+00> : vector<256x16xf32>
    %47 = tpu.matmul %45, %46, %cst {dimension_numbers = #tpu.dot_dimension_numbers<[1], [0], [0], [1], [0, 0, 1, 1], [], []>} : vector<256x144xf32>, vector<144x16xf32>, vector<256x16xf32> -> vector<256x16xf32>
    %c0_73 = arith.constant 0 : index
    %c0_74 = arith.constant 0 : index
    %48 = vector.load %arg4[%c0_73, %c0_74] : memref<1x16xf32, #tpu.memory_space<vmem>>, vector<1x16xf32>
    %49 = vector.broadcast %48 : vector<1x16xf32> to vector<256x16xf32>
    %50 = arith.addf %47, %49 : vector<256x16xf32>
    %c0_75 = arith.constant 0 : index
    %c0_76 = arith.constant 0 : index
    %51 = vector.load %arg5[%c0_75, %c0_76] : memref<1x16xf32, #tpu.memory_space<vmem>>, vector<1x16xf32>
    %c0_77 = arith.constant 0 : index
    %c0_78 = arith.constant 0 : index
    %52 = vector.load %arg6[%c0_77, %c0_78] : memref<1x16xf32, #tpu.memory_space<vmem>>, vector<1x16xf32>
    %cst_79 = arith.constant dense<0.000000e+00> : vector<16xf32>
    %53 = vector.multi_reduction <add>, %50, %cst_79 [0] : vector<256x16xf32> to vector<16xf32>
    %54 = vector.shape_cast %53 : vector<16xf32> to vector<1x16xf32>
    %55 = arith.mulf %50, %50 : vector<256x16xf32>
    %cst_80 = arith.constant dense<0.000000e+00> : vector<16xf32>
    %56 = vector.multi_reduction <add>, %55, %cst_80 [0] : vector<256x16xf32> to vector<16xf32>
    %57 = vector.shape_cast %56 : vector<16xf32> to vector<1x16xf32>
    %58 = tpu.concatenate %54, %57 in 0 : vector<1x16xf32>, vector<1x16xf32> -> vector<2x16xf32>
    %c0_81 = arith.constant 0 : index
    %c0_82 = arith.constant 0 : index
    %59 = vector.load %arg11[%c0_81, %c0_82] : memref<16x16xf32, #tpu.memory_space<vmem>>, vector<16x16xf32>
    %cst_83 = arith.constant dense<0.000000e+00> : vector<2x16xf32>
    %60 = tpu.matmul %58, %59, %cst_83 {dimension_numbers = #tpu.dot_dimension_numbers<[1], [0], [0], [1], [0, 0, 1, 1], [], []>} : vector<2x16xf32>, vector<16x16xf32>, vector<2x16xf32> -> vector<2x16xf32>
    %61 = vector.extract_strided_slice %60 {offsets = [0, 0], sizes = [1, 16], strides = [1, 1]} : vector<2x16xf32> to vector<1x16xf32>
    %62 = vector.extract_strided_slice %60 {offsets = [1, 0], sizes = [1, 16], strides = [1, 1]} : vector<2x16xf32> to vector<1x16xf32>
    %63 = arith.mulf %61, %61 : vector<1x16xf32>
    %64 = arith.subf %62, %63 : vector<1x16xf32>
    %65 = vector.broadcast %61 : vector<1x16xf32> to vector<256x16xf32>
    %66 = arith.subf %50, %65 : vector<256x16xf32>
    %cst_84 = arith.constant 9.99999974E-6 : f32
    %67 = vector.broadcast %cst_84 : f32 to vector<1x16xf32>
    %68 = arith.addf %64, %67 : vector<1x16xf32>
    %69 = math.rsqrt %68 : vector<1x16xf32>
    %70 = vector.broadcast %69 : vector<1x16xf32> to vector<256x16xf32>
    %71 = arith.mulf %66, %70 : vector<256x16xf32>
    %72 = vector.broadcast %51 : vector<1x16xf32> to vector<256x16xf32>
    %73 = arith.mulf %71, %72 : vector<256x16xf32>
    %74 = vector.broadcast %52 : vector<1x16xf32> to vector<256x16xf32>
    %75 = arith.addf %73, %74 : vector<256x16xf32>
    %cst_85 = arith.constant 0.000000e+00 : f32
    %76 = vector.broadcast %cst_85 : f32 to vector<256x16xf32>
    %77 = arith.cmpf ogt, %75, %76 : vector<256x16xf32>
    %cst_86 = arith.constant 2.000000e-01 : f32
    %78 = vector.broadcast %cst_86 : f32 to vector<256x16xf32>
    %79 = arith.mulf %78, %75 : vector<256x16xf32>
    %80 = arith.select %77, %75, %79 : vector<256x16xi1>, vector<256x16xf32>
    %cst_87 = arith.constant 0.000000e+00 : f32
    %81 = vector.broadcast %cst_87 : f32 to vector<1x18x16xf32>
    %c0_88 = arith.constant 0 : index
    %c0_89 = arith.constant 0 : index
    %c0_90 = arith.constant 0 : index
    %82 = vector.load %arg13[%c0_88, %c0_89, %c0_90] : memref<18x18x16xf32, #tpu.memory_space<vmem>>, vector<1x18x16xf32>
    tpu.vector_store %arg13[%c0_88, %c0_89, %c0_90], %81 {strides = array<i32>} : memref<18x18x16xf32, #tpu.memory_space<vmem>>, vector<1x18x16xf32>,
    %cst_91 = arith.constant 0.000000e+00 : f32
    %83 = vector.broadcast %cst_91 : f32 to vector<1x18x16xf32>
    %c17 = arith.constant 17 : index
    %c0_92 = arith.constant 0 : index
    %c0_93 = arith.constant 0 : index
    %84 = vector.load %arg13[%c17, %c0_92, %c0_93] : memref<18x18x16xf32, #tpu.memory_space<vmem>>, vector<1x18x16xf32>
    tpu.vector_store %arg13[%c17, %c0_92, %c0_93], %83 {strides = array<i32>} : memref<18x18x16xf32, #tpu.memory_space<vmem>>, vector<1x18x16xf32>,
    %cst_94 = arith.constant 0.000000e+00 : f32
    %85 = vector.broadcast %cst_94 : f32 to vector<16x1x16xf32>
    %c1_95 = arith.constant 1 : index
    %c0_96 = arith.constant 0 : index
    %c0_97 = arith.constant 0 : index
    %86 = vector.load %arg13[%c1_95, %c0_96, %c0_97] : memref<18x18x16xf32, #tpu.memory_space<vmem>>, vector<16x1x16xf32>
    tpu.vector_store %arg13[%c1_95, %c0_96, %c0_97], %85 {strides = array<i32>} : memref<18x18x16xf32, #tpu.memory_space<vmem>>, vector<16x1x16xf32>,
    %cst_98 = arith.constant 0.000000e+00 : f32
    %87 = vector.broadcast %cst_98 : f32 to vector<16x1x16xf32>
    %c1_99 = arith.constant 1 : index
    %c17_100 = arith.constant 17 : index
    %c0_101 = arith.constant 0 : index
    %88 = vector.load %arg13[%c1_99, %c17_100, %c0_101] : memref<18x18x16xf32, #tpu.memory_space<vmem>>, vector<16x1x16xf32>
    tpu.vector_store %arg13[%c1_99, %c17_100, %c0_101], %87 {strides = array<i32>} : memref<18x18x16xf32, #tpu.memory_space<vmem>>, vector<16x1x16xf32>,
    %89 = vector.shape_cast %80 : vector<256x16xf32> to vector<16x16x16xf32>
    %c1_102 = arith.constant 1 : index
    %c1_103 = arith.constant 1 : index
    %c0_104 = arith.constant 0 : index
    %90 = vector.load %arg13[%c1_102, %c1_103, %c0_104] : memref<18x18x16xf32, #tpu.memory_space<vmem>>, vector<16x16x16xf32>
    tpu.vector_store %arg13[%c1_102, %c1_103, %c0_104], %89 {strides = array<i32>} : memref<18x18x16xf32, #tpu.memory_space<vmem>>, vector<16x16x16xf32>,
    %c0_105 = arith.constant 0 : index
    %c0_106 = arith.constant 0 : index
    %c0_107 = arith.constant 0 : index
    %91 = vector.load %arg13[%c0_105, %c0_106, %c0_107] : memref<18x18x16xf32, #tpu.memory_space<vmem>>, vector<16x16x16xf32>
    %92 = vector.shape_cast %91 : vector<16x16x16xf32> to vector<256x16xf32>
    %c0_108 = arith.constant 0 : index
    %c0_109 = arith.constant 0 : index
    %93 = vector.load %arg14[%c0_108, %c0_109] : memref<256x144xf32, #tpu.memory_space<vmem>>, vector<256x16xf32>
    tpu.vector_store %arg14[%c0_108, %c0_109], %92 {strides = array<i32>} : memref<256x144xf32, #tpu.memory_space<vmem>>, vector<256x16xf32>,
    %c0_110 = arith.constant 0 : index
    %c1_111 = arith.constant 1 : index
    %c0_112 = arith.constant 0 : index
    %94 = vector.load %arg13[%c0_110, %c1_111, %c0_112] : memref<18x18x16xf32, #tpu.memory_space<vmem>>, vector<16x16x16xf32>
    %95 = vector.shape_cast %94 : vector<16x16x16xf32> to vector<256x16xf32>
    %c0_113 = arith.constant 0 : index
    %c16_114 = arith.constant 16 : index
    %96 = vector.load %arg14[%c0_113, %c16_114] : memref<256x144xf32, #tpu.memory_space<vmem>>, vector<256x16xf32>
    tpu.vector_store %arg14[%c0_113, %c16_114], %95 {strides = array<i32>} : memref<256x144xf32, #tpu.memory_space<vmem>>, vector<256x16xf32>,
    %c0_115 = arith.constant 0 : index
    %c2_116 = arith.constant 2 : index
    %c0_117 = arith.constant 0 : index
    %97 = vector.load %arg13[%c0_115, %c2_116, %c0_117] : memref<18x18x16xf32, #tpu.memory_space<vmem>>, vector<16x16x16xf32>
    %98 = vector.shape_cast %97 : vector<16x16x16xf32> to vector<256x16xf32>
    %c0_118 = arith.constant 0 : index
    %c32_119 = arith.constant 32 : index
    %99 = vector.load %arg14[%c0_118, %c32_119] : memref<256x144xf32, #tpu.memory_space<vmem>>, vector<256x16xf32>
    tpu.vector_store %arg14[%c0_118, %c32_119], %98 {strides = array<i32>} : memref<256x144xf32, #tpu.memory_space<vmem>>, vector<256x16xf32>,
    %c1_120 = arith.constant 1 : index
    %c0_121 = arith.constant 0 : index
    %c0_122 = arith.constant 0 : index
    %100 = vector.load %arg13[%c1_120, %c0_121, %c0_122] : memref<18x18x16xf32, #tpu.memory_space<vmem>>, vector<16x16x16xf32>
    %101 = vector.shape_cast %100 : vector<16x16x16xf32> to vector<256x16xf32>
    %c0_123 = arith.constant 0 : index
    %c48_124 = arith.constant 48 : index
    %102 = vector.load %arg14[%c0_123, %c48_124] : memref<256x144xf32, #tpu.memory_space<vmem>>, vector<256x16xf32>
    tpu.vector_store %arg14[%c0_123, %c48_124], %101 {strides = array<i32>} : memref<256x144xf32, #tpu.memory_space<vmem>>, vector<256x16xf32>,
    %c1_125 = arith.constant 1 : index
    %c1_126 = arith.constant 1 : index
    %c0_127 = arith.constant 0 : index
    %103 = vector.load %arg13[%c1_125, %c1_126, %c0_127] : memref<18x18x16xf32, #tpu.memory_space<vmem>>, vector<16x16x16xf32>
    %104 = vector.shape_cast %103 : vector<16x16x16xf32> to vector<256x16xf32>
    %c0_128 = arith.constant 0 : index
    %c64_129 = arith.constant 64 : index
    %105 = vector.load %arg14[%c0_128, %c64_129] : memref<256x144xf32, #tpu.memory_space<vmem>>, vector<256x16xf32>
    tpu.vector_store %arg14[%c0_128, %c64_129], %104 {strides = array<i32>} : memref<256x144xf32, #tpu.memory_space<vmem>>, vector<256x16xf32>,
    %c1_130 = arith.constant 1 : index
    %c2_131 = arith.constant 2 : index
    %c0_132 = arith.constant 0 : index
    %106 = vector.load %arg13[%c1_130, %c2_131, %c0_132] : memref<18x18x16xf32, #tpu.memory_space<vmem>>, vector<16x16x16xf32>
    %107 = vector.shape_cast %106 : vector<16x16x16xf32> to vector<256x16xf32>
    %c0_133 = arith.constant 0 : index
    %c80_134 = arith.constant 80 : index
    %108 = vector.load %arg14[%c0_133, %c80_134] : memref<256x144xf32, #tpu.memory_space<vmem>>, vector<256x16xf32>
    tpu.vector_store %arg14[%c0_133, %c80_134], %107 {strides = array<i32>} : memref<256x144xf32, #tpu.memory_space<vmem>>, vector<256x16xf32>,
    %c2_135 = arith.constant 2 : index
    %c0_136 = arith.constant 0 : index
    %c0_137 = arith.constant 0 : index
    %109 = vector.load %arg13[%c2_135, %c0_136, %c0_137] : memref<18x18x16xf32, #tpu.memory_space<vmem>>, vector<16x16x16xf32>
    %110 = vector.shape_cast %109 : vector<16x16x16xf32> to vector<256x16xf32>
    %c0_138 = arith.constant 0 : index
    %c96_139 = arith.constant 96 : index
    %111 = vector.load %arg14[%c0_138, %c96_139] : memref<256x144xf32, #tpu.memory_space<vmem>>, vector<256x16xf32>
    tpu.vector_store %arg14[%c0_138, %c96_139], %110 {strides = array<i32>} : memref<256x144xf32, #tpu.memory_space<vmem>>, vector<256x16xf32>,
    %c2_140 = arith.constant 2 : index
    %c1_141 = arith.constant 1 : index
    %c0_142 = arith.constant 0 : index
    %112 = vector.load %arg13[%c2_140, %c1_141, %c0_142] : memref<18x18x16xf32, #tpu.memory_space<vmem>>, vector<16x16x16xf32>
    %113 = vector.shape_cast %112 : vector<16x16x16xf32> to vector<256x16xf32>
    %c0_143 = arith.constant 0 : index
    %c112_144 = arith.constant 112 : index
    %114 = vector.load %arg14[%c0_143, %c112_144] : memref<256x144xf32, #tpu.memory_space<vmem>>, vector<256x16xf32>
    tpu.vector_store %arg14[%c0_143, %c112_144], %113 {strides = array<i32>} : memref<256x144xf32, #tpu.memory_space<vmem>>, vector<256x16xf32>,
    %c2_145 = arith.constant 2 : index
    %c2_146 = arith.constant 2 : index
    %c0_147 = arith.constant 0 : index
    %115 = vector.load %arg13[%c2_145, %c2_146, %c0_147] : memref<18x18x16xf32, #tpu.memory_space<vmem>>, vector<16x16x16xf32>
    %116 = vector.shape_cast %115 : vector<16x16x16xf32> to vector<256x16xf32>
    %c0_148 = arith.constant 0 : index
    %c128_149 = arith.constant 128 : index
    %117 = vector.load %arg14[%c0_148, %c128_149] : memref<256x144xf32, #tpu.memory_space<vmem>>, vector<256x16xf32>
    tpu.vector_store %arg14[%c0_148, %c128_149], %116 {strides = array<i32>} : memref<256x144xf32, #tpu.memory_space<vmem>>, vector<256x16xf32>,
    %c0_150 = arith.constant 0 : index
    %c0_151 = arith.constant 0 : index
    %118 = vector.load %arg14[%c0_150, %c0_151] : memref<256x144xf32, #tpu.memory_space<vmem>>, vector<256x144xf32>
    %c0_152 = arith.constant 0 : index
    %c0_153 = arith.constant 0 : index
    %119 = vector.load %arg7[%c0_152, %c0_153] : memref<144x16xf32, #tpu.memory_space<vmem>>, vector<144x16xf32>
    %cst_154 = arith.constant dense<0.000000e+00> : vector<256x16xf32>
    %120 = tpu.matmul %118, %119, %cst_154 {dimension_numbers = #tpu.dot_dimension_numbers<[1], [0], [0], [1], [0, 0, 1, 1], [], []>} : vector<256x144xf32>, vector<144x16xf32>, vector<256x16xf32> -> vector<256x16xf32>
    %c0_155 = arith.constant 0 : index
    %c0_156 = arith.constant 0 : index
    %121 = vector.load %arg8[%c0_155, %c0_156] : memref<1x16xf32, #tpu.memory_space<vmem>>, vector<1x16xf32>
    %122 = vector.broadcast %121 : vector<1x16xf32> to vector<256x16xf32>
    %123 = arith.addf %120, %122 : vector<256x16xf32>
    %c0_157 = arith.constant 0 : index
    %c0_158 = arith.constant 0 : index
    %124 = vector.load %arg9[%c0_157, %c0_158] : memref<1x16xf32, #tpu.memory_space<vmem>>, vector<1x16xf32>
    %c0_159 = arith.constant 0 : index
    %c0_160 = arith.constant 0 : index
    %125 = vector.load %arg10[%c0_159, %c0_160] : memref<1x16xf32, #tpu.memory_space<vmem>>, vector<1x16xf32>
    %cst_161 = arith.constant dense<0.000000e+00> : vector<16xf32>
    %126 = vector.multi_reduction <add>, %123, %cst_161 [0] : vector<256x16xf32> to vector<16xf32>
    %127 = vector.shape_cast %126 : vector<16xf32> to vector<1x16xf32>
    %128 = arith.mulf %123, %123 : vector<256x16xf32>
    %cst_162 = arith.constant dense<0.000000e+00> : vector<16xf32>
    %129 = vector.multi_reduction <add>, %128, %cst_162 [0] : vector<256x16xf32> to vector<16xf32>
    %130 = vector.shape_cast %129 : vector<16xf32> to vector<1x16xf32>
    %131 = tpu.concatenate %127, %130 in 0 : vector<1x16xf32>, vector<1x16xf32> -> vector<2x16xf32>
    %c0_163 = arith.constant 0 : index
    %c0_164 = arith.constant 0 : index
    %132 = vector.load %arg11[%c0_163, %c0_164] : memref<16x16xf32, #tpu.memory_space<vmem>>, vector<16x16xf32>
    %cst_165 = arith.constant dense<0.000000e+00> : vector<2x16xf32>
    %133 = tpu.matmul %131, %132, %cst_165 {dimension_numbers = #tpu.dot_dimension_numbers<[1], [0], [0], [1], [0, 0, 1, 1], [], []>} : vector<2x16xf32>, vector<16x16xf32>, vector<2x16xf32> -> vector<2x16xf32>
    %134 = vector.extract_strided_slice %133 {offsets = [0, 0], sizes = [1, 16], strides = [1, 1]} : vector<2x16xf32> to vector<1x16xf32>
    %135 = vector.extract_strided_slice %133 {offsets = [1, 0], sizes = [1, 16], strides = [1, 1]} : vector<2x16xf32> to vector<1x16xf32>
    %136 = arith.mulf %134, %134 : vector<1x16xf32>
    %137 = arith.subf %135, %136 : vector<1x16xf32>
    %138 = vector.broadcast %134 : vector<1x16xf32> to vector<256x16xf32>
    %139 = arith.subf %123, %138 : vector<256x16xf32>
    %cst_166 = arith.constant 9.99999974E-6 : f32
    %140 = vector.broadcast %cst_166 : f32 to vector<1x16xf32>
    %141 = arith.addf %137, %140 : vector<1x16xf32>
    %142 = math.rsqrt %141 : vector<1x16xf32>
    %143 = vector.broadcast %142 : vector<1x16xf32> to vector<256x16xf32>
    %144 = arith.mulf %139, %143 : vector<256x16xf32>
    %145 = vector.broadcast %124 : vector<1x16xf32> to vector<256x16xf32>
    %146 = arith.mulf %144, %145 : vector<256x16xf32>
    %147 = vector.broadcast %125 : vector<1x16xf32> to vector<256x16xf32>
    %148 = arith.addf %146, %147 : vector<256x16xf32>
    %c0_167 = arith.constant 0 : index
    %c0_168 = arith.constant 0 : index
    %c0_169 = arith.constant 0 : index
    %c0_170 = arith.constant 0 : index
    %149 = vector.load %arg2[%c0_167, %c0_168, %c0_169, %c0_170] : memref<1x16x16x16xf32, #tpu.memory_space<vmem>>, vector<1x16x16x16xf32>
    %150 = vector.shape_cast %149 : vector<1x16x16x16xf32> to vector<16x16x16xf32>
    %151 = vector.shape_cast %148 : vector<256x16xf32> to vector<16x16x16xf32>
    %152 = arith.addf %150, %151 : vector<16x16x16xf32>
    %c0_171 = arith.constant 0 : index
    %c0_172 = arith.constant 0 : index
    %c0_173 = arith.constant 0 : index
    %c0_174 = arith.constant 0 : index
    %153 = vector.load %arg12[%c0_171, %c0_172, %c0_173, %c0_174] : memref<1x16x16x16xf32, #tpu.memory_space<vmem>>, vector<1x16x16x16xf32>
    %154 = vector.shape_cast %153 : vector<1x16x16x16xf32> to vector<16x16x16xf32>
    %155 = vector.shape_cast %152 : vector<16x16x16xf32> to vector<1x16x16x16xf32>
    tpu.vector_store %arg12[%c0_171, %c0_172, %c0_173, %c0_174], %155 {strides = array<i32>} : memref<1x16x16x16xf32, #tpu.memory_space<vmem>>, vector<1x16x16x16xf32>,
    return
  }
  func.func @transform_0(%arg0: i32) -> (i32, i32, i32, i32) {
    %c0_i32 = arith.constant 0 : i32
    %c0_i32_0 = arith.constant 0 : i32
    %c0_i32_1 = arith.constant 0 : i32
    %c0_i32_2 = arith.constant 0 : i32
    return %arg0, %c0_i32, %c0_i32_0, %c0_i32_1 : i32, i32, i32, i32
  }
  func.func @transform_1(%arg0: i32) -> (i32, i32, i32, i32) {
    %c0_i32 = arith.constant 0 : i32
    %c0_i32_0 = arith.constant 0 : i32
    %c0_i32_1 = arith.constant 0 : i32
    %c0_i32_2 = arith.constant 0 : i32
    return %arg0, %c0_i32, %c0_i32_0, %c0_i32_1 : i32, i32, i32, i32
  }
  func.func @transform_2(%arg0: i32) -> (i32, i32) {
    %c0_i32 = arith.constant 0 : i32
    %c0_i32_0 = arith.constant 0 : i32
    %c0_i32_1 = arith.constant 0 : i32
    return %c0_i32, %c0_i32_0 : i32, i32
  }
  func.func @transform_3(%arg0: i32) -> (i32, i32) {
    %c0_i32 = arith.constant 0 : i32
    %c0_i32_0 = arith.constant 0 : i32
    %c0_i32_1 = arith.constant 0 : i32
    return %c0_i32, %c0_i32_0 : i32, i32
  }
  func.func @transform_4(%arg0: i32) -> (i32, i32) {
    %c0_i32 = arith.constant 0 : i32
    %c0_i32_0 = arith.constant 0 : i32
    %c0_i32_1 = arith.constant 0 : i32
    return %c0_i32, %c0_i32_0 : i32, i32
  }
  func.func @transform_5(%arg0: i32) -> (i32, i32) {
    %c0_i32 = arith.constant 0 : i32
    %c0_i32_0 = arith.constant 0 : i32
    %c0_i32_1 = arith.constant 0 : i32
    return %c0_i32, %c0_i32_0 : i32, i32
  }
  func.func @transform_6(%arg0: i32) -> (i32, i32) {
    %c0_i32 = arith.constant 0 : i32
    %c0_i32_0 = arith.constant 0 : i32
    %c0_i32_1 = arith.constant 0 : i32
    return %c0_i32, %c0_i32_0 : i32, i32
  }
  func.func @transform_7(%arg0: i32) -> (i32, i32) {
    %c0_i32 = arith.constant 0 : i32
    %c0_i32_0 = arith.constant 0 : i32
    %c0_i32_1 = arith.constant 0 : i32
    return %c0_i32, %c0_i32_0 : i32, i32
  }
  func.func @transform_8(%arg0: i32) -> (i32, i32) {
    %c0_i32 = arith.constant 0 : i32
    %c0_i32_0 = arith.constant 0 : i32
    %c0_i32_1 = arith.constant 0 : i32
    return %c0_i32, %c0_i32_0 : i32, i32
  }
  func.func @transform_9(%arg0: i32) -> (i32, i32) {
    %c0_i32 = arith.constant 0 : i32
    %c0_i32_0 = arith.constant 0 : i32
    %c0_i32_1 = arith.constant 0 : i32
    return %c0_i32, %c0_i32_0 : i32, i32
  }
  func.func @transform_10(%arg0: i32) -> (i32, i32) {
    %c0_i32 = arith.constant 0 : i32
    %c0_i32_0 = arith.constant 0 : i32
    %c0_i32_1 = arith.constant 0 : i32
    return %c0_i32, %c0_i32_0 : i32, i32
  }
  func.func @transform_11(%arg0: i32) -> (i32, i32, i32, i32) {
    %c0_i32 = arith.constant 0 : i32
    %c0_i32_0 = arith.constant 0 : i32
    %c0_i32_1 = arith.constant 0 : i32
    %c0_i32_2 = arith.constant 0 : i32
    return %arg0, %c0_i32, %c0_i32_0, %c0_i32_1 : i32, i32, i32, i32
  }
}

</mosaic_0001>

<bundles_post_ra>
// kernel: residual_block.1
= control target key start
LH: loop header
LB: loop body
LE: loop exit
PB: predicated region body
PF: predicated region fallthrough
CT: control target
= control target key end

     0   :  { %s5781_s17 = smov 0   ;;  %s9295_s0 = inlined_call_operand.vmem [shape: f32[2,18,18,16], index: 0, kind: input, shape index: {}]   ;;  %s9296_s1 = inlined_call_operand.vmem [shape: f32[2,16,16,16], index: 1, kind: input, shape index: {}]   ;;  %s9297_s2 = inlined_call_operand.vmem [shape: f32[144,16], index: 2, kind: input, shape index: {}]   ;;  %s9298_s3 = inlined_call_operand.vmem [shape: f32[1,16], index: 3, kind: input, shape index: {}]   ;;  %s9299_s4 = inlined_call_operand.vmem [shape: f32[1,16], index: 4, kind: input, shape index: {}]   ;;  %s9300_s5 = inlined_call_operand.vmem [shape: f32[1,16], index: 5, kind: input, shape index: {}]   ;;  %s9301_s6 = inlined_call_operand.vmem [shape: f32[144,16], index: 6, kind: input, shape index: {}]   ;;  %s9302_s7 = inlined_call_operand.vmem [shape: f32[1,16], index: 7, kind: input, shape index: {}]   ;;  %s9303_s8 = inlined_call_operand.vmem [shape: f32[1,16], index: 8, kind: input, shape index: {}]   ;;  %s9304_s9 = inlined_call_operand.vmem [shape: f32[1,16], index: 9, kind: input, shape index: {}]   ;;  %s9305_s10 = inlined_call_operand.vmem [shape: f32[16,16], index: 10, kind: input, shape index: {}]   ;;  %s9306_s11 = inlined_call_operand.vmem [shape: f32[2,16,16,16], index: 11, kind: output, shape index: {}]  }
   0x1 LB: > { %s5322_s18 = sadd.s32 4294967295, %s5709_s17   ;;  %p5326_p0 = scmp.ge.s32.totalorder %s5709_s17, 1  ;;  %s5709_s17 = sphi %s5781_s17, %s21_s17  }
   0x2   : > { %p347_p1 = scmp.lt.s32.totalorder %s5709_s17, 3 }
   0x4   : > { %p348_p2 = pnand %p5326_p0, %p347_p1 }
   0x6   : > { %351 = sbr.rel (%p348_p2) target bundleno = 2168 (0x878), region = 64 }
   0xd   : > { %p392_p3 = scmp.lt.s32.totalorder %s5322_s18, 1  ;;  %v1953_v0 = vld [vmem:[%s9297_s2] sm:$0xff]  ;;  %v1954_v1 = vld [vmem:[%s9297_s2 + $0x8] sm:$0xff]  ;;  %v1955_v2 = vld [vmem:[%s9297_s2 + $0x10] sm:$0xff]  ;;  %v5711_v3 = vmov 0.0|0.0   ;;  %vm439_vm0 = vcmask 130048  }
   0xe   : > { %5620 = vmatprep.subr.bf16.mxu0 %v5711_v3  ;;  %v5621_v4 = vpack.c.bf16 %v1954_v1, %v1953_v0  ;;  %v1956_v5 = vld [vmem:[%s9297_s2 + $0x18] sm:$0xff]  ;;  %5647 = vmatprep.subr.bf16.mxu1 %v5711_v3  ;;  %v1957_v7 = vld [vmem:[%s9297_s2 + $0x20] sm:$0xff]  ;;  %v1958_v8 = vld [vmem:[%s9297_s2 + $0x28] sm:$0xff]  ;;  %s5712_s16 = smov 48   ;;  %s5713_s19 = smov 16   ;;  %vm9308_vm1 = vcmask 261248  }
   0xf   : > { %s9554_s18 = smov (!%p392_p3, %s5322_s18), 1  ;;  %v5624_v6 = vpack.c.bf16 %v1956_v5, %v1955_v2  ;;  %v5627_v11 = vpack.c.bf16 %v1958_v8, %v1957_v7  ;;  %v1959_v12 = vld [vmem:[%s9297_s2 + $0x30] sm:$0xff]  ;;  %v1960_v13 = vld [vmem:[%s9297_s2 + $0x38] sm:$0xff]  ;;  %v1961_v18 = vld [vmem:[%s9297_s2 + $0x40] sm:$0xff]  ;;  %s5714_s28 = smov 64   ;;  %vm9314_vm2 = vcmask 392448  }
  0x10   : > { %5622 = vmatpush1.bf16.msra.mxu0 %v5621_v4  ;;  %s5680_s27 = smul.u32 432, %s9554_s18  ;;  %v5630_v21 = vpack.c.bf16 %v1960_v13, %v1959_v12  ;;  %v1962_v22 = vld [vmem:[%s9297_s2 + $0x48] sm:$0xff]  ;;  %s5715_s29 = smov 32   ;;  %v1963_v33 = vld [vmem:[%s9297_s2 + $0x50] sm:$0xff]  ;;  %v1964_v35 = vld [vmem:[%s9297_s2 + $0x58] sm:$0xff]  ;;  %vm9313_vm3 = vcmask 523648  }
  0x11   : > { %5623 = vmatprep.subr.bf16.mxu0 %v5711_v3  ;;  %v5633_v32 = vpack.c.bf16 %v1962_v22, %v1961_v18  ;;  %s5716_s13 = smov 80   ;;  %v5636_v43 = vpack.c.bf16 %v1964_v35, %v1963_v33  ;;  %s5717_s21 = smov 96   ;;  %v1965_v45 = vld [vmem:[%s9297_s2 + $0x60] sm:$0xff]  ;;  %v1966_v46 = vld [vmem:[%s9297_s2 + $0x68] sm:$0xff]  ;;  %v1967_v52 = vld [vmem:[%s9297_s2 + $0x70] sm:$0xff]  ;;  %vm9312_vm4 = vcmask 654848  }
  0x12   : > { %s5816_s15 = scalar_lea.vmem %s9295_s0, %s5680_s27  ;;  %v5639_v51 = vpack.c.bf16 %v1966_v46, %v1965_v45  ;;  %s5718_s26 = smov 112   ;;  %v1968_v53 = vld [vmem:[%s9297_s2 + $0x78] sm:$0xff]  ;;  %v1969_v57 = vld [vmem:[%s9297_s2 + $0x80] sm:$0xff]  ;;  %v1970_v58 = vld [vmem:[%s9297_s2 + $0x88] sm:$0xff]  ;;  %vm9311_vm5 = vcmask 786048   ;;  %vm9310_vm6 = vcmask 917248  }
  0x13   : > { %v5332_v9 = vld [vmem:[%s5816_s15 + $0x18] sm:$0xff]  ;;  %v472_v10 = vld [vmem:[%s5816_s15 + $0x1] sm:$0xff]  ;;  %v5834_v16 = vld [vmem:[%s5816_s15 + $0x30] sm:$0xff]  ;;  %v5642_v55 = vpack.c.bf16 %v1968_v53, %v1967_v52  ;;  %v5645_v60 = vpack.c.bf16 %v1970_v58, %v1969_v57  ;;  %vm9309_vm7 = vcmask 1048448   ;;  %vm2801_vm8 = vcmask 123904   ;;  %s5598_s22 = sshll.u32 %s9554_s18, 8 }
  0x14   : > { %5625 = vmatpush1.bf16.msra.mxu0 %v5624_v6  ;;  %923 = vrot.lane.b32.xlu1 %v5332_v9, %s5712_s16  ;;  %442 = vst.msk [vmem:[#allocation3 + $0x20] sm:$0xff] %vm439_vm0, %v5332_v9  ;;  %v5830_v14 = vld [vmem:[%s5816_s15 + $0x19] sm:$0xff]  ;;  %v665_v15 = vld [vmem:[%s5816_s15 + $0x2] sm:$0xff]  ;;  %444 = vst.msk [vmem:[#allocation3 + $0x40] sm:$0xff] %vm439_vm0, %v5834_v16  ;;  %vm5720_vm9 = vmmov 0   ;;  %vm9307_vm10 = vcmask 1040384   ;;  %s9127_s27 = scalar_lea.vmem %s9296_s1, %s5598_s22  ;;  %s9180_s14 = scalar_lea.vmem %s9306_s11, %s5598_s22 }
  0x15   : > { %536 = vrot.lane.b32.xlu0 %v472_v10, %s5713_s19  ;;  %5626 = vmatprep.subr.bf16.mxu0 %v5711_v3  ;;  %v5838_v17 = vld [vmem:[%s5816_s15 + $0x20] sm:$0xff]  ;;  %v5849_v20 = vld [vmem:[%s5816_s15 + $0x38] sm:$0xff]  ;;  %v5863_v24 = vld [vmem:[%s5816_s15 + $0x48] sm:$0xff]  ;;  %vm2808_vm11 = vcmask 122880  }
  0x16   : > { %v5846_v19 = vld [vmem:[%s5816_s15 + $0x1a] sm:$0xff]  ;;  %443 = vst.msk [vmem:[#allocation3 + $0x30] sm:$0xff] %vm439_vm0, %v5838_v17  ;;  %v5860_v23 = vld [vmem:[%s5816_s15 + $0x32] sm:$0xff]  ;;  %445 = vst.msk [vmem:[#allocation3 + $0x50] sm:$0xff] %vm439_vm0, %v5849_v20 }
  0x17   : > { %v473_v25 = vld [vmem:[%s5816_s15 + $0x9] sm:$0xff]  ;;  %v5869_v26 = vld [vmem:[%s5816_s15 + $0x3a] sm:$0xff]  ;;  %1857 = vst.msk [vmem:[#allocation3 + $0x8] sm:$0xff] %vm439_vm0, %v5860_v23  ;;  %446 = vst.msk [vmem:[#allocation3 + $0x60] sm:$0xff] %vm439_vm0, %v5863_v24 }
  0x18   : > { %5628 = vmatpush1.bf16.msra.mxu0 %v5627_v11  ;;  %1116 = vrot.lane.b32.xlu1 %v5830_v14, %s5714_s28  ;;  %v5872_v27 = vld [vmem:[%s5816_s15 + $0x50] sm:$0xff]  ;;  %v5883_v29 = vld [vmem:[%s5816_s15 + $0x60] sm:$0xff]  ;;  %1858 = vst.msk [vmem:[#allocation3 + $0x18] sm:$0xff] %vm439_vm0, %v5869_v26  ;;  %v5893_v31 = vld [vmem:[%s5816_s15 + $0x68] sm:$0xff] }
  0x19   : > { %729 = vrot.lane.b32.xlu0 %v665_v15, %s5715_s29  ;;  %5629 = vmatprep.subr.bf16.mxu0 %v5711_v3  ;;  %v5880_v28 = vld [vmem:[%s5816_s15 + $0x4a] sm:$0xff]  ;;  %447 = vst.msk [vmem:[#allocation3 + $0x70] sm:$0xff] %vm439_vm0, %v5872_v27  ;;  %v5890_v30 = vld [vmem:[%s5816_s15 + $0x52] sm:$0xff]  ;;  %448 = vst.msk [vmem:[#allocation3 + $0x80] sm:$0xff] %vm439_vm0, %v5883_v29 }
  0x1a   : > { %1859 = vst.msk [vmem:[#allocation3 + $0x28] sm:$0xff] %vm439_vm0, %v5880_v28  ;;  %v5906_v34 = vld [vmem:[%s5816_s15 + $0x62] sm:$0xff]  ;;  %1860 = vst.msk [vmem:[#allocation3 + $0x38] sm:$0xff] %vm439_vm0, %v5890_v30  ;;  %v666_v36 = vld [vmem:[%s5816_s15 + $0xa] sm:$0xff] }
  0x1b   : > { %449 = vst.msk [vmem:[#allocation3 + $0x90] sm:$0xff] %vm439_vm0, %v5893_v31  ;;  %v5917_v37 = vld [vmem:[%s5816_s15 + $0x78] sm:$0xff]  ;;  %v5920_v38 = vld [vmem:[%s5816_s15 + $0x6a] sm:$0xff]  ;;  %1861 = vst.msk [vmem:[#allocation3 + $0x48] sm:$0xff] %vm439_vm0, %v5906_v34 }
  0x1c   : > { %5631 = vmatpush1.bf16.msra.mxu0 %v5630_v21  ;;  %1309 = vrot.lane.b32.xlu1 %v5846_v19, %s5716_s13  ;;  %v5926_v39 = vld [vmem:[%s5816_s15 + $0x80] sm:$0xff]  ;;  %1862 = vst.msk [vmem:[#allocation3 + $0x58] sm:$0xff] %vm439_vm0, %v5920_v38  ;;  %450 = vst.msk [vmem:[#allocation3 + $0xa0] sm:$0xff] %vm439_vm0, %v5917_v37  ;;  %v408_v42 = vld [vmem:[%s5816_s15 + $0x8] sm:$0xff] }
  0x1d   : > { %538 = vrot.lane.b32.xlu0 %v473_v25, %s5713_s19  ;;  %5632 = vmatprep.subr.bf16.mxu0 %v5711_v3  ;;  %v407_v40 = vld [vmem:[%s5816_s15] sm:$0xff]  ;;  %v5939_v44 = vld [vmem:[%s5816_s15 + $0x90] sm:$0xff]  ;;  %451 = vst.msk [vmem:[#allocation3 + $0xb0] sm:$0xff] %vm439_vm0, %v5926_v39  ;;  %441 = vst.msk [vmem:[#allocation3 + $0x10] sm:$0xff] %vm439_vm0, %v408_v42 }
  0x1e   : > { %440 = vst.msk [vmem:[#allocation3] sm:$0xff] %vm439_vm0, %v407_v40  ;;  %v5935_v41 = vld [vmem:[%s5816_s15 + $0x7a] sm:$0xff]  ;;  %452 = vst.msk [vmem:[#allocation3 + $0xc0] sm:$0xff] %vm439_vm0, %v5939_v44  ;;  %v5460_v48 = vld [vmem:[%s5816_s15 + $0x31] sm:$0xff] }
  0x1f   : > { %v1890_v47 = vld [vmem:[#allocation3 + $0x8] sm:$0xff]  ;;  %1863 = vst.msk [vmem:[#allocation3 + $0x68] sm:$0xff] %vm439_vm0, %v5935_v41  ;;  %v5961_v49 = vld [vmem:[%s5816_s15 + $0x82] sm:$0xff]  ;;  %v6023_v0 = vld [vmem:[%s5816_s15 + $0xb0] sm:$0xff] }
  0x20   : > { %5634 = vmatpush1.bf16.msra.mxu0 %v5633_v32  ;;  %1503 = vrot.lane.b32.xlu1 %v5834_v16, %s5717_s21  ;;  %v5964_v50 = vld [vmem:[%s5816_s15 + $0x98] sm:$0xff]  ;;  %1864 = vst.msk [vmem:[#allocation3 + $0x78] sm:$0xff] %vm439_vm0, %v5961_v49  ;;  %v5365_v54 = vld [vmem:[%s5816_s15 + $0x21] sm:$0xff]  ;;  %455 = vst.msk [vmem:[#allocation3 + $0xf0] sm:$0xff] %vm439_vm0, %v6023_v0 }
  0x21   : > { %731 = vrot.lane.b32.xlu0 %v666_v36, %s5715_s29  ;;  %5635 = vmatprep.subr.bf16.mxu0 %v5711_v3  ;;  %453 = vst.msk [vmem:[#allocation3 + $0xd0] sm:$0xff] %vm439_vm0, %v5964_v50  ;;  %v5982_v56 = vld [vmem:[%s5816_s15 + $0x92] sm:$0xff]  ;;  %v5397_v59 = vld [vmem:[%s5816_s15 + $0x22] sm:$0xff]  ;;  %v6015_v63 = vld [vmem:[%s5816_s15 + $0x9a] sm:$0xff] }
  0x22   : > { %5525 = vmatprep.mubr.msk.f32.mxu0 %vm439_vm0, %v1890_v47  ;;  %1865 = vst.msk [vmem:[#allocation3 + $0x88] sm:$0xff] %vm439_vm0, %v5982_v56  ;;  %v5998_v61 = vld [vmem:[%s5816_s15 + $0xa8] sm:$0xff]  ;;  %v5461_v62 = vld [vmem:[%s5816_s15 + $0x39] sm:$0xff]  ;;  %1866 = vst.msk [vmem:[#allocation3 + $0x98] sm:$0xff] %vm439_vm0, %v6015_v63 }
  0x23   : > { %454 = vst.msk [vmem:[#allocation3 + $0xe0] sm:$0xff] %vm439_vm0, %v5998_v61  ;;  %v5462_v1 = vld [vmem:[%s5816_s15 + $0x49] sm:$0xff]  ;;  %v6042_v4 = vld [vmem:[%s5816_s15 + $0xc0] sm:$0xff]  ;;  %v5463_v5 = vld [vmem:[%s5816_s15 + $0x51] sm:$0xff] }
  0x24   : > { %5637 = vmatpush1.bf16.msra.mxu0 %v5636_v43  ;;  %1696 = vrot.lane.b32.xlu1 %v5460_v48, %s5718_s26  ;;  %v6035_v2 = vld [vmem:[%s5816_s15 + $0xaa] sm:$0xff]  ;;  %456 = vst.msk [vmem:[#allocation3 + $0x100] sm:$0xff] %vm439_vm0, %v6042_v4  ;;  %v6058_v6 = vld [vmem:[%s5816_s15 + $0xb2] sm:$0xff]  ;;  %v5464_v8 = vld [vmem:[%s5816_s15 + $0x61] sm:$0xff] }
  0x25   : > { %925 = vrot.lane.b32.xlu0 %v5838_v17, %s5712_s16  ;;  %5638 = vmatprep.subr.bf16.mxu0 %v5711_v3  ;;  %1867 = vst.msk [vmem:[#allocation3 + $0xa8] sm:$0xff] %vm439_vm0, %v6035_v2  ;;  %1868 = vst.msk [vmem:[#allocation3 + $0xb8] sm:$0xff] %vm439_vm0, %v6058_v6  ;;  %v6066_v7 = vld [vmem:[%s5816_s15 + $0xc8] sm:$0xff]  ;;  %v6086_v10 = vld [vmem:[%s5816_s15 + $0xd8] sm:$0xff] }
  0x26   : > { %457 = vst.msk [vmem:[#allocation3 + $0x110] sm:$0xff] %vm439_vm0, %v6066_v7  ;;  %v6079_v9 = vld [vmem:[%s5816_s15 + $0xc2] sm:$0xff]  ;;  %458 = vst.msk [vmem:[#allocation3 + $0x120] sm:$0xff] %vm439_vm0, %v6086_v10  ;;  %v6102_v12 = vld [vmem:[%s5816_s15 + $0xca] sm:$0xff] }
  0x27   : > { %1869 = vst.msk [vmem:[#allocation3 + $0xc8] sm:$0xff] %vm439_vm0, %v6079_v9  ;;  %v5465_v11 = vld [vmem:[%s5816_s15 + $0x69] sm:$0xff]  ;;  %1870 = vst.msk [vmem:[#allocation3 + $0xd8] sm:$0xff] %vm439_vm0, %v6102_v12  ;;  %v6110_v13 = vld [vmem:[%s5816_s15 + $0xe0] sm:$0xff] }
  0x28   : > { %5640 = vmatpush1.bf16.msra.mxu0 %v5639_v51  ;;  %540 = vrot.lane.b32.xlu1 %v5830_v14, %s5713_s19  ;;  %459 = vst.msk [vmem:[#allocation3 + $0x130] sm:$0xff] %vm439_vm0, %v6110_v13  ;;  %v5466_v14 = vld [vmem:[%s5816_s15 + $0x79] sm:$0xff]  ;;  %v6143_v17 = vld [vmem:[%s5816_s15 + $0x81] sm:$0xff]  ;;  %v6231_v47 = vld [vmem:[%s5816_s15 + $0x110] sm:$0xff] }
  0x29   : > { %1118 = vrot.lane.b32.xlu0 %v5365_v54, %s5714_s28  ;;  %5641 = vmatprep.subr.bf16.mxu0 %v5711_v3  ;;  %v6123_v15 = vld [vmem:[%s5816_s15 + $0xda] sm:$0xff]  ;;  %v6151_v22 = vld [vmem:[%s5816_s15 + $0xe2] sm:$0xff]  ;;  %463 = vst.msk [vmem:[#allocation3 + $0x170] sm:$0xff] %vm439_vm0, %v6231_v47  ;;  %v6252_v57 = vld [vmem:[%s5816_s15 + $0x10a] sm:$0xff] }
  0x2a   : > { %1871 = vst.msk [vmem:[#allocation3 + $0xe8] sm:$0xff] %vm439_vm0, %v6123_v15  ;;  %1872 = vst.msk [vmem:[#allocation3 + $0xf8] sm:$0xff] %vm439_vm0, %v6151_v22  ;;  %v6163_v25 = vld [vmem:[%s5816_s15 + $0xf8] sm:$0xff] }
  0x2b   : > { %461 = vst.msk [vmem:[#allocation3 + $0x150] sm:$0xff] %vm439_vm0, %v6163_v25  ;;  %1875 = vst.msk [vmem:[#allocation3 + $0x128] sm:$0xff] %vm439_vm0, %v6252_v57 }
  0x2c   : > { %5643 = vmatpush1.bf16.msra.mxu0 %v5642_v55  ;;  %733 = vrot.lane.b32.xlu1 %v5846_v19, %s5715_s29 }
  0x2d   : > { %1311 = vrot.lane.b32.xlu0 %v5397_v59, %s5716_s13  ;;  %5644 = vmatprep.subr.bf16.mxu0 %v5711_v3 }
  0x30   : > { %5646 = vmatpush1.bf16.msra.mxu0 %v5645_v60  ;;  %927 = vrot.lane.b32.xlu1 %v5834_v16, %s5712_s16  ;;  %v6130_v16 = vld [vmem:[%s5816_s15 + $0xf0] sm:$0xff] }
  0x31   : > { %1505 = vrot.lane.b32.xlu0 %v5849_v20, %s5717_s21  ;;  %5677 = vmatprep.subr.bf16.mxu0 %v5711_v3  ;;  %460 = vst.msk [vmem:[#allocation3 + $0x140] sm:$0xff] %vm439_vm0, %v6130_v16 }
  0x34   : > { %1120 = vrot.lane.b32.xlu1 %v5460_v48, %s5714_s28 }
  0x35   : > { %1698 = vrot.lane.b32.xlu0 %v5461_v62, %s5718_s26 }
  0x38   : > { %1313 = vrot.lane.b32.xlu1 %v5860_v23, %s5716_s13 }
  0x39   : > { %542 = vrot.lane.b32.xlu0 %v5365_v54, %s5713_s19  ;;  %v1894_v54 = vld [vmem:[#allocation3 + $0x28] sm:$0xff] }
  0x3c   : > { %1507 = vrot.lane.b32.xlu1 %v5863_v24, %s5717_s21 }
  0x3d   : > { %735 = vrot.lane.b32.xlu0 %v5397_v59, %s5715_s29  ;;  %v6263_v59 = vld [vmem:[%s5816_s15 + $0x120] sm:$0xff] }
  0x3e   : > { %464 = vst.msk [vmem:[#allocation3 + $0x180] sm:$0xff] %vm439_vm0, %v6263_v59 }
  0x40   : > { %1700 = vrot.lane.b32.xlu1 %v5462_v1, %s5718_s26 }
  0x41   : > { %929 = vrot.lane.b32.xlu0 %v5849_v20, %s5712_s16 }
  0x44   : > { %544 = vrot.lane.b32.xlu1 %v5460_v48, %s5713_s19  ;;  %v6240_v48 = vld [vmem:[%s5816_s15 + $0xa9] sm:$0xff] }
  0x45   : > { %1122 = vrot.lane.b32.xlu0 %v5461_v62, %s5714_s28 }
  0x48   : > { %737 = vrot.lane.b32.xlu1 %v5860_v23, %s5715_s29 }
  0x49   : > { %1315 = vrot.lane.b32.xlu0 %v5869_v26, %s5716_s13 }
  0x4c   : > { %931 = vrot.lane.b32.xlu1 %v5863_v24, %s5712_s16 }
  0x4d   : > { %1509 = vrot.lane.b32.xlu0 %v5872_v27, %s5717_s21 }
  0x50   : > { %1124 = vrot.lane.b32.xlu1 %v5462_v1, %s5714_s28 }
  0x51   : > { %1702 = vrot.lane.b32.xlu0 %v5463_v5, %s5718_s26 }
  0x54   : > { %1317 = vrot.lane.b32.xlu1 %v5880_v28, %s5716_s13 }
  0x55   : > { %546 = vrot.lane.b32.xlu0 %v5461_v62, %s5713_s19 }
  0x58   : > { %1511 = vrot.lane.b32.xlu1 %v5883_v29, %s5717_s21 }
  0x59   : > { %739 = vrot.lane.b32.xlu0 %v5869_v26, %s5715_s29  ;;  %v6172_v26 = vld [vmem:[%s5816_s15 + $0x91] sm:$0xff] }
  0x5c   : > { %1704 = vrot.lane.b32.xlu1 %v5464_v8, %s5718_s26 }
  0x5d   : > { %933 = vrot.lane.b32.xlu0 %v5872_v27, %s5712_s16 }
  0x60   : > { %548 = vrot.lane.b32.xlu1 %v5462_v1, %s5713_s19 }
  0x61   : > { %1126 = vrot.lane.b32.xlu0 %v5463_v5, %s5714_s28 }
  0x64   : > { %741 = vrot.lane.b32.xlu1 %v5880_v28, %s5715_s29 }
  0x65   : > { %1319 = vrot.lane.b32.xlu0 %v5890_v30, %s5716_s13 }
  0x68   : > { %935 = vrot.lane.b32.xlu1 %v5883_v29, %s5712_s16 }
  0x69   : > { %1513 = vrot.lane.b32.xlu0 %v5893_v31, %s5717_s21 }
  0x6c   : > { %1128 = vrot.lane.b32.xlu1 %v5464_v8, %s5714_s28 }
  0x6d   : > { %1706 = vrot.lane.b32.xlu0 %v5465_v11, %s5718_s26 }
  0x70   : > { %1321 = vrot.lane.b32.xlu1 %v5906_v34, %s5716_s13 }
  0x71   : > { %550 = vrot.lane.b32.xlu0 %v5463_v5, %s5713_s19  ;;  %v1896_v5 = vld [vmem:[#allocation3 + $0x38] sm:$0xff] }
  0x74   : > { %1515 = vrot.lane.b32.xlu1 %v5917_v37, %s5717_s21 }
  0x75   : > { %743 = vrot.lane.b32.xlu0 %v5890_v30, %s5715_s29 }
  0x78   : > { %1708 = vrot.lane.b32.xlu1 %v5466_v14, %s5718_s26 }
  0x79   : > { %937 = vrot.lane.b32.xlu0 %v5893_v31, %s5712_s16  ;;  %v6183_v31 = vld [vmem:[%s5816_s15 + $0xf2] sm:$0xff] }
  0x7a   : > { %1873 = vst.msk [vmem:[#allocation3 + $0x108] sm:$0xff] %vm439_vm0, %v6183_v31 }
  0x7c   : > { %552 = vrot.lane.b32.xlu1 %v5464_v8, %s5713_s19 }
  0x7d   : > { %1130 = vrot.lane.b32.xlu0 %v5465_v11, %s5714_s28 }
  0x80   : > { %745 = vrot.lane.b32.xlu1 %v5906_v34, %s5715_s29  ;;  %v6193_v34 = vld [vmem:[%s5816_s15 + $0x108] sm:$0xff] }
  0x81   : > { %1323 = vrot.lane.b32.xlu0 %v5920_v38, %s5716_s13  ;;  %462 = vst.msk [vmem:[#allocation3 + $0x160] sm:$0xff] %vm439_vm0, %v6193_v34 }
  0x84   : > { %939 = vrot.lane.b32.xlu1 %v5917_v37, %s5712_s16 }
  0x85   : > { %1517 = vrot.lane.b32.xlu0 %v5926_v39, %s5717_s21 }
  0x86   : > { %v924_v18 = vpop.permute.xlu1 %923 }
  0x87   : > { %v537_v19 = vpop.permute.xlu0 %536 }
  0x88   : > { %633 = vst.msk [vmem:[#allocation3] sm:$0xff] %vm9308_vm1, %v537_v19  ;;  %1132 = vrot.lane.b32.xlu1 %v5466_v14, %s5714_s28 }
  0x89   : > { %1710 = vrot.lane.b32.xlu0 %v6143_v17, %s5718_s26 }
  0x8a   : > { %v1117_v20 = vpop.permute.xlu1 %1116 }
  0x8b   : > { %v730_v21 = vpop.permute.xlu0 %729 }
  0x8c   : > { %826 = vst.msk [vmem:[#allocation3] sm:$0xff] %vm9314_vm2, %v730_v21  ;;  %1325 = vrot.lane.b32.xlu1 %v5935_v41, %s5716_s13  ;;  %v6310_v21 = vld [vmem:[%s5816_s15 + $0xc1] sm:$0xff] }
  0x8d   : > { %1020 = vst.msk [vmem:[#allocation3] sm:$0xff] %vm9313_vm3, %v924_v18  ;;  %554 = vrot.lane.b32.xlu0 %v5465_v11, %s5713_s19 }
  0x8e   : > { %1213 = vst.msk [vmem:[#allocation3] sm:$0xff] %vm9312_vm4, %v1117_v20  ;;  %v1310_v23 = vpop.permute.xlu1 %1309  ;;  %v6301_v20 = vld [vmem:[%s5816_s15 + $0x128] sm:$0xff] }
  0x8f   : > { %v539_v24 = vpop.permute.xlu0 %538  ;;  %1406 = vst.msk [vmem:[#allocation3] sm:$0xff] %vm9311_vm5, %v1310_v23 }
  0x90   : > { %634 = vst.msk [vmem:[#allocation3 + $0x10] sm:$0xff] %vm9308_vm1, %v539_v24  ;;  %1519 = vrot.lane.b32.xlu1 %v5939_v44, %s5717_s21 }
  0x91   : > { %747 = vrot.lane.b32.xlu0 %v5920_v38, %s5715_s29  ;;  %v1892_v38 = vld [vmem:[#allocation3 + $0x18] sm:$0xff]  ;;  %465 = vst.msk [vmem:[#allocation3 + $0x190] sm:$0xff] %vm439_vm0, %v6301_v20 }
  0x92   : > { %v1504_v27 = vpop.permute.xlu1 %1503 }
  0x93   : > { %v732_v28 = vpop.permute.xlu0 %731  ;;  %1600 = vst.msk [vmem:[#allocation3] sm:$0xff] %vm9310_vm6, %v1504_v27  ;;  %v1898_v27 = vld [vmem:[#allocation3 + $0x48] sm:$0xff] }
  0x94   : > { %827 = vst.msk [vmem:[#allocation3 + $0x10] sm:$0xff] %vm9314_vm2, %v732_v28  ;;  %1712 = vrot.lane.b32.xlu1 %v6172_v26, %s5718_s26 }
  0x95   : > { %941 = vrot.lane.b32.xlu0 %v5926_v39, %s5712_s16  ;;  %v6208_v39 = vld [vmem:[%s5816_s15 + $0x99] sm:$0xff] }
  0x96   : > { %v1697_v29 = vpop.permute.xlu1 %1696 }
  0x97   : > { %v926_v30 = vpop.permute.xlu0 %925  ;;  %1793 = vst.msk [vmem:[#allocation3] sm:$0xff] %vm9309_vm7, %v1697_v29  ;;  %v6322_v29 = vld [vmem:[%s5816_s15 + $0x122] sm:$0xff] }
  0x98   : > { %1021 = vst.msk [vmem:[#allocation3 + $0x10] sm:$0xff] %vm9313_vm3, %v926_v30  ;;  %556 = vrot.lane.b32.xlu1 %v5466_v14, %s5713_s19 }
  0x99   : > { %1134 = vrot.lane.b32.xlu0 %v6143_v17, %s5714_s28  ;;  %1877 = vst.msk [vmem:[#allocation3 + $0x148] sm:$0xff] %vm439_vm0, %v6322_v29 }
  0x9a   : > { %v541_v32 = vpop.permute.xlu1 %540 }
  0x9b   : > { %v1119_v33 = vpop.permute.xlu0 %1118  ;;  %635 = vst.msk [vmem:[#allocation3 + $0x20] sm:$0xff] %vm9308_vm1, %v541_v32  ;;  %v6333_v32 = vld [vmem:[%s5816_s15 + $0x138] sm:$0xff] }
  0x9c   : > { %1214 = vst.msk [vmem:[#allocation3 + $0x10] sm:$0xff] %vm9312_vm4, %v1119_v33  ;;  %749 = vrot.lane.b32.xlu1 %v5935_v41, %s5715_s29 }
  0x9d   : > { %1327 = vrot.lane.b32.xlu0 %v5961_v49, %s5716_s13  ;;  %466 = vst.msk [vmem:[#allocation3 + $0x1a0] sm:$0xff] %vm439_vm0, %v6333_v32 }
  0x9e   : > { %v734_v35 = vpop.permute.xlu1 %733  ;;  %v1889_v37 = vld [vmem:[#allocation3] sm:$0xff] }
  0x9f   : > { %v1312_v36 = vpop.permute.xlu0 %1311  ;;  %828 = vst.msk [vmem:[#allocation3 + $0x20] sm:$0xff] %vm9314_vm2, %v734_v35  ;;  %2139 = vmatmul.mubr.f32.vlgmr.msra.gmra.mrb[0].mxu0 %v1889_v37  ;;  %v1900_v37 = vld [vmem:[#allocation3 + $0x58] sm:$0xff] }
  0xa0   : > { %1407 = vst.msk [vmem:[#allocation3 + $0x10] sm:$0xff] %vm9311_vm5, %v1312_v36  ;;  %943 = vrot.lane.b32.xlu1 %v5939_v44, %s5712_s16  ;;  %5526 = vmatprep.mubr.msk.f32.mxu0 %vm439_vm0, %v1892_v38  ;;  %v6220_v44 = vld [vmem:[%s5816_s15 + $0xfa] sm:$0xff] }
  0xa1   : > { %1521 = vrot.lane.b32.xlu0 %v5964_v50, %s5717_s21  ;;  %1874 = vst.msk [vmem:[#allocation3 + $0x118] sm:$0xff] %vm439_vm0, %v6220_v44 }
  0xa2   : > { %v928_v40 = vpop.permute.xlu1 %927 }
  0xa3   : > { %v1506_v41 = vpop.permute.xlu0 %1505  ;;  %1022 = vst.msk [vmem:[#allocation3 + $0x20] sm:$0xff] %vm9313_vm3, %v928_v40 }
  0xa4   : > { %1601 = vst.msk [vmem:[#allocation3 + $0x10] sm:$0xff] %vm9310_vm6, %v1506_v41  ;;  %1136 = vrot.lane.b32.xlu1 %v6172_v26, %s5714_s28  ;;  %v6360_v41 = vld [vmem:[%s5816_s15 + $0x12a] sm:$0xff] }
  0xa5   : > { %1714 = vrot.lane.b32.xlu0 %v6208_v39, %s5718_s26  ;;  %1878 = vst.msk [vmem:[#allocation3 + $0x158] sm:$0xff] %vm439_vm0, %v6360_v41 }
  0xa6   : > { %v1121_v42 = vpop.permute.xlu1 %1120 }
  0xa7   : > { %v1699_v43 = vpop.permute.xlu0 %1698  ;;  %1215 = vst.msk [vmem:[#allocation3 + $0x20] sm:$0xff] %vm9312_vm4, %v1121_v42 }
  0xa8   : > { %1794 = vst.msk [vmem:[#allocation3 + $0x10] sm:$0xff] %vm9309_vm7, %v1699_v43  ;;  %1329 = vrot.lane.b32.xlu1 %v5982_v56, %s5716_s13 }
  0xa9   : > { %558 = vrot.lane.b32.xlu0 %v6143_v17, %s5713_s19  ;;  %v6290_v17 = vld [vmem:[%s5816_s15 + $0x112] sm:$0xff] }
  0xaa   : > { %v1314_v45 = vpop.permute.xlu1 %1313  ;;  %1876 = vst.msk [vmem:[#allocation3 + $0x138] sm:$0xff] %vm439_vm0, %v6290_v17 }
  0xab   : > { %v543_v46 = vpop.permute.xlu0 %542  ;;  %1408 = vst.msk [vmem:[#allocation3 + $0x20] sm:$0xff] %vm9311_vm5, %v1314_v45  ;;  %v6371_v45 = vld [vmem:[%s5816_s15 + $0x140] sm:$0xff] }
  0xac   : > { %636 = vst.msk [vmem:[#allocation3 + $0x30] sm:$0xff] %vm9308_vm1, %v543_v46  ;;  %1523 = vrot.lane.b32.xlu1 %v5998_v61, %s5717_s21  ;;  %v6380_v46 = vld [vmem:[%s5816_s15 + $0xd9] sm:$0xff] }
  0xad   : > { %751 = vrot.lane.b32.xlu0 %v5961_v49, %s5715_s29  ;;  %467 = vst.msk [vmem:[#allocation3 + $0x1b0] sm:$0xff] %vm439_vm0, %v6371_v45 }
  0xae   : > { %v1508_v51 = vpop.permute.xlu1 %1507 }
  0xaf   : > { %v736_v52 = vpop.permute.xlu0 %735  ;;  %v1891_v53 = vld [vmem:[#allocation3 + $0x10] sm:$0xff]  ;;  %1602 = vst.msk [vmem:[#allocation3 + $0x20] sm:$0xff] %vm9310_vm6, %v1508_v51 }
  0xb0   : > { %829 = vst.msk [vmem:[#allocation3 + $0x30] sm:$0xff] %vm9314_vm2, %v736_v52  ;;  %2144 = vmatmul.mubr.f32.gmra.mrb[2].mxu0 %v1891_v53  ;;  %1716 = vrot.lane.b32.xlu1 %v6240_v48, %s5718_s26  ;;  %v1902_v53 = vld [vmem:[#allocation3 + $0x68] sm:$0xff] }
  0xb1   : > { %945 = vrot.lane.b32.xlu0 %v5964_v50, %s5712_s16  ;;  %5527 = vmatprep.mubr.msk.f32.mxu0 %vm439_vm0, %v1894_v54 }
  0xb2   : > { %v1701_v49 = vpop.permute.xlu1 %1700 }
  0xb3   : > { %v930_v55 = vpop.permute.xlu0 %929  ;;  %1795 = vst.msk [vmem:[#allocation3 + $0x20] sm:$0xff] %vm9309_vm7, %v1701_v49  ;;  %v6392_v49 = vld [vmem:[%s5816_s15 + $0x13a] sm:$0xff] }
  0xb4   : > { %1023 = vst.msk [vmem:[#allocation3 + $0x30] sm:$0xff] %vm9313_vm3, %v930_v55  ;;  %560 = vrot.lane.b32.xlu1 %v6172_v26, %s5713_s19 }
  0xb5   : > { %1138 = vrot.lane.b32.xlu0 %v6208_v39, %s5714_s28  ;;  %1879 = vst.msk [vmem:[#allocation3 + $0x168] sm:$0xff] %vm439_vm0, %v6392_v49 }
  0xb6   : > { %v545_v50 = vpop.permute.xlu1 %544 }
  0xb7   : > { %v1123_v58 = vpop.permute.xlu0 %1122  ;;  %637 = vst.msk [vmem:[#allocation3 + $0x40] sm:$0xff] %vm9308_vm1, %v545_v50  ;;  %v6403_v50 = vld [vmem:[%s5816_s15 + $0x150] sm:$0xff] }
  0xb8   : > { %1216 = vst.msk [vmem:[#allocation3 + $0x30] sm:$0xff] %vm9312_vm4, %v1123_v58  ;;  %753 = vrot.lane.b32.xlu1 %v5982_v56, %s5715_s29  ;;  %v6278_v56 = vld [vmem:[%s5816_s15 + $0xb1] sm:$0xff] }
  0xb9   : > { %1331 = vrot.lane.b32.xlu0 %v6015_v63, %s5716_s13  ;;  %468 = vst.msk [vmem:[#allocation3 + $0x1c0] sm:$0xff] %vm439_vm0, %v6403_v50 }
  0xba   : > { %v738_v60 = vpop.permute.xlu1 %737  ;;  %v1893_v1 = vld [vmem:[#allocation3 + $0x20] sm:$0xff] }
  0xbb   : > { %v1316_v62 = vpop.permute.xlu0 %1315  ;;  %830 = vst.msk [vmem:[#allocation3 + $0x40] sm:$0xff] %vm9314_vm2, %v738_v60  ;;  %2149 = vmatmul.mubr.f32.gmra.mrb[4].mxu0 %v1893_v1  ;;  %v1904_v1 = vld [vmem:[#allocation3 + $0x78] sm:$0xff] }
  0xbc   : > { %1409 = vst.msk [vmem:[#allocation3 + $0x30] sm:$0xff] %vm9311_vm5, %v1316_v62  ;;  %947 = vrot.lane.b32.xlu1 %v5998_v61, %s5712_s16  ;;  %5528 = vmatprep.mubr.msk.f32.mxu0 %vm439_vm0, %v1896_v5 }
  0xbd   : > { %1525 = vrot.lane.b32.xlu0 %v6023_v0, %s5717_s21 }
  0xbe   : > { %v932_v8 = vpop.permute.xlu1 %931 }
  0xbf   : > { %v1510_v11 = vpop.permute.xlu0 %1509  ;;  %1024 = vst.msk [vmem:[#allocation3 + $0x40] sm:$0xff] %vm9313_vm3, %v932_v8 }
  0xc0   : > { %1603 = vst.msk [vmem:[#allocation3 + $0x30] sm:$0xff] %vm9310_vm6, %v1510_v11  ;;  %1140 = vrot.lane.b32.xlu1 %v6240_v48, %s5714_s28  ;;  %v6434_v11 = vld [vmem:[%s5816_s15 + $0x142] sm:$0xff] }
  0xc1   : > { %1718 = vrot.lane.b32.xlu0 %v6278_v56, %s5718_s26  ;;  %1880 = vst.msk [vmem:[#allocation3 + $0x178] sm:$0xff] %vm439_vm0, %v6434_v11 }
  0xc2   : > { %v1125_v61 = vpop.permute.xlu1 %1124 }
  0xc3   : > { %v1703_v14 = vpop.permute.xlu0 %1702  ;;  %1217 = vst.msk [vmem:[#allocation3 + $0x40] sm:$0xff] %vm9312_vm4, %v1125_v61 }
  0xc4   : > { %1796 = vst.msk [vmem:[#allocation3 + $0x30] sm:$0xff] %vm9309_vm7, %v1703_v14  ;;  %1333 = vrot.lane.b32.xlu1 %v6035_v2, %s5716_s13 }
  0xc5   : > { %562 = vrot.lane.b32.xlu0 %v6208_v39, %s5713_s19 }
  0xc6   : > { %v1318_v18 = vpop.permute.xlu1 %1317 }
  0xc7   : > { %v547_v19 = vpop.permute.xlu0 %546  ;;  %1410 = vst.msk [vmem:[#allocation3 + $0x40] sm:$0xff] %vm9311_vm5, %v1318_v18  ;;  %v6445_v18 = vld [vmem:[%s5816_s15 + $0x158] sm:$0xff] }
  0xc8   : > { %638 = vst.msk [vmem:[#allocation3 + $0x50] sm:$0xff] %vm9308_vm1, %v547_v19  ;;  %1527 = vrot.lane.b32.xlu1 %v6042_v4, %s5717_s21  ;;  %v6448_v19 = vld [vmem:[%s5816_s15 + $0xf1] sm:$0xff] }
  0xc9   : > { %755 = vrot.lane.b32.xlu0 %v6015_v63, %s5715_s29  ;;  %469 = vst.msk [vmem:[#allocation3 + $0x1d0] sm:$0xff] %vm439_vm0, %v6445_v18 }
  0xca   : > { %v1512_v23 = vpop.permute.xlu1 %1511 }
  0xcb   : > { %v740_v24 = vpop.permute.xlu0 %739  ;;  %v1895_v26 = vld [vmem:[#allocation3 + $0x30] sm:$0xff]  ;;  %1604 = vst.msk [vmem:[#allocation3 + $0x40] sm:$0xff] %vm9310_vm6, %v1512_v23 }
  0xcc   : > { %831 = vst.msk [vmem:[#allocation3 + $0x50] sm:$0xff] %vm9314_vm2, %v740_v24  ;;  %2154 = vmatmul.mubr.f32.gmra.mrb[6].mxu0 %v1895_v26  ;;  %1720 = vrot.lane.b32.xlu1 %v6310_v21, %s5718_s26  ;;  %v1906_v26 = vld [vmem:[#allocation3 + $0x88] sm:$0xff] }
  0xcd   : > { %949 = vrot.lane.b32.xlu0 %v6023_v0, %s5712_s16  ;;  %5529 = vmatprep.mubr.msk.f32.mxu0 %vm439_vm0, %v1898_v27 }
  0xce   : > { %v1705_v63 = vpop.permute.xlu1 %1704 }
  0xcf   : > { %v934_v28 = vpop.permute.xlu0 %933  ;;  %1797 = vst.msk [vmem:[#allocation3 + $0x40] sm:$0xff] %vm9309_vm7, %v1705_v63  ;;  %v6466_v63 = vld [vmem:[%s5816_s15 + $0x152] sm:$0xff] }
  0xd0   : > { %1025 = vst.msk [vmem:[#allocation3 + $0x50] sm:$0xff] %vm9313_vm3, %v934_v28  ;;  %564 = vrot.lane.b32.xlu1 %v6240_v48, %s5713_s19 }
  0xd1   : > { %1142 = vrot.lane.b32.xlu0 %v6278_v56, %s5714_s28  ;;  %1881 = vst.msk [vmem:[#allocation3 + $0x188] sm:$0xff] %vm439_vm0, %v6466_v63 }
  0xd2   : > { %v549_v0 = vpop.permute.xlu1 %548 }
  0xd3   : > { %v1127_v30 = vpop.permute.xlu0 %1126  ;;  %639 = vst.msk [vmem:[#allocation3 + $0x60] sm:$0xff] %vm9308_vm1, %v549_v0  ;;  %v6473_v0 = vld [vmem:[%s5816_s15 + $0x168] sm:$0xff] }
  0xd4   : > { %1218 = vst.msk [vmem:[#allocation3 + $0x50] sm:$0xff] %vm9312_vm4, %v1127_v30  ;;  %757 = vrot.lane.b32.xlu1 %v6035_v2, %s5715_s29  ;;  %v6348_v2 = vld [vmem:[%s5816_s15 + $0xc9] sm:$0xff] }
  0xd5   : > { %1335 = vrot.lane.b32.xlu0 %v6058_v6, %s5716_s13  ;;  %470 = vst.msk [vmem:[#allocation3 + $0x1e0] sm:$0xff] %vm439_vm0, %v6473_v0 }
  0xd6   : > { %v742_v33 = vpop.permute.xlu1 %741  ;;  %v1897_v36 = vld [vmem:[#allocation3 + $0x40] sm:$0xff] }
  0xd7   : > { %v1320_v35 = vpop.permute.xlu0 %1319  ;;  %832 = vst.msk [vmem:[#allocation3 + $0x60] sm:$0xff] %vm9314_vm2, %v742_v33  ;;  %2159 = vmatmul.mubr.f32.gmra.mrb[8].mxu0 %v1897_v36  ;;  %v1908_v36 = vld [vmem:[#allocation3 + $0x98] sm:$0xff] }
  0xd8   : > { %1411 = vst.msk [vmem:[#allocation3 + $0x50] sm:$0xff] %vm9311_vm5, %v1320_v35  ;;  %951 = vrot.lane.b32.xlu1 %v6042_v4, %s5712_s16  ;;  %5530 = vmatprep.mubr.msk.f32.mxu0 %vm439_vm0, %v1900_v37 }
  0xd9   : > { %1529 = vrot.lane.b32.xlu0 %v6066_v7, %s5717_s21 }
  0xda   : > { %v936_v38 = vpop.permute.xlu1 %935 }
  0xdb   : > { %v1514_v39 = vpop.permute.xlu0 %1513  ;;  %1026 = vst.msk [vmem:[#allocation3 + $0x60] sm:$0xff] %vm9313_vm3, %v936_v38 }
  0xdc   : > { %1605 = vst.msk [vmem:[#allocation3 + $0x50] sm:$0xff] %vm9310_vm6, %v1514_v39  ;;  %1144 = vrot.lane.b32.xlu1 %v6310_v21, %s5714_s28  ;;  %v6504_v39 = vld [vmem:[%s5816_s15 + $0x15a] sm:$0xff] }
  0xdd   : > { %1722 = vrot.lane.b32.xlu0 %v6348_v2, %s5718_s26  ;;  %1882 = vst.msk [vmem:[#allocation3 + $0x198] sm:$0xff] %vm439_vm0, %v6504_v39 }
  0xde   : > { %v1129_v4 = vpop.permute.xlu1 %1128 }
  0xdf   : > { %v1707_v40 = vpop.permute.xlu0 %1706  ;;  %1219 = vst.msk [vmem:[#allocation3 + $0x60] sm:$0xff] %vm9312_vm4, %v1129_v4 }
  0xe0   : > { %1798 = vst.msk [vmem:[#allocation3 + $0x50] sm:$0xff] %vm9309_vm7, %v1707_v40  ;;  %1337 = vrot.lane.b32.xlu1 %v6079_v9, %s5716_s13 }
  0xe1   : > { %566 = vrot.lane.b32.xlu0 %v6278_v56, %s5713_s19 }
  0xe2   : > { %v1322_v42 = vpop.permute.xlu1 %1321 }
  0xe3   : > { %v551_v43 = vpop.permute.xlu0 %550  ;;  %1412 = vst.msk [vmem:[#allocation3 + $0x60] sm:$0xff] %vm9311_vm5, %v1322_v42  ;;  %v6515_v42 = vld [vmem:[%s5816_s15 + $0x170] sm:$0xff] }
  0xe4   : > { %640 = vst.msk [vmem:[#allocation3 + $0x70] sm:$0xff] %vm9308_vm1, %v551_v43  ;;  %1531 = vrot.lane.b32.xlu1 %v6086_v10, %s5717_s21  ;;  %v6518_v43 = vld [vmem:[%s5816_s15 + $0x109] sm:$0xff] }
  0xe5   : > { %759 = vrot.lane.b32.xlu0 %v6058_v6, %s5715_s29  ;;  %471 = vst.msk [vmem:[#allocation3 + $0x1f0] sm:$0xff] %vm439_vm0, %v6515_v42 }
  0xe6   : > { %v1516_v48 = vpop.permute.xlu1 %1515 }
  0xe7   : > { %v744_v51 = vpop.permute.xlu0 %743  ;;  %v1899_v52 = vld [vmem:[#allocation3 + $0x50] sm:$0xff]  ;;  %1606 = vst.msk [vmem:[#allocation3 + $0x60] sm:$0xff] %vm9310_vm6, %v1516_v48 }
  0xe8   : > { %833 = vst.msk [vmem:[#allocation3 + $0x70] sm:$0xff] %vm9314_vm2, %v744_v51  ;;  %2164 = vmatmul.mubr.f32.gmra.mrb[10].mxu0 %v1899_v52  ;;  %1724 = vrot.lane.b32.xlu1 %v6380_v46, %s5718_s26  ;;  %v1910_v52 = vld [vmem:[#allocation3 + $0xa8] sm:$0xff] }
  0xe9   : > { %953 = vrot.lane.b32.xlu0 %v6066_v7, %s5712_s16  ;;  %5531 = vmatprep.mubr.msk.f32.mxu0 %vm439_vm0, %v1902_v53 }
  0xea   : > { %v1709_v6 = vpop.permute.xlu1 %1708 }
  0xeb   : > { %v938_v54 = vpop.permute.xlu0 %937  ;;  %1799 = vst.msk [vmem:[#allocation3 + $0x60] sm:$0xff] %vm9309_vm7, %v1709_v6  ;;  %v6536_v6 = vld [vmem:[%s5816_s15 + $0x16a] sm:$0xff] }
  0xec   : > { %1027 = vst.msk [vmem:[#allocation3 + $0x70] sm:$0xff] %vm9313_vm3, %v938_v54  ;;  %568 = vrot.lane.b32.xlu1 %v6310_v21, %s5713_s19 }
  0xed   : > { %1146 = vrot.lane.b32.xlu0 %v6348_v2, %s5714_s28  ;;  %1883 = vst.msk [vmem:[#allocation3 + $0x1a8] sm:$0xff] %vm439_vm0, %v6536_v6 }
  0xee   : > { %v553_v7 = vpop.permute.xlu1 %552 }
  0xef   : > { %v1131_v55 = vpop.permute.xlu0 %1130  ;;  %641 = vst.msk [vmem:[#allocation3 + $0x80] sm:$0xff] %vm9308_vm1, %v553_v7 }
  0xf0   : > { %1220 = vst.msk [vmem:[#allocation3 + $0x70] sm:$0xff] %vm9312_vm4, %v1131_v55  ;;  %761 = vrot.lane.b32.xlu1 %v6079_v9, %s5715_s29  ;;  %v6418_v9 = vld [vmem:[%s5816_s15 + $0xe1] sm:$0xff] }
  0xf1   : > { %1339 = vrot.lane.b32.xlu0 %v6102_v12, %s5716_s13 }
  0xf2   : > { %v746_v58 = vpop.permute.xlu1 %745  ;;  %v1901_v62 = vld [vmem:[#allocation3 + $0x60] sm:$0xff] }
  0xf3   : > { %v1324_v60 = vpop.permute.xlu0 %1323  ;;  %834 = vst.msk [vmem:[#allocation3 + $0x80] sm:$0xff] %vm9314_vm2, %v746_v58  ;;  %2169 = vmatmul.mubr.f32.gmra.mrb[12].mxu0 %v1901_v62 }
  0xf4   : > { %1413 = vst.msk [vmem:[#allocation3 + $0x70] sm:$0xff] %vm9311_vm5, %v1324_v60  ;;  %955 = vrot.lane.b32.xlu1 %v6086_v10, %s5712_s16  ;;  %5532 = vmatprep.mubr.msk.f32.mxu0 %vm439_vm0, %v1904_v1  ;;  %v1912_v60 = vld [vmem:[#allocation3 + $0xb8] sm:$0xff] }
  0xf5   : > { %1533 = vrot.lane.b32.xlu0 %v6110_v13, %s5717_s21 }
  0xf6   : > { %v940_v5 = vpop.permute.xlu1 %939 }
  0xf7   : > { %v1518_v56 = vpop.permute.xlu0 %1517  ;;  %1028 = vst.msk [vmem:[#allocation3 + $0x80] sm:$0xff] %vm9313_vm3, %v940_v5  ;;  %v6569_v5 = vld [vmem:[%s5816_s15 + $0x172] sm:$0xff] }
  0xf8   : > { %1607 = vst.msk [vmem:[#allocation3 + $0x70] sm:$0xff] %vm9310_vm6, %v1518_v56  ;;  %1148 = vrot.lane.b32.xlu1 %v6380_v46, %s5714_s28 }
  0xf9   : > { %1726 = vrot.lane.b32.xlu0 %v6418_v9, %s5718_s26  ;;  %1884 = vst.msk [vmem:[#allocation3 + $0x1b8] sm:$0xff] %vm439_vm0, %v6569_v5 }
  0xfa   : > { %v1133_v10 = vpop.permute.xlu1 %1132 }
  0xfb   : > { %v1711_v8 = vpop.permute.xlu0 %1710  ;;  %1221 = vst.msk [vmem:[#allocation3 + $0x80] sm:$0xff] %vm9312_vm4, %v1133_v10 }
  0xfc   : > { %1800 = vst.msk [vmem:[#allocation3 + $0x70] sm:$0xff] %vm9309_vm7, %v1711_v8  ;;  %1341 = vrot.lane.b32.xlu1 %v6123_v15, %s5716_s13  ;;  %v6580_v8 = vld [vmem:[%s5816_s15 + $0x121] sm:$0xff] }
  0xfd   : > { %570 = vrot.lane.b32.xlu0 %v6348_v2, %s5713_s19 }
  0xfe   : > { %v1326_v61 = vpop.permute.xlu1 %1325 }
  0xff   : > { %v555_v14 = vpop.permute.xlu0 %554  ;;  %1414 = vst.msk [vmem:[#allocation3 + $0x80] sm:$0xff] %vm9311_vm5, %v1326_v61 }
 0x100   : > { %642 = vst.msk [vmem:[#allocation3 + $0x90] sm:$0xff] %vm9308_vm1, %v555_v14  ;;  %1535 = vrot.lane.b32.xlu1 %v6130_v16, %s5717_s21 }
 0x101   : > { %763 = vrot.lane.b32.xlu0 %v6102_v12, %s5715_s29 }
 0x102   : > { %v1520_v21 = vpop.permute.xlu1 %1519 }
 0x103   : > { %v748_v23 = vpop.permute.xlu0 %747  ;;  %v1903_v24 = vld [vmem:[#allocation3 + $0x70] sm:$0xff]  ;;  %1608 = vst.msk [vmem:[#allocation3 + $0x80] sm:$0xff] %vm9310_vm6, %v1520_v21  ;;  %v1914_v21 = vld [vmem:[#allocation3 + $0xc8] sm:$0xff] }
 0x104   : > { %835 = vst.msk [vmem:[#allocation3 + $0x90] sm:$0xff] %vm9314_vm2, %v748_v23  ;;  %2174 = vmatmul.mubr.f32.gmra.mrb[14].mxu0 %v1903_v24  ;;  %1728 = vrot.lane.b32.xlu1 %v6448_v19, %s5718_s26  ;;  %v6596_v24 = vld [vmem:[%s5816_s15 + $0x182] sm:$0xff] }
 0x105   : > { %957 = vrot.lane.b32.xlu0 %v6110_v13, %s5712_s16  ;;  %5533 = vmatprep.mubr.msk.f32.mxu0 %vm439_vm0, %v1906_v26  ;;  %1885 = vst.msk [vmem:[#allocation3 + $0x1c8] sm:$0xff] %vm439_vm0, %v6596_v24 }
 0x106   : > { %v1713_v12 = vpop.permute.xlu1 %1712 }
 0x107   : > { %v942_v27 = vpop.permute.xlu0 %941  ;;  %1801 = vst.msk [vmem:[#allocation3 + $0x80] sm:$0xff] %vm9309_vm7, %v1713_v12 }
 0x108   : > { %1029 = vst.msk [vmem:[#allocation3 + $0x90] sm:$0xff] %vm9313_vm3, %v942_v27  ;;  %572 = vrot.lane.b32.xlu1 %v6380_v46, %s5713_s19 }
 0x109   : > { %1150 = vrot.lane.b32.xlu0 %v6418_v9, %s5714_s28 }
 0x10a   : > { %v557_v13 = vpop.permute.xlu1 %556 }
 0x10b   : > { %v1135_v28 = vpop.permute.xlu0 %1134  ;;  %643 = vst.msk [vmem:[#allocation3 + $0xa0] sm:$0xff] %vm9308_vm1, %v557_v13 }
 0x10c   : > { %1222 = vst.msk [vmem:[#allocation3 + $0x90] sm:$0xff] %vm9312_vm4, %v1135_v28  ;;  %765 = vrot.lane.b32.xlu1 %v6123_v15, %s5715_s29  ;;  %v6488_v15 = vld [vmem:[%s5816_s15 + $0xf9] sm:$0xff]  ;;  %v1916_v28 = vld [vmem:[#allocation3 + $0xd8] sm:$0xff] }
 0x10d   : > { %1343 = vrot.lane.b32.xlu0 %v6151_v22, %s5716_s13 }
 0x10e   : > { %v750_v30 = vpop.permute.xlu1 %749  ;;  %v1905_v35 = vld [vmem:[#allocation3 + $0x80] sm:$0xff] }
 0x10f   : > { %v1328_v33 = vpop.permute.xlu0 %1327  ;;  %836 = vst.msk [vmem:[#allocation3 + $0xa0] sm:$0xff] %vm9314_vm2, %v750_v30  ;;  %2179 = vmatmul.mubr.f32.gmra.mrb[16].mxu0 %v1905_v35 }
 0x110   : > { %1415 = vst.msk [vmem:[#allocation3 + $0x90] sm:$0xff] %vm9311_vm5, %v1328_v33  ;;  %959 = vrot.lane.b32.xlu1 %v6130_v16, %s5712_s16  ;;  %5534 = vmatprep.mubr.msk.f32.mxu0 %vm439_vm0, %v1908_v36 }
 0x111   : > { %1537 = vrot.lane.b32.xlu0 %v6163_v25, %s5717_s21 }
 0x112   : > { %v944_v37 = vpop.permute.xlu1 %943 }
 0x113   : > { %v1522_v2 = vpop.permute.xlu0 %1521  ;;  %1030 = vst.msk [vmem:[#allocation3 + $0xa0] sm:$0xff] %vm9313_vm3, %v944_v37 }
 0x114   : > { %1609 = vst.msk [vmem:[#allocation3 + $0x90] sm:$0xff] %vm9310_vm6, %v1522_v2  ;;  %1152 = vrot.lane.b32.xlu1 %v6448_v19, %s5714_s28  ;;  %v6640_v2 = vld [vmem:[%s5816_s15 + $0x139] sm:$0xff] }
 0x115   : > { %1730 = vrot.lane.b32.xlu0 %v6488_v15, %s5718_s26 }
 0x116   : > { %v1137_v16 = vpop.permute.xlu1 %1136 }
 0x117   : > { %v1715_v38 = vpop.permute.xlu0 %1714  ;;  %1223 = vst.msk [vmem:[#allocation3 + $0xa0] sm:$0xff] %vm9312_vm4, %v1137_v16 }
 0x118   : > { %1802 = vst.msk [vmem:[#allocation3 + $0x90] sm:$0xff] %vm9309_vm7, %v1715_v38  ;;  %1345 = vrot.lane.b32.xlu1 %v6183_v31, %s5716_s13 }
 0x119   : > { %574 = vrot.lane.b32.xlu0 %v6418_v9, %s5713_s19 }
 0x11a   : > { %v1330_v4 = vpop.permute.xlu1 %1329 }
 0x11b   : > { %v559_v40 = vpop.permute.xlu0 %558  ;;  %1416 = vst.msk [vmem:[#allocation3 + $0xa0] sm:$0xff] %vm9311_vm5, %v1330_v4 }
 0x11c   : > { %644 = vst.msk [vmem:[#allocation3 + $0xb0] sm:$0xff] %vm9308_vm1, %v559_v40  ;;  %1539 = vrot.lane.b32.xlu1 %v6193_v34, %s5717_s21  ;;  %v1918_v40 = vld [vmem:[#allocation3 + $0xe8] sm:$0xff] }
 0x11d   : > { %767 = vrot.lane.b32.xlu0 %v6151_v22, %s5715_s29 }
 0x11e   : > { %v1524_v46 = vpop.permute.xlu1 %1523 }
 0x11f   : > { %v752_v48 = vpop.permute.xlu0 %751  ;;  %v1907_v51 = vld [vmem:[#allocation3 + $0x90] sm:$0xff]  ;;  %1610 = vst.msk [vmem:[#allocation3 + $0xa0] sm:$0xff] %vm9310_vm6, %v1524_v46 }
 0x120   : > { %837 = vst.msk [vmem:[#allocation3 + $0xb0] sm:$0xff] %vm9314_vm2, %v752_v48  ;;  %2184 = vmatmul.mubr.f32.gmra.mrb[18].mxu0 %v1907_v51  ;;  %1732 = vrot.lane.b32.xlu1 %v6518_v43, %s5718_s26 }
 0x121   : > { %961 = vrot.lane.b32.xlu0 %v6163_v25, %s5712_s16  ;;  %5535 = vmatprep.mubr.msk.f32.mxu0 %vm439_vm0, %v1910_v52 }
 0x122   : > { %v1717_v22 = vpop.permute.xlu1 %1716 }
 0x123   : > { %v946_v53 = vpop.permute.xlu0 %945  ;;  %1803 = vst.msk [vmem:[#allocation3 + $0xa0] sm:$0xff] %vm9309_vm7, %v1717_v22  ;;  %v1920_v22 = vld [vmem:[#allocation3 + $0xf8] sm:$0xff] }
 0x124   : > { %1031 = vst.msk [vmem:[#allocation3 + $0xb0] sm:$0xff] %vm9313_vm3, %v946_v53  ;;  %576 = vrot.lane.b32.xlu1 %v6448_v19, %s5713_s19  ;;  %v6668_v53 = vld [vmem:[%s5816_s15 + $0x141] sm:$0xff] }
 0x125   : > { %1154 = vrot.lane.b32.xlu0 %v6488_v15, %s5714_s28 }
 0x126   : > { %v561_v25 = vpop.permute.xlu1 %560 }
 0x127   : > { %v1139_v54 = vpop.permute.xlu0 %1138  ;;  %645 = vst.msk [vmem:[#allocation3 + $0xc0] sm:$0xff] %vm9308_vm1, %v561_v25 }
 0x128   : > { %1224 = vst.msk [vmem:[#allocation3 + $0xb0] sm:$0xff] %vm9312_vm4, %v1139_v54  ;;  %769 = vrot.lane.b32.xlu1 %v6183_v31, %s5715_s29  ;;  %v6553_v31 = vld [vmem:[%s5816_s15 + $0x111] sm:$0xff] }
 0x129   : > { %1347 = vrot.lane.b32.xlu0 %v6220_v44, %s5716_s13 }
 0x12a   : > { %v754_v7 = vpop.permute.xlu1 %753  ;;  %v1909_v58 = vld [vmem:[#allocation3 + $0xa0] sm:$0xff] }
 0x12b   : > { %v1332_v55 = vpop.permute.xlu0 %1331  ;;  %838 = vst.msk [vmem:[#allocation3 + $0xc0] sm:$0xff] %vm9314_vm2, %v754_v7  ;;  %2189 = vmatmul.mubr.f32.gmra.mrb[20].mxu0 %v1909_v58  ;;  %v6690_v58 = vld [vmem:[%s5816_s15 + $0x151] sm:$0xff] }
 0x12c   : > { %1417 = vst.msk [vmem:[#allocation3 + $0xb0] sm:$0xff] %vm9311_vm5, %v1332_v55  ;;  %963 = vrot.lane.b32.xlu1 %v6193_v34, %s5712_s16  ;;  %5536 = vmatprep.mubr.msk.f32.mxu0 %vm439_vm0, %v1912_v60 }
 0x12d   : > { %1541 = vrot.lane.b32.xlu0 %v6231_v47, %s5717_s21 }
 0x12e   : > { %v948_v62 = vpop.permute.xlu1 %947 }
 0x12f   : > { %v1526_v1 = vpop.permute.xlu0 %1525  ;;  %1032 = vst.msk [vmem:[#allocation3 + $0xc0] sm:$0xff] %vm9313_vm3, %v948_v62 }
 0x130   : > { %1611 = vst.msk [vmem:[#allocation3 + $0xb0] sm:$0xff] %vm9310_vm6, %v1526_v1  ;;  %1156 = vrot.lane.b32.xlu1 %v6518_v43, %s5714_s28  ;;  %v1922_v1 = vld [vmem:[#allocation3 + $0x108] sm:$0xff] }
 0x131   : > { %1734 = vrot.lane.b32.xlu0 %v6553_v31, %s5718_s26 }
 0x132   : > { %v1141_v34 = vpop.permute.xlu1 %1140 }
 0x133   : > { %v1719_v9 = vpop.permute.xlu0 %1718  ;;  %1225 = vst.msk [vmem:[#allocation3 + $0xc0] sm:$0xff] %vm9312_vm4, %v1141_v34 }
 0x134   : > { %1804 = vst.msk [vmem:[#allocation3 + $0xb0] sm:$0xff] %vm9309_vm7, %v1719_v9  ;;  %1349 = vrot.lane.b32.xlu1 %v6252_v57, %s5716_s13 }
 0x135   : > { %578 = vrot.lane.b32.xlu0 %v6488_v15, %s5713_s19 }
 0x136   : > { %v1334_v56 = vpop.permute.xlu1 %1333 }
 0x137   : > { %v563_v10 = vpop.permute.xlu0 %562  ;;  %1418 = vst.msk [vmem:[#allocation3 + $0xc0] sm:$0xff] %vm9311_vm5, %v1334_v56 }
 0x138   : > { %646 = vst.msk [vmem:[#allocation3 + $0xd0] sm:$0xff] %vm9308_vm1, %v563_v10  ;;  %1543 = vrot.lane.b32.xlu1 %v6263_v59, %s5717_s21 }
 0x139   : > { %771 = vrot.lane.b32.xlu0 %v6220_v44, %s5715_s29 }
 0x13a   : > { %v1528_v61 = vpop.permute.xlu1 %1527 }
 0x13b   : > { %v756_v14 = vpop.permute.xlu0 %755  ;;  %v1911_v19 = vld [vmem:[#allocation3 + $0xb0] sm:$0xff]  ;;  %1612 = vst.msk [vmem:[#allocation3 + $0xc0] sm:$0xff] %vm9310_vm6, %v1528_v61 }
 0x13c   : > { %839 = vst.msk [vmem:[#allocation3 + $0xd0] sm:$0xff] %vm9314_vm2, %v756_v14  ;;  %2194 = vmatmul.mubr.f32.gmra.mrb[22].mxu0 %v1911_v19  ;;  %1736 = vrot.lane.b32.xlu1 %v6580_v8, %s5718_s26  ;;  %v1924_v19 = vld [vmem:[#allocation3 + $0x118] sm:$0xff] }
 0x13d   : > { %965 = vrot.lane.b32.xlu0 %v6231_v47, %s5712_s16  ;;  %5537 = vmatprep.mubr.msk.f32.mxu0 %vm439_vm0, %v1914_v21  ;;  %v6720_v21 = vld [vmem:[%s5816_s15 + $0x159] sm:$0xff] }
 0x13e   : > { %v1721_v44 = vpop.permute.xlu1 %1720 }
 0x13f   : > { %v950_v23 = vpop.permute.xlu0 %949  ;;  %1805 = vst.msk [vmem:[#allocation3 + $0xc0] sm:$0xff] %vm9309_vm7, %v1721_v44 }
 0x140   : > { %1033 = vst.msk [vmem:[#allocation3 + $0xd0] sm:$0xff] %vm9313_vm3, %v950_v23  ;;  %580 = vrot.lane.b32.xlu1 %v6518_v43, %s5713_s19 }
 0x141   : > { %1158 = vrot.lane.b32.xlu0 %v6553_v31, %s5714_s28 }
 0x142   : > { %v565_v47 = vpop.permute.xlu1 %564 }
 0x143   : > { %v1143_v26 = vpop.permute.xlu0 %1142  ;;  %647 = vst.msk [vmem:[#allocation3 + $0xe0] sm:$0xff] %vm9308_vm1, %v565_v47 }
 0x144   : > { %1226 = vst.msk [vmem:[#allocation3 + $0xd0] sm:$0xff] %vm9312_vm4, %v1143_v26  ;;  %773 = vrot.lane.b32.xlu1 %v6252_v57, %s5715_s29  ;;  %v6613_v57 = vld [vmem:[%s5816_s15 + $0x129] sm:$0xff] }
 0x145   : > { %1351 = vrot.lane.b32.xlu0 %v6290_v17, %s5716_s13 }
 0x146   : > { %v758_v12 = vpop.permute.xlu1 %757  ;;  %v1913_v13 = vld [vmem:[#allocation3 + $0xc0] sm:$0xff] }
 0x147   : > { %v1336_v27 = vpop.permute.xlu0 %1335  ;;  %840 = vst.msk [vmem:[#allocation3 + $0xe0] sm:$0xff] %vm9314_vm2, %v758_v12  ;;  %2199 = vmatmul.mubr.f32.gmra.mrb[24].mxu0 %v1913_v13  ;;  %v6744_v13 = vld [vmem:[%s5816_s15 + $0x169] sm:$0xff] }
 0x148   : > { %1419 = vst.msk [vmem:[#allocation3 + $0xd0] sm:$0xff] %vm9311_vm5, %v1336_v27  ;;  %967 = vrot.lane.b32.xlu1 %v6263_v59, %s5712_s16  ;;  %5538 = vmatprep.mubr.msk.f32.mxu0 %vm439_vm0, %v1916_v28  ;;  %v6623_v59 = vld [vmem:[%s5816_s15 + $0x18a] sm:$0xff] }
 0x149   : > { %1545 = vrot.lane.b32.xlu0 %v6301_v20, %s5717_s21  ;;  %1886 = vst.msk [vmem:[#allocation3 + $0x1d8] sm:$0xff] %vm439_vm0, %v6623_v59 }
 0x14a   : > { %v952_v30 = vpop.permute.xlu1 %951 }
 0x14b   : > { %v1530_v33 = vpop.permute.xlu0 %1529  ;;  %1034 = vst.msk [vmem:[#allocation3 + $0xe0] sm:$0xff] %vm9313_vm3, %v952_v30 }
 0x14c   : > { %1613 = vst.msk [vmem:[#allocation3 + $0xd0] sm:$0xff] %vm9310_vm6, %v1530_v33  ;;  %1160 = vrot.lane.b32.xlu1 %v6580_v8, %s5714_s28  ;;  %v1926_v33 = vld [vmem:[#allocation3 + $0x128] sm:$0xff] }
 0x14d   : > { %1738 = vrot.lane.b32.xlu0 %v6613_v57, %s5718_s26 }
 0x14e   : > { %v1145_v35 = vpop.permute.xlu1 %1144 }
 0x14f   : > { %v1723_v36 = vpop.permute.xlu0 %1722  ;;  %1227 = vst.msk [vmem:[#allocation3 + $0xe0] sm:$0xff] %vm9312_vm4, %v1145_v35 }
 0x150   : > { %1806 = vst.msk [vmem:[#allocation3 + $0xd0] sm:$0xff] %vm9309_vm7, %v1723_v36  ;;  %1353 = vrot.lane.b32.xlu1 %v6322_v29, %s5716_s13 }
 0x151   : > { %582 = vrot.lane.b32.xlu0 %v6553_v31, %s5713_s19 }
 0x152   : > { %v1338_v15 = vpop.permute.xlu1 %1337 }
 0x153   : > { %v567_v37 = vpop.permute.xlu0 %566  ;;  %1420 = vst.msk [vmem:[#allocation3 + $0xe0] sm:$0xff] %vm9311_vm5, %v1338_v15 }
 0x154   : > { %648 = vst.msk [vmem:[#allocation3 + $0xf0] sm:$0xff] %vm9308_vm1, %v567_v37  ;;  %1547 = vrot.lane.b32.xlu1 %v6333_v32, %s5717_s21 }
 0x155   : > { %775 = vrot.lane.b32.xlu0 %v6290_v17, %s5715_s29 }
 0x156   : > { %v1532_v16 = vpop.permute.xlu1 %1531 }
 0x157   : > { %v760_v38 = vpop.permute.xlu0 %759  ;;  %v1915_v4 = vld [vmem:[#allocation3 + $0xd0] sm:$0xff]  ;;  %1614 = vst.msk [vmem:[#allocation3 + $0xe0] sm:$0xff] %vm9310_vm6, %v1532_v16 }
 0x158   : > { %841 = vst.msk [vmem:[#allocation3 + $0xf0] sm:$0xff] %vm9314_vm2, %v760_v38  ;;  %2204 = vmatmul.mubr.f32.gmra.mrb[26].mxu0 %v1915_v4  ;;  %1740 = vrot.lane.b32.xlu1 %v6640_v2, %s5718_s26  ;;  %v1928_v4 = vld [vmem:[#allocation3 + $0x138] sm:$0xff] }
 0x159   : > { %969 = vrot.lane.b32.xlu0 %v6301_v20, %s5712_s16  ;;  %5539 = vmatprep.mubr.msk.f32.mxu0 %vm439_vm0, %v1918_v40  ;;  %v6774_v40 = vld [vmem:[%s5816_s15 + $0x171] sm:$0xff] }
 0x15a   : > { %v1725_v17 = vpop.permute.xlu1 %1724 }
 0x15b   : > { %v954_v43 = vpop.permute.xlu0 %953  ;;  %1807 = vst.msk [vmem:[#allocation3 + $0xe0] sm:$0xff] %vm9309_vm7, %v1725_v17 }
 0x15c   : > { %1035 = vst.msk [vmem:[#allocation3 + $0xf0] sm:$0xff] %vm9313_vm3, %v954_v43  ;;  %584 = vrot.lane.b32.xlu1 %v6580_v8, %s5713_s19 }
 0x15d   : > { %1162 = vrot.lane.b32.xlu0 %v6613_v57, %s5714_s28 }
 0x15e   : > { %v569_v46 = vpop.permute.xlu1 %568 }
 0x15f   : > { %v1147_v48 = vpop.permute.xlu0 %1146  ;;  %649 = vst.msk [vmem:[#allocation3 + $0x100] sm:$0xff] %vm9308_vm1, %v569_v46 }
 0x160   : > { %1228 = vst.msk [vmem:[#allocation3 + $0xf0] sm:$0xff] %vm9312_vm4, %v1147_v48  ;;  %777 = vrot.lane.b32.xlu1 %v6322_v29, %s5715_s29 }
 0x161   : > { %1355 = vrot.lane.b32.xlu0 %v6360_v41, %s5716_s13 }
 0x162   : > { %v762_v20 = vpop.permute.xlu1 %761  ;;  %v1917_v52 = vld [vmem:[#allocation3 + $0xe0] sm:$0xff] }
 0x163   : > { %v1340_v51 = vpop.permute.xlu0 %1339  ;;  %842 = vst.msk [vmem:[#allocation3 + $0x100] sm:$0xff] %vm9314_vm2, %v762_v20  ;;  %2209 = vmatmul.mubr.f32.gmra.mrb[28].mxu0 %v1917_v52  ;;  %v5456_v20 = vld [vmem:[%s5816_s15 + $0x180] sm:$0xff] }
 0x164   : > { %1421 = vst.msk [vmem:[#allocation3 + $0xf0] sm:$0xff] %vm9311_vm5, %v1340_v51  ;;  %971 = vrot.lane.b32.xlu1 %v6333_v32, %s5712_s16  ;;  %5540 = vmatprep.mubr.msk.f32.mxu0 %vm439_vm0, %v1920_v22  ;;  %v5488_v22 = vld [vmem:[%s5816_s15 + $0x181] sm:$0xff] }
 0x165   : > { %1549 = vrot.lane.b32.xlu0 %v6371_v45, %s5717_s21 }
 0x166   : > { %v956_v29 = vpop.permute.xlu1 %955 }
 0x167   : > { %v1534_v25 = vpop.permute.xlu0 %1533  ;;  %1036 = vst.msk [vmem:[#allocation3 + $0x100] sm:$0xff] %vm9313_vm3, %v956_v29 }
 0x168   : > { %1615 = vst.msk [vmem:[#allocation3 + $0xf0] sm:$0xff] %vm9310_vm6, %v1534_v25  ;;  %1164 = vrot.lane.b32.xlu1 %v6640_v2, %s5714_s28 }
 0x169   : > { %1742 = vrot.lane.b32.xlu0 %v6668_v53, %s5718_s26 }
 0x16a   : > { %v1149_v32 = vpop.permute.xlu1 %1148 }
 0x16b   : > { %v1727_v54 = vpop.permute.xlu0 %1726  ;;  %1229 = vst.msk [vmem:[#allocation3 + $0x100] sm:$0xff] %vm9312_vm4, %v1149_v32  ;;  %v1930_v32 = vld [vmem:[#allocation3 + $0x148] sm:$0xff] }
 0x16c   : > { %1808 = vst.msk [vmem:[#allocation3 + $0xf0] sm:$0xff] %vm9309_vm7, %v1727_v54  ;;  %1357 = vrot.lane.b32.xlu1 %v6392_v49, %s5716_s13 }
 0x16d   : > { %586 = vrot.lane.b32.xlu0 %v6613_v57, %s5713_s19 }
 0x16e   : > { %v1342_v7 = vpop.permute.xlu1 %1341 }
 0x16f   : > { %v571_v55 = vpop.permute.xlu0 %570  ;;  %1422 = vst.msk [vmem:[#allocation3 + $0x100] sm:$0xff] %vm9311_vm5, %v1342_v7 }
 0x170   : > { %650 = vst.msk [vmem:[#allocation3 + $0x110] sm:$0xff] %vm9308_vm1, %v571_v55  ;;  %1551 = vrot.lane.b32.xlu1 %v6403_v50, %s5717_s21 }
 0x171   : > { %779 = vrot.lane.b32.xlu0 %v6360_v41, %s5715_s29 }
 0x172   : > { %v1536_v60 = vpop.permute.xlu1 %1535  ;;  %v6694_v34 = vpop.f32.mrb[0].mxu0 }
 0x173   : > { %v764_v31 = vpop.permute.xlu0 %763  ;;  %v1919_v62 = vld [vmem:[#allocation3 + $0xf0] sm:$0xff]  ;;  %1616 = vst.msk [vmem:[#allocation3 + $0x100] sm:$0xff] %vm9310_vm6, %v1536_v60  ;;  %v2142_v9 = vpop.f32.mrb[1].mxu0 }
 0x174   : > { %843 = vst.msk [vmem:[#allocation3 + $0x110] sm:$0xff] %vm9314_vm2, %v764_v31  ;;  %2214 = vmatmul.mubr.f32.gmra.mrb[30].mxu0 %v1919_v62  ;;  %1744 = vrot.lane.b32.xlu1 %v6690_v58, %s5718_s26  ;;  %v1932_v9 = vld [vmem:[#allocation3 + $0x158] sm:$0xff] }
 0x175   : > { %973 = vrot.lane.b32.xlu0 %v6371_v45, %s5712_s16  ;;  %5541 = vmatprep.mubr.msk.f32.mxu0 %vm439_vm0, %v1922_v1 }
 0x176   : > { %v1729_v41 = vpop.permute.xlu1 %1728 }
 0x177   : > { %v958_v56 = vpop.permute.xlu0 %957  ;;  %1809 = vst.msk [vmem:[#allocation3 + $0x100] sm:$0xff] %vm9309_vm7, %v1729_v41  ;;  %v5489_v41 = vld [vmem:[%s5816_s15 + $0x189] sm:$0xff] }
 0x178   : > { %1037 = vst.msk [vmem:[#allocation3 + $0x110] sm:$0xff] %vm9313_vm3, %v958_v56  ;;  %588 = vrot.lane.b32.xlu1 %v6640_v2, %s5713_s19 }
 0x179   : > { %1166 = vrot.lane.b32.xlu0 %v6668_v53, %s5714_s28 }
 0x17a   : > { %v573_v10 = vpop.permute.xlu1 %572 }
 0x17b   : > { %v1151_v8 = vpop.permute.xlu0 %1150  ;;  %651 = vst.msk [vmem:[#allocation3 + $0x120] sm:$0xff] %vm9308_vm1, %v573_v10  ;;  %v5522_v10 = vld [vmem:[%s5816_s15 + $0x19a] sm:$0xff] }
 0x17c   : > { %1230 = vst.msk [vmem:[#allocation3 + $0x110] sm:$0xff] %vm9312_vm4, %v1151_v8  ;;  %781 = vrot.lane.b32.xlu1 %v6392_v49, %s5715_s29 }
 0x17d   : > { %1359 = vrot.lane.b32.xlu0 %v6434_v11, %s5716_s13  ;;  %1887 = vst.msk [vmem:[#allocation3 + $0x1e8] sm:$0xff] %vm439_vm0, %v5522_v10 }
 0x17e   : > { %v766_v45 = vpop.permute.xlu1 %765  ;;  %v1921_v14 = vld [vmem:[#allocation3 + $0x100] sm:$0xff] }
 0x17f   : > { %v1344_v61 = vpop.permute.xlu0 %1343  ;;  %844 = vst.msk [vmem:[#allocation3 + $0x120] sm:$0xff] %vm9314_vm2, %v766_v45  ;;  %2219 = vmatmul.mubr.f32.gmra.mrb[32].mxu0 %v1921_v14 }
 0x180   : > { %1423 = vst.msk [vmem:[#allocation3 + $0x110] sm:$0xff] %vm9311_vm5, %v1344_v61  ;;  %975 = vrot.lane.b32.xlu1 %v6403_v50, %s5712_s16  ;;  %5542 = vmatprep.mubr.msk.f32.mxu0 %vm439_vm0, %v1924_v19  ;;  %v5458_v19 = vld [vmem:[%s5816_s15 + $0x198] sm:$0xff] }
 0x181   : > { %1553 = vrot.lane.b32.xlu0 %v6445_v18, %s5717_s21 }
 0x182   : > { %v960_v49 = vpop.permute.xlu1 %959 }
 0x183   : > { %v1538_v44 = vpop.permute.xlu0 %1537  ;;  %1038 = vst.msk [vmem:[#allocation3 + $0x120] sm:$0xff] %vm9313_vm3, %v960_v49  ;;  %v6725_v23 = vpop.f32.mrb[2].mxu0 }
 0x184   : > { %1617 = vst.msk [vmem:[#allocation3 + $0x110] sm:$0xff] %vm9310_vm6, %v1538_v44  ;;  %v2147_v47 = vpop.f32.mrb[3].mxu0  ;;  %1168 = vrot.lane.b32.xlu1 %v6690_v58, %s5714_s28  ;;  %v5523_v44 = vld [vmem:[%s5816_s15 + $0x1a2] sm:$0xff] }
 0x185   : > { %1746 = vrot.lane.b32.xlu0 %v6720_v21, %s5718_s26  ;;  %v5719_v47 = vmov 0.0   ;;  %1888 = vst.msk [vmem:[#allocation3 + $0x1f8] sm:$0xff] %vm439_vm0, %v5523_v44 }
 0x186   : > { %v1153_v50 = vpop.permute.xlu1 %1152  ;;  %2804 = vst.msk [vmem:[#allocation2 + $0x198] sm:$0xff] %vm439_vm0, %v5719_v47  ;;  %2805 = vst.msk [vmem:[#allocation2 + $0x1a0] sm:$0xff] %vm439_vm0, %v5719_v47  ;;  %5610 = vmatprep.mubr.msk.f32.mxu1 %vm5720_vm9, %v5719_v47 }
 0x187   : > { %v1731_v26 = vpop.permute.xlu0 %1730  ;;  %1231 = vst.msk [vmem:[#allocation3 + $0x120] sm:$0xff] %vm9312_vm4, %v1153_v50 }
 0x188   : > { %1810 = vst.msk [vmem:[#allocation3 + $0x110] sm:$0xff] %vm9309_vm7, %v1731_v26  ;;  %1361 = vrot.lane.b32.xlu1 %v6466_v63, %s5716_s13 }
 0x189   : > { %590 = vrot.lane.b32.xlu0 %v6668_v53, %s5713_s19  ;;  %2799 = vst.msk [vmem:[#allocation2] sm:$0xff] %vm439_vm0, %v5719_v47  ;;  %2800 = vst.msk [vmem:[#allocation2 + $0x8] sm:$0xff] %vm439_vm0, %v5719_v47 }
 0x18a   : > { %v1346_v12 = vpop.permute.xlu1 %1345  ;;  %2806 = vst.msk [vmem:[#allocation2 + $0x1a8] sm:$0x3] %vm2801_vm8, %v5719_v47  ;;  %2802 = vst.msk [vmem:[#allocation2 + $0x10] sm:$0x3] %vm2801_vm8, %v5719_v47 }
 0x18b   : > { %v575_v27 = vpop.permute.xlu0 %574  ;;  %1424 = vst.msk [vmem:[#allocation3 + $0x120] sm:$0xff] %vm9311_vm5, %v1346_v12 }
 0x18c   : > { %652 = vst.msk [vmem:[#allocation3 + $0x130] sm:$0xff] %vm9308_vm1, %v575_v27  ;;  %1555 = vrot.lane.b32.xlu1 %v6473_v0, %s5717_s21 }
 0x18d   : > { %783 = vrot.lane.b32.xlu0 %v6434_v11, %s5715_s29  ;;  %2809 = vst.msk [vmem:[#allocation2 + $0x18] sm:$0x1] %vm2808_vm11, %v5719_v47  ;;  %2810 = vst.msk [vmem:[#allocation2 + $0x30] sm:$0x1] %vm2808_vm11, %v5719_v47 }
 0x18e   : > { %v1540_v28 = vpop.permute.xlu1 %1539  ;;  %v6748_v35 = vpop.f32.mrb[4].mxu0  ;;  %2811 = vst.msk [vmem:[#allocation2 + $0x48] sm:$0x1] %vm2808_vm11, %v5719_v47  ;;  %2812 = vst.msk [vmem:[#allocation2 + $0x60] sm:$0x1] %vm2808_vm11, %v5719_v47 }
 0x18f   : > { %v768_v57 = vpop.permute.xlu0 %767  ;;  %v1923_v30 = vld [vmem:[#allocation3 + $0x110] sm:$0xff]  ;;  %1618 = vst.msk [vmem:[#allocation3 + $0x120] sm:$0xff] %vm9310_vm6, %v1540_v28  ;;  %v2152_v36 = vpop.f32.mrb[5].mxu0 }
 0x190   : > { %845 = vst.msk [vmem:[#allocation3 + $0x130] sm:$0xff] %vm9314_vm2, %v768_v57  ;;  %2224 = vmatmul.mubr.f32.gmra.mrb[34].mxu0 %v1923_v30  ;;  %1748 = vrot.lane.b32.xlu1 %v6744_v13, %s5718_s26  ;;  %v6865_v30 = vld [vmem:[#allocation3 + $0x1e8] sm:$0xff]  ;;  %v5459_v36 = vld [vmem:[%s5816_s15 + $0x1a0] sm:$0xff] }
 0x191   : > { %977 = vrot.lane.b32.xlu0 %v6445_v18, %s5712_s16  ;;  %5543 = vmatprep.mubr.msk.f32.mxu0 %vm439_vm0, %v1926_v33  ;;  %v4312_v33 = vld [vmem:[#allocation2 + $0x19a] sm:$0xff]  ;;  %2813 = vst.msk [vmem:[#allocation2 + $0x78] sm:$0x1] %vm2808_vm11, %v5719_v47  ;;  %2814 = vst.msk [vmem:[#allocation2 + $0x90] sm:$0x1] %vm2808_vm11, %v5719_v47 }
 0x192   : > { %v1733_v11 = vpop.permute.xlu1 %1732  ;;  %4344 = vst.msk [vmem:[#allocation3 + $0x1e8] sm:$0xff] %vm439_vm0, %v4312_v33 }
 0x193   : > { %v962_v15 = vpop.permute.xlu0 %961  ;;  %1811 = vst.msk [vmem:[#allocation3 + $0x120] sm:$0xff] %vm9309_vm7, %v1733_v11  ;;  %v5491_v11 = vld [vmem:[%s5816_s15 + $0x1a1] sm:$0xff] }
 0x194   : > { %1039 = vst.msk [vmem:[#allocation3 + $0x130] sm:$0xff] %vm9313_vm3, %v962_v15  ;;  %592 = vrot.lane.b32.xlu1 %v6690_v58, %s5713_s19 }
 0x195   : > { %1170 = vrot.lane.b32.xlu0 %v6720_v21, %s5714_s28  ;;  %2815 = vst.msk [vmem:[#allocation2 + $0xa8] sm:$0x1] %vm2808_vm11, %v5719_v47  ;;  %2816 = vst.msk [vmem:[#allocation2 + $0xc0] sm:$0x1] %vm2808_vm11, %v5719_v47 }
 0x196   : > { %v577_v37 = vpop.permute.xlu1 %576  ;;  %2817 = vst.msk [vmem:[#allocation2 + $0xd8] sm:$0x1] %vm2808_vm11, %v5719_v47  ;;  %2818 = vst.msk [vmem:[#allocation2 + $0xf0] sm:$0x1] %vm2808_vm11, %v5719_v47 }
 0x197   : > { %v1155_v2 = vpop.permute.xlu0 %1154  ;;  %653 = vst.msk [vmem:[#allocation3 + $0x140] sm:$0xff] %vm9308_vm1, %v577_v37 }
 0x198   : > { %1232 = vst.msk [vmem:[#allocation3 + $0x130] sm:$0xff] %vm9312_vm4, %v1155_v2  ;;  %785 = vrot.lane.b32.xlu1 %v6466_v63, %s5715_s29 }
 0x199   : > { %1363 = vrot.lane.b32.xlu0 %v6504_v39, %s5716_s13  ;;  %2819 = vst.msk [vmem:[#allocation2 + $0x108] sm:$0x1] %vm2808_vm11, %v5719_v47  ;;  %2820 = vst.msk [vmem:[#allocation2 + $0x120] sm:$0x1] %vm2808_vm11, %v5719_v47 }
 0x19a   : > { %v770_v18 = vpop.permute.xlu1 %769  ;;  %v1925_v38 = vld [vmem:[#allocation3 + $0x120] sm:$0xff]  ;;  %2821 = vst.msk [vmem:[#allocation2 + $0x138] sm:$0x1] %vm2808_vm11, %v5719_v47  ;;  %2822 = vst.msk [vmem:[#allocation2 + $0x150] sm:$0x1] %vm2808_vm11, %v5719_v47 }
 0x19b   : > { %v1348_v16 = vpop.permute.xlu0 %1347  ;;  %846 = vst.msk [vmem:[#allocation3 + $0x140] sm:$0xff] %vm9314_vm2, %v770_v18  ;;  %2229 = vmatmul.mubr.f32.gmra.mrb[36].mxu0 %v1925_v38  ;;  %v6882_v38 = vld [vmem:[#allocation3 + $0x1f8] sm:$0xff] }
 0x19c   : > { %1425 = vst.msk [vmem:[#allocation3 + $0x130] sm:$0xff] %vm9311_vm5, %v1348_v16  ;;  %979 = vrot.lane.b32.xlu1 %v6473_v0, %s5712_s16  ;;  %5544 = vmatprep.mubr.msk.f32.mxu0 %vm439_vm0, %v1928_v4  ;;  %v4313_v4 = vld [vmem:[#allocation2 + $0x1a2] sm:$0xff] }
 0x19d   : > { %1557 = vrot.lane.b32.xlu0 %v6515_v42, %s5717_s21  ;;  %4345 = vst.msk [vmem:[#allocation3 + $0x1f8] sm:$0xff] %vm439_vm0, %v4313_v4  ;;  %v1946_v4 = vld [vmem:[#allocation3 + $0x1c8] sm:$0xff] }
 0x19e   : > { %v964_v63 = vpop.permute.xlu1 %963  ;;  %2823 = vst.msk [vmem:[#allocation2 + $0x168] sm:$0x1] %vm2808_vm11, %v5719_v47  ;;  %2824 = vst.msk [vmem:[#allocation2 + $0x180] sm:$0x1] %vm2808_vm11, %v5719_v47 }
 0x19f   : > { %v1542_v17 = vpop.permute.xlu0 %1541  ;;  %1040 = vst.msk [vmem:[#allocation3 + $0x140] sm:$0xff] %vm9313_vm3, %v964_v63  ;;  %v6779_v43 = vpop.f32.mrb[6].mxu0 }
 0x1a0   : > { %1619 = vst.msk [vmem:[#allocation3 + $0x130] sm:$0xff] %vm9310_vm6, %v1542_v17  ;;  %v2157_v46 = vpop.f32.mrb[7].mxu0  ;;  %1172 = vrot.lane.b32.xlu1 %v6744_v13, %s5714_s28 }
 0x1a1   : > { %1750 = vrot.lane.b32.xlu0 %v6774_v40, %s5718_s26  ;;  %2825 = vst.msk [vmem:[#allocation2 + $0x29] sm:$0x1] %vm2808_vm11, %v5719_v47  ;;  %2826 = vst.msk [vmem:[#allocation2 + $0x41] sm:$0x1] %vm2808_vm11, %v5719_v47 }
 0x1a2   : > { %v1157_v0 = vpop.permute.xlu1 %1156  ;;  %2827 = vst.msk [vmem:[#allocation2 + $0x59] sm:$0x1] %vm2808_vm11, %v5719_v47  ;;  %2828 = vst.msk [vmem:[#allocation2 + $0x71] sm:$0x1] %vm2808_vm11, %v5719_v47 }
 0x1a3   : > { %v1735_v48 = vpop.permute.xlu0 %1734  ;;  %1233 = vst.msk [vmem:[#allocation3 + $0x140] sm:$0xff] %vm9312_vm4, %v1157_v0 }
 0x1a4   : > { %1812 = vst.msk [vmem:[#allocation3 + $0x130] sm:$0xff] %vm9309_vm7, %v1735_v48  ;;  %1365 = vrot.lane.b32.xlu1 %v6536_v6, %s5716_s13 }
 0x1a5   : > { %594 = vrot.lane.b32.xlu0 %v6720_v21, %s5713_s19  ;;  %2829 = vst.msk [vmem:[#allocation2 + $0x89] sm:$0x1] %vm2808_vm11, %v5719_v47  ;;  %2830 = vst.msk [vmem:[#allocation2 + $0xa1] sm:$0x1] %vm2808_vm11, %v5719_v47 }
 0x1a6   : > { %v1350_v51 = vpop.permute.xlu1 %1349  ;;  %2831 = vst.msk [vmem:[#allocation2 + $0xb9] sm:$0x1] %vm2808_vm11, %v5719_v47  ;;  %2832 = vst.msk [vmem:[#allocation2 + $0xd1] sm:$0x1] %vm2808_vm11, %v5719_v47 }
 0x1a7   : > { %v579_v52 = vpop.permute.xlu0 %578  ;;  %1426 = vst.msk [vmem:[#allocation3 + $0x140] sm:$0xff] %vm9311_vm5, %v1350_v51 }
 0x1a8   : > { %654 = vst.msk [vmem:[#allocation3 + $0x150] sm:$0xff] %vm9308_vm1, %v579_v52  ;;  %1559 = vrot.lane.b32.xlu1 %v5456_v20, %s5717_s21  ;;  %v1938_v52 = vld [vmem:[#allocation3 + $0x188] sm:$0xff] }
 0x1a9   : > { %787 = vrot.lane.b32.xlu0 %v6504_v39, %s5715_s29  ;;  %2833 = vst.msk [vmem:[#allocation2 + $0xe9] sm:$0x1] %vm2808_vm11, %v5719_v47  ;;  %2834 = vst.msk [vmem:[#allocation2 + $0x101] sm:$0x1] %vm2808_vm11, %v5719_v47 }
 0x1aa   : > { %v1544_v53 = vpop.permute.xlu1 %1543  ;;  %v6800_v54 = vpop.f32.mrb[8].mxu0  ;;  %2835 = vst.msk [vmem:[#allocation2 + $0x119] sm:$0x1] %vm2808_vm11, %v5719_v47  ;;  %2836 = vst.msk [vmem:[#allocation2 + $0x131] sm:$0x1] %vm2808_vm11, %v5719_v47 }
 0x1ab   : > { %v772_v29 = vpop.permute.xlu0 %771  ;;  %v1927_v25 = vld [vmem:[#allocation3 + $0x130] sm:$0xff]  ;;  %1620 = vst.msk [vmem:[#allocation3 + $0x140] sm:$0xff] %vm9310_vm6, %v1544_v53  ;;  %v2162_v7 = vpop.f32.mrb[9].mxu0 }
 0x1ac   : > { %847 = vst.msk [vmem:[#allocation3 + $0x150] sm:$0xff] %vm9314_vm2, %v772_v29  ;;  %2234 = vmatmul.mubr.f32.gmra.mrb[38].mxu0 %v1927_v25  ;;  %1752 = vrot.lane.b32.xlu1 %v5488_v22, %s5718_s26 }
 0x1ad   : > { %981 = vrot.lane.b32.xlu0 %v6515_v42, %s5712_s16  ;;  %5545 = vmatprep.mubr.msk.f32.mxu0 %vm439_vm0, %v1930_v32  ;;  %v5457_v42 = vld [vmem:[%s5816_s15 + $0x188] sm:$0xff]  ;;  %2837 = vst.msk [vmem:[#allocation2 + $0x149] sm:$0x1] %vm2808_vm11, %v5719_v47  ;;  %2838 = vst.msk [vmem:[#allocation2 + $0x161] sm:$0x1] %vm2808_vm11, %v5719_v47 }
 0x1ae   : > { %v1737_v39 = vpop.permute.xlu1 %1736  ;;  %2839 = vst.msk [vmem:[#allocation2 + $0x179] sm:$0x1] %vm2808_vm11, %v5719_v47  ;;  %2840 = vst.msk [vmem:[#allocation2 + $0x191] sm:$0x1] %vm2808_vm11, %v5719_v47 }
 0x1af   : > { %v966_v55 = vpop.permute.xlu0 %965  ;;  %1813 = vst.msk [vmem:[#allocation3 + $0x140] sm:$0xff] %vm9309_vm7, %v1737_v39 }
 0x1b0   : > { %1041 = vst.msk [vmem:[#allocation3 + $0x150] sm:$0xff] %vm9313_vm3, %v966_v55  ;;  %596 = vrot.lane.b32.xlu1 %v6744_v13, %s5713_s19 }
 0x1b1   : > { %1174 = vrot.lane.b32.xlu0 %v6774_v40, %s5714_s28 }
 0x1b2   : > { %v581_v58 = vpop.permute.xlu1 %580 }
 0x1b3   : > { %v1159_v60 = vpop.permute.xlu0 %1158  ;;  %655 = vst.msk [vmem:[#allocation3 + $0x160] sm:$0xff] %vm9308_vm1, %v581_v58 }
 0x1b4   : > { %1234 = vst.msk [vmem:[#allocation3 + $0x150] sm:$0xff] %vm9312_vm4, %v1159_v60  ;;  %789 = vrot.lane.b32.xlu1 %v6536_v6, %s5715_s29  ;;  %v1940_v60 = vld [vmem:[#allocation3 + $0x198] sm:$0xff] }
 0x1b5   : > { %1367 = vrot.lane.b32.xlu0 %v6569_v5, %s5716_s13 }
 0x1b6   : > { %v774_v31 = vpop.permute.xlu1 %773  ;;  %v1929_v1 = vld [vmem:[#allocation3 + $0x140] sm:$0xff] }
 0x1b7   : > { %v1352_v62 = vpop.permute.xlu0 %1351  ;;  %848 = vst.msk [vmem:[#allocation3 + $0x160] sm:$0xff] %vm9314_vm2, %v774_v31  ;;  %2239 = vmatmul.mubr.f32.gmra.mrb[40].mxu0 %v1929_v1 }
 0x1b8   : > { %1427 = vst.msk [vmem:[#allocation3 + $0x150] sm:$0xff] %vm9311_vm5, %v1352_v62  ;;  %983 = vrot.lane.b32.xlu1 %v5456_v20, %s5712_s16  ;;  %5546 = vmatprep.mubr.msk.f32.mxu0 %vm439_vm0, %v1932_v9 }
 0x1b9   : > { %1561 = vrot.lane.b32.xlu0 %v5457_v42, %s5717_s21 }
 0x1ba   : > { %v968_v6 = vpop.permute.xlu1 %967 }
 0x1bb   : > { %v1546_v56 = vpop.permute.xlu0 %1545  ;;  %1042 = vst.msk [vmem:[#allocation3 + $0x160] sm:$0xff] %vm9313_vm3, %v968_v6  ;;  %v6828_v8 = vpop.f32.mrb[10].mxu0 }
 0x1bc   : > { %1621 = vst.msk [vmem:[#allocation3 + $0x150] sm:$0xff] %vm9310_vm6, %v1546_v56  ;;  %v2167_v45 = vpop.f32.mrb[11].mxu0  ;;  %1176 = vrot.lane.b32.xlu1 %v5488_v22, %s5714_s28 }
 0x1bd   : > { %1754 = vrot.lane.b32.xlu0 %v5489_v41, %s5718_s26 }
 0x1be   : > { %v1161_v61 = vpop.permute.xlu1 %1160 }
 0x1bf   : > { %v1739_v14 = vpop.permute.xlu0 %1738  ;;  %1235 = vst.msk [vmem:[#allocation3 + $0x160] sm:$0xff] %vm9312_vm4, %v1161_v61 }
 0x1c0   : > { %1814 = vst.msk [vmem:[#allocation3 + $0x150] sm:$0xff] %vm9309_vm7, %v1739_v14  ;;  %1369 = vrot.lane.b32.xlu1 %v6596_v24, %s5716_s13  ;;  %v5490_v24 = vld [vmem:[%s5816_s15 + $0x199] sm:$0xff] }
 0x1c1   : > { %598 = vrot.lane.b32.xlu0 %v6774_v40, %s5713_s19  ;;  %v1942_v14 = vld [vmem:[#allocation3 + $0x1a8] sm:$0xff] }
 0x1c2   : > { %v1354_v21 = vpop.permute.xlu1 %1353 }
 0x1c3   : > { %v583_v49 = vpop.permute.xlu0 %582  ;;  %1428 = vst.msk [vmem:[#allocation3 + $0x160] sm:$0xff] %vm9311_vm5, %v1354_v21 }
 0x1c4   : > { %656 = vst.msk [vmem:[#allocation3 + $0x170] sm:$0xff] %vm9308_vm1, %v583_v49  ;;  %1563 = vrot.lane.b32.xlu1 %v5458_v19, %s5717_s21 }
 0x1c5   : > { %791 = vrot.lane.b32.xlu0 %v6569_v5, %s5715_s29  ;;  %v1934_v5 = vld [vmem:[#allocation3 + $0x168] sm:$0xff] }
 0x1c6   : > { %v1548_v50 = vpop.permute.xlu1 %1547  ;;  %v6858_v27 = vpop.f32.mrb[12].mxu0 }
 0x1c7   : > { %v776_v26 = vpop.permute.xlu0 %775  ;;  %v1931_v12 = vld [vmem:[#allocation3 + $0x150] sm:$0xff]  ;;  %1622 = vst.msk [vmem:[#allocation3 + $0x160] sm:$0xff] %vm9310_vm6, %v1548_v50  ;;  %v2172_v13 = vpop.f32.mrb[13].mxu0 }
 0x1c8   : > { %849 = vst.msk [vmem:[#allocation3 + $0x170] sm:$0xff] %vm9314_vm2, %v776_v26  ;;  %2244 = vmatmul.mubr.f32.gmra.mrb[42].mxu0 %v1931_v12  ;;  %1756 = vrot.lane.b32.xlu1 %v5490_v24, %s5718_s26  ;;  %v1944_v13 = vld [vmem:[#allocation3 + $0x1b8] sm:$0xff] }
 0x1c9   : > { %985 = vrot.lane.b32.xlu0 %v5457_v42, %s5712_s16  ;;  %5547 = vmatprep.mubr.msk.f32.mxu0 %vm439_vm0, %v1934_v5 }
 0x1ca   : > { %v1741_v28 = vpop.permute.xlu1 %1740 }
 0x1cb   : > { %v970_v57 = vpop.permute.xlu0 %969  ;;  %1815 = vst.msk [vmem:[#allocation3 + $0x160] sm:$0xff] %vm9309_vm7, %v1741_v28 }
 0x1cc   : > { %1043 = vst.msk [vmem:[#allocation3 + $0x170] sm:$0xff] %vm9313_vm3, %v970_v57  ;;  %1371 = vrot.lane.b32.xlu1 %v6623_v59, %s5716_s13  ;;  %v1936_v59 = vld [vmem:[#allocation3 + $0x178] sm:$0xff] }
 0x1cd   : > { %1178 = vrot.lane.b32.xlu0 %v5489_v41, %s5714_s28 }
 0x1ce   : > { %v585_v15 = vpop.permute.xlu1 %584 }
 0x1cf   : > { %v1163_v37 = vpop.permute.xlu0 %1162  ;;  %657 = vst.msk [vmem:[#allocation3 + $0x180] sm:$0xff] %vm9308_vm1, %v585_v15 }
 0x1d0   : > { %1236 = vst.msk [vmem:[#allocation3 + $0x170] sm:$0xff] %vm9312_vm4, %v1163_v37  ;;  %1758 = vrot.lane.b32.xlu1 %v5491_v11, %s5718_s26 }
 0x1d1   : > { %1565 = vrot.lane.b32.xlu0 %v5459_v36, %s5717_s21 }
 0x1d2   : > { %v778_v2 = vpop.permute.xlu1 %777  ;;  %v1933_v16 = vld [vmem:[#allocation3 + $0x160] sm:$0xff] }
 0x1d3   : > { %v1356_v18 = vpop.permute.xlu0 %1355  ;;  %850 = vst.msk [vmem:[#allocation3 + $0x180] sm:$0xff] %vm9314_vm2, %v778_v2  ;;  %2249 = vmatmul.mubr.f32.gmra.mrb[44].mxu0 %v1933_v16 }
 0x1d4   : > { %1429 = vst.msk [vmem:[#allocation3 + $0x170] sm:$0xff] %vm9311_vm5, %v1356_v18  ;;  %5548 = vmatprep.mubr.msk.f32.mxu0 %vm439_vm0, %v1936_v59 }
 0x1d6   : > { %v972_v40 = vpop.permute.xlu1 %971 }
 0x1d7   : > { %v1550_v63 = vpop.permute.xlu0 %1549  ;;  %1044 = vst.msk [vmem:[#allocation3 + $0x180] sm:$0xff] %vm9313_vm3, %v972_v40  ;;  %v6887_v17 = vpop.f32.mrb[14].mxu0 }
 0x1d8   : > { %1623 = vst.msk [vmem:[#allocation3 + $0x170] sm:$0xff] %vm9310_vm6, %v1550_v63  ;;  %v2177_v46 = vpop.f32.mrb[15].mxu0 }
 0x1da   : > { %v1165_v0 = vpop.permute.xlu1 %1164 }
 0x1db   : > { %v1743_v48 = vpop.permute.xlu0 %1742  ;;  %1237 = vst.msk [vmem:[#allocation3 + $0x180] sm:$0xff] %vm9312_vm4, %v1165_v0 }
 0x1dc   : > { %1816 = vst.msk [vmem:[#allocation3 + $0x170] sm:$0xff] %vm9309_vm7, %v1743_v48 }
 0x1de   : > { %v1358_v20 = vpop.permute.xlu1 %1357 }
 0x1df   : > { %v587_v51 = vpop.permute.xlu0 %586  ;;  %1430 = vst.msk [vmem:[#allocation3 + $0x180] sm:$0xff] %vm9311_vm5, %v1358_v20 }
 0x1e0   : > { %658 = vst.msk [vmem:[#allocation3 + $0x190] sm:$0xff] %vm9308_vm1, %v587_v51 }
 0x1e2   : > { %v1552_v22 = vpop.permute.xlu1 %1551  ;;  %v6895_v25 = vpop.f32.mrb[16].mxu0 }
 0x1e3   : > { %v780_v53 = vpop.permute.xlu0 %779  ;;  %v1935_v29 = vld [vmem:[#allocation3 + $0x170] sm:$0xff]  ;;  %1624 = vst.msk [vmem:[#allocation3 + $0x180] sm:$0xff] %vm9310_vm6, %v1552_v22  ;;  %v2182_v32 = vpop.f32.mrb[17].mxu0 }
 0x1e4   : > { %851 = vst.msk [vmem:[#allocation3 + $0x190] sm:$0xff] %vm9314_vm2, %v780_v53  ;;  %2254 = vmatmul.mubr.f32.gmra.mrb[46].mxu0 %v1935_v29  ;;  %v1948_v53 = vld [vmem:[#allocation3 + $0x1d8] sm:$0xff] }
 0x1e5   : > { %5549 = vmatprep.mubr.msk.f32.mxu0 %vm439_vm0, %v1938_v52 }
 0x1e6   : > { %v1745_v7 = vpop.permute.xlu1 %1744 }
 0x1e7   : > { %v974_v39 = vpop.permute.xlu0 %973  ;;  %1817 = vst.msk [vmem:[#allocation3 + $0x180] sm:$0xff] %vm9309_vm7, %v1745_v7 }
 0x1e8   : > { %1045 = vst.msk [vmem:[#allocation3 + $0x190] sm:$0xff] %vm9313_vm3, %v974_v39 }
 0x1ea   : > { %v589_v55 = vpop.permute.xlu1 %588 }
 0x1eb   : > { %v1167_v58 = vpop.permute.xlu0 %1166  ;;  %659 = vst.msk [vmem:[#allocation3 + $0x1a0] sm:$0xff] %vm9308_vm1, %v589_v55 }
 0x1ec   : > { %1238 = vst.msk [vmem:[#allocation3 + $0x190] sm:$0xff] %vm9312_vm4, %v1167_v58 }
 0x1ee   : > { %v782_v42 = vpop.permute.xlu1 %781  ;;  %v1937_v62 = vld [vmem:[#allocation3 + $0x180] sm:$0xff] }
 0x1ef   : > { %v1360_v31 = vpop.permute.xlu0 %1359  ;;  %852 = vst.msk [vmem:[#allocation3 + $0x1a0] sm:$0xff] %vm9314_vm2, %v782_v42  ;;  %2259 = vmatmul.mubr.f32.gmra.mrb[48].mxu0 %v1937_v62 }
 0x1f0   : > { %1431 = vst.msk [vmem:[#allocation3 + $0x190] sm:$0xff] %vm9311_vm5, %v1360_v31  ;;  %5550 = vmatprep.mubr.msk.f32.mxu0 %vm439_vm0, %v1940_v60 }
 0x1f2   : > { %v976_v1 = vpop.permute.xlu1 %975 }
 0x1f3   : > { %v1554_v9 = vpop.permute.xlu0 %1553  ;;  %1046 = vst.msk [vmem:[#allocation3 + $0x1a0] sm:$0xff] %vm9313_vm3, %v976_v1  ;;  %v6907_v41 = vpop.f32.mrb[18].mxu0 }
 0x1f4   : > { %1625 = vst.msk [vmem:[#allocation3 + $0x190] sm:$0xff] %vm9310_vm6, %v1554_v9  ;;  %v2187_v6 = vpop.f32.mrb[19].mxu0 }
 0x1f6   : > { %v1169_v56 = vpop.permute.xlu1 %1168 }
 0x1f7   : > { %v1747_v10 = vpop.permute.xlu0 %1746  ;;  %1239 = vst.msk [vmem:[#allocation3 + $0x1a0] sm:$0xff] %vm9312_vm4, %v1169_v56 }
 0x1f8   : > { %1818 = vst.msk [vmem:[#allocation3 + $0x190] sm:$0xff] %vm9309_vm7, %v1747_v10 }
 0x1fa   : > { %v1362_v45 = vpop.permute.xlu1 %1361 }
 0x1fb   : > { %v591_v61 = vpop.permute.xlu0 %590  ;;  %1432 = vst.msk [vmem:[#allocation3 + $0x1a0] sm:$0xff] %vm9311_vm5, %v1362_v45 }
 0x1fc   : > { %660 = vst.msk [vmem:[#allocation3 + $0x1b0] sm:$0xff] %vm9308_vm1, %v591_v61 }
 0x1fe   : > { %v1556_v19 = vpop.permute.xlu1 %1555  ;;  %v6915_v44 = vpop.f32.mrb[20].mxu0 }
 0x1ff   : > { %v784_v21 = vpop.permute.xlu0 %783  ;;  %v1939_v49 = vld [vmem:[#allocation3 + $0x190] sm:$0xff]  ;;  %1626 = vst.msk [vmem:[#allocation3 + $0x1a0] sm:$0xff] %vm9310_vm6, %v1556_v19  ;;  %v2192_v24 = vpop.f32.mrb[21].mxu0 }
 0x200   : > { %853 = vst.msk [vmem:[#allocation3 + $0x1b0] sm:$0xff] %vm9314_vm2, %v784_v21  ;;  %2264 = vmatmul.mubr.f32.gmra.mrb[50].mxu0 %v1939_v49 }
 0x201   : > { %5551 = vmatprep.mubr.msk.f32.mxu0 %vm439_vm0, %v1942_v14 }
 0x202   : > { %v1749_v50 = vpop.permute.xlu1 %1748 }
 0x203   : > { %v978_v26 = vpop.permute.xlu0 %977  ;;  %1819 = vst.msk [vmem:[#allocation3 + $0x1a0] sm:$0xff] %vm9309_vm7, %v1749_v50 }
 0x204   : > { %1047 = vst.msk [vmem:[#allocation3 + $0x1b0] sm:$0xff] %vm9313_vm3, %v978_v26 }
 0x206   : > { %v593_v12 = vpop.permute.xlu1 %592 }
 0x207   : > { %v1171_v5 = vpop.permute.xlu0 %1170  ;;  %661 = vst.msk [vmem:[#allocation3 + $0x1c0] sm:$0xff] %vm9308_vm1, %v593_v12 }
 0x208   : > { %1240 = vst.msk [vmem:[#allocation3 + $0x1b0] sm:$0xff] %vm9312_vm4, %v1171_v5 }
 0x20a   : > { %v786_v28 = vpop.permute.xlu1 %785  ;;  %v1941_v33 = vld [vmem:[#allocation3 + $0x1a0] sm:$0xff] }
 0x20b   : > { %v1364_v57 = vpop.permute.xlu0 %1363  ;;  %854 = vst.msk [vmem:[#allocation3 + $0x1c0] sm:$0xff] %vm9314_vm2, %v786_v28  ;;  %2269 = vmatmul.mubr.f32.gmra.mrb[52].mxu0 %v1941_v33 }
 0x20c   : > { %1433 = vst.msk [vmem:[#allocation3 + $0x1b0] sm:$0xff] %vm9311_vm5, %v1364_v57  ;;  %5552 = vmatprep.mubr.msk.f32.mxu0 %vm439_vm0, %v1944_v13 }
 0x20e   : > { %v980_v36 = vpop.permute.xlu1 %979 }
 0x20f   : > { %v1558_v11 = vpop.permute.xlu0 %1557  ;;  %1048 = vst.msk [vmem:[#allocation3 + $0x1c0] sm:$0xff] %vm9313_vm3, %v980_v36  ;;  %v6927_v15 = vpop.f32.mrb[22].mxu0 }
 0x210   : > { %1627 = vst.msk [vmem:[#allocation3 + $0x1b0] sm:$0xff] %vm9310_vm6, %v1558_v11  ;;  %v2197_v37 = vpop.f32.mrb[23].mxu0 }
 0x212   : > { %v1173_v59 = vpop.permute.xlu1 %1172 }
 0x213   : > { %v1751_v2 = vpop.permute.xlu0 %1750  ;;  %1241 = vst.msk [vmem:[#allocation3 + $0x1c0] sm:$0xff] %vm9312_vm4, %v1173_v59 }
 0x214   : > { %1820 = vst.msk [vmem:[#allocation3 + $0x1b0] sm:$0xff] %vm9309_vm7, %v1751_v2 }
 0x216   : > { %v1366_v18 = vpop.permute.xlu1 %1365 }
 0x217   : > { %v595_v16 = vpop.permute.xlu0 %594  ;;  %1434 = vst.msk [vmem:[#allocation3 + $0x1c0] sm:$0xff] %vm9311_vm5, %v1366_v18 }
 0x218   : > { %662 = vst.msk [vmem:[#allocation3 + $0x1d0] sm:$0xff] %vm9308_vm1, %v595_v16 }
 0x21a   : > { %v1560_v40 = vpop.permute.xlu1 %1559  ;;  %v6935_v0 = vpop.f32.mrb[24].mxu0 }
 0x21b   : > { %v788_v63 = vpop.permute.xlu0 %787  ;;  %v1943_v46 = vld [vmem:[#allocation3 + $0x1b0] sm:$0xff]  ;;  %1628 = vst.msk [vmem:[#allocation3 + $0x1c0] sm:$0xff] %vm9310_vm6, %v1560_v40  ;;  %v2202_v48 = vpop.f32.mrb[25].mxu0 }
 0x21c   : > { %855 = vst.msk [vmem:[#allocation3 + $0x1d0] sm:$0xff] %vm9314_vm2, %v788_v63  ;;  %2274 = vmatmul.mubr.f32.gmra.mrb[54].mxu0 %v1943_v46  ;;  %v2473_v40 = vld [vmem:[%s9305_s10] sm:$0xff]  ;;  %v2474_v63 = vld [vmem:[%s9305_s10 + $0x8] sm:$0xff] }
 0x21d   : > { %5553 = vmatprep.mubr.msk.f32.mxu0 %vm439_vm0, %v1946_v4  ;;  %v5648_v46 = vpack.c.bf16 %v2474_v63, %v2473_v40 }
 0x21e   : > { %v1753_v20 = vpop.permute.xlu1 %1752 }
 0x21f   : > { %v982_v51 = vpop.permute.xlu0 %981  ;;  %1821 = vst.msk [vmem:[#allocation3 + $0x1c0] sm:$0xff] %vm9309_vm7, %v1753_v20  ;;  %5649 = vmatpush3.bf16.msra.mxu1 %v5648_v46 }
 0x220   : > { %1049 = vst.msk [vmem:[#allocation3 + $0x1d0] sm:$0xff] %vm9313_vm3, %v982_v51  ;;  %5650 = vmatprep.subr.bf16.mxu1 %v5711_v3 }
 0x222   : > { %v597_v52 = vpop.permute.xlu1 %596 }
 0x223   : > { %v1175_v22 = vpop.permute.xlu0 %1174  ;;  %663 = vst.msk [vmem:[#allocation3 + $0x1e0] sm:$0xff] %vm9308_vm1, %v597_v52 }
 0x224   : > { %1242 = vst.msk [vmem:[#allocation3 + $0x1d0] sm:$0xff] %vm9312_vm4, %v1175_v22 }
 0x226   : > { %v790_v29 = vpop.permute.xlu1 %789  ;;  %v1945_v7 = vld [vmem:[#allocation3 + $0x1c0] sm:$0xff] }
 0x227   : > { %v1368_v32 = vpop.permute.xlu0 %1367  ;;  %856 = vst.msk [vmem:[#allocation3 + $0x1e0] sm:$0xff] %vm9314_vm2, %v790_v29  ;;  %2279 = vmatmul.mubr.f32.gmra.mrb[56].mxu0 %v1945_v7  ;;  %v7001_v29 = vld [vmem:[%s9298_s3] ss:$0 sm:$0xff] }
 0x228   : > { %1435 = vst.msk [vmem:[#allocation3 + $0x1d0] sm:$0xff] %vm9311_vm5, %v1368_v32  ;;  %5554 = vmatprep.mubr.msk.f32.mxu0 %vm439_vm0, %v1948_v53  ;;  %v7005_v32 = vadd.f32 %v7001_v29, %v6725_v23  ;;  %v7079_v46 = vadd.f32 %v7001_v29, %v6907_v41 }
 0x22a   : > { %v984_v39 = vpop.permute.xlu1 %983 }
 0x22b   : > { %v1562_v55 = vpop.permute.xlu0 %1561  ;;  %1050 = vst.msk [vmem:[#allocation3 + $0x1e0] sm:$0xff] %vm9313_vm3, %v984_v39  ;;  %v6947_v58 = vpop.f32.mrb[26].mxu0  ;;  %v7011_v39 = vadd.f32 %v7001_v29, %v6694_v34 }
 0x22c   : > { %1629 = vst.msk [vmem:[#allocation3 + $0x1d0] sm:$0xff] %vm9310_vm6, %v1562_v55  ;;  %v2207_v60 = vpop.f32.mrb[27].mxu0 }
 0x22d   : > { %v7015_v60 = vadd.f32 %v7001_v29, %v6748_v35  ;;  %v2370_v23 = vmul.f32 %v7011_v39, %v7011_v39  ;;  %v7031_v35 = vadd.f32 %v7001_v29, %v6800_v54 }
 0x22e   : > { %v1177_v42 = vpop.permute.xlu1 %1176 }
 0x22f   : > { %v1755_v31 = vpop.permute.xlu0 %1754  ;;  %1243 = vst.msk [vmem:[#allocation3 + $0x1e0] sm:$0xff] %vm9312_vm4, %v1177_v42  ;;  %v2371_v42 = vmul.f32 %v7005_v32, %v7005_v32  ;;  %v2372_v34 = vmul.f32 %v7015_v60, %v7015_v60 }
 0x230   : > { %1822 = vst.msk [vmem:[#allocation3 + $0x1d0] sm:$0xff] %vm9309_vm7, %v1755_v31  ;;  %v7021_v31 = vadd.f32 %v7001_v29, %v6779_v43  ;;  %v2304_v43 = vsel %vm439_vm0, %v7015_v60, 0.0 }
 0x231   : > { %v2405_v54 = vsel %vm439_vm0, %v2372_v34, 0.0 }
 0x232   : > { %v1370_v62 = vpop.permute.xlu1 %1369 }
 0x233   : > { %v599_v1 = vpop.permute.xlu0 %598  ;;  %1436 = vst.msk [vmem:[#allocation3 + $0x1e0] sm:$0xff] %vm9311_vm5, %v1370_v62  ;;  %v2302_v62 = vsel %vm439_vm0, %v7005_v32, 0.0 }
 0x234   : > { %664 = vst.msk [vmem:[#allocation3 + $0x1f0] sm:$0xff] %vm9308_vm1, %v599_v1  ;;  %v2301_v1 = vsel %vm439_vm0, %v7011_v39, 0.0 }
 0x236   : > { %v1564_v9 = vpop.permute.xlu1 %1563  ;;  %v6955_v10 = vpop.f32.mrb[28].mxu0 }
 0x237   : > { %v792_v6 = vpop.permute.xlu0 %791  ;;  %v1947_v56 = vld [vmem:[#allocation3 + $0x1d0] sm:$0xff]  ;;  %1630 = vst.msk [vmem:[#allocation3 + $0x1e0] sm:$0xff] %vm9310_vm6, %v1564_v9  ;;  %v2212_v45 = vpop.f32.mrb[29].mxu0  ;;  %v2403_v9 = vsel %vm439_vm0, %v2371_v42, 0.0 }
 0x238   : > { %857 = vst.msk [vmem:[#allocation3 + $0x1f0] sm:$0xff] %vm9314_vm2, %v792_v6  ;;  %2284 = vmatmul.mubr.f32.gmra.mrb[58].mxu0 %v1947_v56  ;;  %v2373_v6 = vmul.f32 %v7021_v31, %v7021_v31  ;;  %v7042_v56 = vadd.f32 %v7001_v29, %v6828_v8  ;;  %v2402_v45 = vsel %vm439_vm0, %v2370_v23, 0.0 }
 0x239   : > { %5555 = vmatprep.mubr.msk.f32.mxu0 %vm439_vm0, %v6865_v30 }
 0x23a   : > { %v1757_v61 = vpop.permute.xlu1 %1756  ;;  %v2407_v8 = vsel %vm439_vm0, %v2373_v6, 0.0  ;;  %v7099_v6 = vadd.f32 %v7001_v29, %v6927_v15 }
 0x23b   : > { %v986_v14 = vpop.permute.xlu0 %985  ;;  %1823 = vst.msk [vmem:[#allocation3 + $0x1e0] sm:$0xff] %vm9309_vm7, %v1757_v61  ;;  %v2303_v61 = vadd.f32 %v2302_v62, %v2301_v1  ;;  %v7090_v62 = vadd.f32 %v7001_v29, %v6915_v44  ;;  %v2318_v44 = vsel %vm439_vm0, %v7079_v46, 0.0 }
 0x23c   : > { %1051 = vst.msk [vmem:[#allocation3 + $0x1f0] sm:$0xff] %vm9313_vm3, %v986_v14  ;;  %v2306_v14 = vsel %vm439_vm0, %v7021_v31, 0.0 }
 0x23d   : > { %v2320_v15 = vsel %vm439_vm0, %v7090_v62, 0.0 }
 0x23e   : > { %v1372_v21 = vpop.permute.xlu1 %1371 }
 0x23f   : > { %v1179_v19 = vpop.permute.xlu0 %1178 }
 0x240   : > { %1244 = vst.msk [vmem:[#allocation3 + $0x1f0] sm:$0xff] %vm9312_vm4, %v1179_v19  ;;  %v2374_v19 = vmul.f32 %v7031_v35, %v7031_v35 }
 0x241   : > { %1437 = vst.msk [vmem:[#allocation3 + $0x1f0] sm:$0xff] %vm9311_vm5, %v1372_v21  ;;  %v7052_v21 = vadd.f32 %v7001_v29, %v6858_v27  ;;  %v2310_v27 = vsel %vm439_vm0, %v7042_v56, 0.0 }
 0x242   : > { %v1759_v24 = vpop.permute.xlu1 %1758  ;;  %v1949_v50 = vld [vmem:[#allocation3 + $0x1e0] sm:$0xff] }
 0x243   : > { %v1566_v49 = vpop.permute.xlu0 %1565  ;;  %2289 = vmatmul.mubr.f32.gmra.mrb[60].mxu0 %v1949_v50  ;;  %v2308_v50 = vsel %vm439_vm0, %v7031_v35, 0.0 }
 0x244   : > { %1631 = vst.msk [vmem:[#allocation3 + $0x1f0] sm:$0xff] %vm9310_vm6, %v1566_v49  ;;  %5556 = vmatprep.mubr.msk.f32.mxu0 %vm439_vm0, %v6882_v38  ;;  %v2404_v49 = vadd.f32 %v2403_v9, %v2402_v45 }
 0x245   : > { %1824 = vst.msk [vmem:[#allocation3 + $0x1f0] sm:$0xff] %vm9309_vm7, %v1759_v24  ;;  %v2305_v24 = vadd.f32 %v2304_v43, %v2303_v61  ;;  %v2379_v43 = vmul.f32 %v7079_v46, %v7079_v46 }
 0x247   : > { %v6967_v30 = vpop.f32.mrb[30].mxu0 }
 0x248   : > { %v2217_v26 = vpop.f32.mrb[31].mxu0 }
 0x249   : > { %v2375_v26 = vmul.f32 %v7042_v56, %v7042_v56 }
 0x24b   : > { %v2411_v40 = vsel %vm439_vm0, %v2375_v26, 0.0  ;;  %v7117_v26 = vadd.f32 %v7001_v29, %v6947_v58 }
 0x24c   : > { %v1951_v12 = vld [vmem:[#allocation3 + $0x1f0] sm:$0xff] }
 0x24d   : > { %2294 = vmatmul.mubr.f32.gmra.mrb[62].mxu0 %v1951_v12  ;;  %v7061_v12 = vadd.f32 %v7001_v29, %v6887_v17  ;;  %v2312_v17 = vsel %vm439_vm0, %v7052_v21, 0.0 }
 0x24e   : > { %5617 = vmatprep.mubr.msk.f32.mxu0 %vm5720_vm9, %v5719_v47 }
 0x24f   : > { %v2377_v63 = vmul.f32 %v7061_v12, %v7061_v12  ;;  %v2314_v42 = vsel %vm439_vm0, %v7061_v12, 0.0 }
 0x251   : > { %v2415_v1 = vsel %vm439_vm0, %v2377_v63, 0.0  ;;  %v7135_v63 = vadd.f32 %v7001_v29, %v6967_v30 }
 0x252   : > { %v6969_v5 = vpop.f32.mrb[32].mxu0 }
 0x253   : > { %v2222_v13 = vpop.f32.mrb[33].mxu0 }
 0x254   : > { %v2406_v13 = vadd.f32 %v2405_v54, %v2404_v49 }
 0x263   : > { %v6971_v28 = vpop.f32.mrb[34].mxu0 }
 0x264   : > { %v2227_v57 = vpop.f32.mrb[35].mxu0 }
 0x265   : > { %v2307_v57 = vadd.f32 %v2306_v14, %v2305_v24  ;;  %v2380_v14 = vmul.f32 %v7090_v62, %v7090_v62 }
 0x26e   : > { %v6973_v33 = vpop.f32.mrb[36].mxu0 }
 0x26f   : > { %v2232_v36 = vpop.f32.mrb[37].mxu0 }
 0x270   : > { %v2409_v36 = vsel %vm439_vm0, %v2374_v19, 0.0  ;;  %v7108_v19 = vadd.f32 %v7001_v29, %v6935_v0  ;;  %v2322_v0 = vsel %vm439_vm0, %v7099_v6, 0.0 }
 0x272   : > { %v2324_v58 = vsel %vm439_vm0, %v7108_v19, 0.0 }
 0x27f   : > { %v6975_v11 = vpop.f32.mrb[38].mxu0 }
 0x280   : > { %v2237_v37 = vpop.f32.mrb[39].mxu0 }
 0x281   : > { %v2376_v37 = vmul.f32 %v7052_v21, %v7052_v21 }
 0x28a   : > { %v6977_v59 = vpop.f32.mrb[40].mxu0 }
 0x28b   : > { %v2242_v38 = vpop.f32.mrb[41].mxu0 }
 0x28c   : > { %v7070_v38 = vadd.f32 %v7001_v29, %v6895_v25 }
 0x28e   : > { %v2378_v23 = vmul.f32 %v7070_v38, %v7070_v38  ;;  %v2316_v9 = vsel %vm439_vm0, %v7070_v38, 0.0 }
 0x290   : > { %v2417_v54 = vsel %vm439_vm0, %v2378_v23, 0.0 }
 0x29b   : > { %v6979_v2 = vpop.f32.mrb[42].mxu0 }
 0x29c   : > { %v2247_v18 = vpop.f32.mrb[43].mxu0 }
 0x29d   : > { %v2408_v18 = vadd.f32 %v2407_v8, %v2406_v13  ;;  %v2419_v8 = vsel %vm439_vm0, %v2379_v43, 0.0  ;;  %v2385_v43 = vmul.f32 %v7135_v63, %v7135_v63 }
 0x2a6   : > { %v6981_v16 = vpop.f32.mrb[44].mxu0 }
 0x2a7   : > { %v2252_v4 = vpop.f32.mrb[45].mxu0 }
 0x2a8   : > { %v2309_v4 = vadd.f32 %v2308_v50, %v2307_v57  ;;  %v2381_v50 = vmul.f32 %v7099_v6, %v7099_v6 }
 0x2b7   : > { %v6992_v48 = vpop.f32.mrb[46].mxu0 }
 0x2b8   : > { %v2257_v20 = vpop.f32.mrb[47].mxu0 }
 0x2c2   : > { %v6994_v51 = vpop.f32.mrb[48].mxu0 }
 0x2c3   : > { %v2262_v52 = vpop.f32.mrb[49].mxu0 }
 0x2c4   : > { %v2410_v52 = vadd.f32 %v2409_v36, %v2408_v18  ;;  %v2421_v36 = vsel %vm439_vm0, %v2380_v14, 0.0 }
 0x2c6   : > { %v2412_v34 = vadd.f32 %v2411_v40, %v2410_v52  ;;  %v2423_v40 = vsel %vm439_vm0, %v2381_v50, 0.0 }
 0x2d3   : > { %v6996_v22 = vpop.f32.mrb[50].mxu0 }
 0x2d4   : > { %v2267_v53 = vpop.f32.mrb[51].mxu0 }
 0x2d5   : > { %v2311_v53 = vadd.f32 %v2310_v27, %v2309_v4  ;;  %v2382_v27 = vmul.f32 %v7108_v19, %v7108_v19 }
 0x2d7   : > { %v2313_v41 = vadd.f32 %v2312_v17, %v2311_v53  ;;  %v2383_v17 = vmul.f32 %v7117_v26, %v7117_v26 }
 0x2d9   : > { %v2315_v61 = vadd.f32 %v2314_v42, %v2313_v41  ;;  %v2326_v42 = vsel %vm439_vm0, %v7117_v26, 0.0 }
 0x2db   : > { %v2317_v24 = vadd.f32 %v2316_v9, %v2315_v61 }
 0x2dd   : > { %v2319_v57 = vadd.f32 %v2318_v44, %v2317_v24 }
 0x2de   : > { %v7007_v7 = vpop.f32.mrb[52].mxu0 }
 0x2df   : > { %v2272_v55 = vpop.f32.mrb[53].mxu0  ;;  %v2321_v4 = vadd.f32 %v2320_v15, %v2319_v57  ;;  %v2431_v15 = vsel %vm439_vm0, %v2385_v43, 0.0  ;;  %v7209_v43 = vadd.f32 %v7001_v29, %v6992_v48 }
 0x2e0   : > { %v2413_v55 = vsel %vm439_vm0, %v2376_v37, 0.0  ;;  %v7126_v37 = vadd.f32 %v7001_v29, %v6955_v10 }
 0x2e1   : > { %v2414_v45 = vadd.f32 %v2413_v55, %v2412_v34  ;;  %v2425_v55 = vsel %vm439_vm0, %v2382_v27, 0.0  ;;  %v7146_v34 = vadd.f32 %v7001_v29, %v6969_v5  ;;  %v2330_v5 = vsel %vm439_vm0, %v7135_v63, 0.0 }
 0x2e2   : > { %v2384_v23 = vmul.f32 %v7126_v37, %v7126_v37  ;;  %v2328_v9 = vsel %vm439_vm0, %v7126_v37, 0.0 }
 0x2e3   : > { %v2416_v49 = vadd.f32 %v2415_v1, %v2414_v45  ;;  %v2427_v1 = vsel %vm439_vm0, %v2383_v17, 0.0  ;;  %v7155_v45 = vadd.f32 %v7001_v29, %v6971_v28  ;;  %v2386_v14 = vmul.f32 %v7146_v34, %v7146_v34 }
 0x2e4   : > { %v2429_v44 = vsel %vm439_vm0, %v2384_v23, 0.0  ;;  %v2332_v28 = vsel %vm439_vm0, %v7146_v34, 0.0  ;;  %v7200_v23 = vadd.f32 %v7001_v29, %v6981_v16 }
 0x2e5   : > { %v2418_v13 = vadd.f32 %v2417_v54, %v2416_v49  ;;  %v7164_v49 = vadd.f32 %v7001_v29, %v6973_v33  ;;  %v2387_v50 = vmul.f32 %v7155_v45, %v7155_v45  ;;  %v2334_v33 = vsel %vm439_vm0, %v7155_v45, 0.0 }
 0x2e7   : > { %v2420_v18 = vadd.f32 %v2419_v8, %v2418_v13  ;;  %v7173_v13 = vadd.f32 %v7001_v29, %v6975_v11  ;;  %v2388_v27 = vmul.f32 %v7164_v49, %v7164_v49  ;;  %v2336_v11 = vsel %vm439_vm0, %v7164_v49, 0.0 }
 0x2e9   : > { %v2422_v53 = vadd.f32 %v2421_v36, %v2420_v18  ;;  %v7182_v18 = vadd.f32 %v7001_v29, %v6977_v59  ;;  %v2389_v17 = vmul.f32 %v7173_v13, %v7173_v13  ;;  %v2338_v59 = vsel %vm439_vm0, %v7173_v13, 0.0 }
 0x2eb   : > { %v2424_v41 = vadd.f32 %v2423_v40, %v2422_v53  ;;  %v7191_v53 = vadd.f32 %v7001_v29, %v6979_v2  ;;  %v2340_v2 = vsel %vm439_vm0, %v7182_v18, 0.0 }
 0x2ed   : > { %v2426_v61 = vadd.f32 %v2425_v55, %v2424_v41  ;;  %v2437_v55 = vsel %vm439_vm0, %v2388_v27, 0.0 }
 0x2ef   : > { %v7081_v20 = vpop.f32.mrb[54].mxu0  ;;  %v2428_v24 = vadd.f32 %v2427_v1, %v2426_v61  ;;  %v2439_v1 = vsel %vm439_vm0, %v2389_v17, 0.0 }
 0x2f0   : > { %v2277_v25 = vpop.f32.mrb[55].mxu0 }
 0x2f1   : > { %v2323_v25 = vadd.f32 %v2322_v0, %v2321_v4  ;;  %v2430_v57 = vadd.f32 %v2429_v44, %v2428_v24  ;;  %v2433_v0 = vsel %vm439_vm0, %v2386_v14, 0.0  ;;  %v2342_v14 = vsel %vm439_vm0, %v7191_v53, 0.0 }
 0x2f2   : > { %v2392_v24 = vmul.f32 %v7200_v23, %v7200_v23 }
 0x2f3   : > { %v2325_v30 = vadd.f32 %v2324_v58, %v2323_v25  ;;  %v2432_v4 = vadd.f32 %v2431_v15, %v2430_v57  ;;  %v2435_v58 = vsel %vm439_vm0, %v2387_v50, 0.0  ;;  %v2344_v50 = vsel %vm439_vm0, %v7200_v23, 0.0 }
 0x2f4   : > { %v2393_v57 = vmul.f32 %v7209_v43, %v7209_v43  ;;  %v2445_v27 = vsel %vm439_vm0, %v2392_v24, 0.0 }
 0x2f5   : > { %v2327_v54 = vadd.f32 %v2326_v42, %v2325_v30  ;;  %v2434_v25 = vadd.f32 %v2433_v0, %v2432_v4  ;;  %v2390_v42 = vmul.f32 %v7182_v18, %v7182_v18 }
 0x2f6   : > { %v2447_v17 = vsel %vm439_vm0, %v2393_v57, 0.0 }
 0x2f7   : > { %v2329_v8 = vadd.f32 %v2328_v9, %v2327_v54  ;;  %v2436_v41 = vadd.f32 %v2435_v58, %v2434_v25  ;;  %v2391_v9 = vmul.f32 %v7191_v53, %v7191_v53  ;;  %v2441_v16 = vsel %vm439_vm0, %v2390_v42, 0.0 }
 0x2f9   : > { %v2331_v36 = vadd.f32 %v2330_v5, %v2329_v8  ;;  %v2438_v54 = vadd.f32 %v2437_v55, %v2436_v41  ;;  %v7218_v8 = vadd.f32 %v7001_v29, %v6994_v51  ;;  %v2443_v48 = vsel %vm439_vm0, %v2391_v9, 0.0 }
 0x2fa   : > { %v7137_v52 = vpop.f32.mrb[56].mxu0  ;;  %v2346_v51 = vsel %vm439_vm0, %v7209_v43, 0.0 }
 0x2fb   : > { %v2282_v10 = vpop.f32.mrb[57].mxu0  ;;  %v2333_v40 = vadd.f32 %v2332_v28, %v2331_v36  ;;  %v2440_v15 = vadd.f32 %v2439_v1, %v2438_v54  ;;  %v7227_v36 = vadd.f32 %v7001_v29, %v6996_v22  ;;  %v2394_v4 = vmul.f32 %v7218_v8, %v7218_v8 }
 0x2fc   : > { %v2348_v22 = vsel %vm439_vm0, %v7218_v8, 0.0 }
 0x2fd   : > { %v2335_v10 = vadd.f32 %v2334_v33, %v2333_v40  ;;  %v2442_v0 = vadd.f32 %v2441_v16, %v2440_v15  ;;  %v7236_v40 = vadd.f32 %v7001_v29, %v7007_v7  ;;  %v2395_v25 = vmul.f32 %v7227_v36, %v7227_v36 }
 0x2fe   : > { %v2449_v42 = vsel %vm439_vm0, %v2394_v4, 0.0  ;;  %v2350_v7 = vsel %vm439_vm0, %v7227_v36, 0.0 }
 0x2ff   : > { %v2337_v30 = vadd.f32 %v2336_v11, %v2335_v10  ;;  %v2444_v58 = vadd.f32 %v2443_v48, %v2442_v0  ;;  %v7245_v10 = vadd.f32 %v7001_v29, %v7081_v20  ;;  %v2396_v41 = vmul.f32 %v7236_v40, %v7236_v40 }
 0x300   : > { %v2451_v9 = vsel %vm439_vm0, %v2395_v25, 0.0  ;;  %v2352_v20 = vsel %vm439_vm0, %v7236_v40, 0.0 }
 0x301   : > { %v2339_v44 = vadd.f32 %v2338_v59, %v2337_v30  ;;  %v2446_v55 = vadd.f32 %v2445_v27, %v2444_v58  ;;  %v7254_v30 = vadd.f32 %v7001_v29, %v7137_v52  ;;  %v2397_v54 = vmul.f32 %v7245_v10, %v7245_v10 }
 0x302   : > { %v2453_v52 = vsel %vm439_vm0, %v2396_v41, 0.0  ;;  %v2354_v15 = vsel %vm439_vm0, %v7245_v10, 0.0 }
 0x303   : > { %v2341_v28 = vadd.f32 %v2340_v2, %v2339_v44  ;;  %v2448_v1 = vadd.f32 %v2447_v17, %v2446_v55  ;;  %v2356_v0 = vsel %vm439_vm0, %v7254_v30, 0.0 }
 0x305   : > { %v2343_v33 = vadd.f32 %v2342_v14, %v2341_v28  ;;  %v2450_v16 = vadd.f32 %v2449_v42, %v2448_v1  ;;  %v2398_v28 = vmul.f32 %v7254_v30, %v7254_v30 }
 0x307   : > { %v2345_v11 = vadd.f32 %v2344_v50, %v2343_v33  ;;  %v2452_v50 = vadd.f32 %v2451_v9, %v2450_v16  ;;  %v2457_v4 = vsel %vm439_vm0, %v2398_v28, 0.0 }
 0x309   : > { %v2347_v59 = vadd.f32 %v2346_v51, %v2345_v11  ;;  %v2454_v27 = vadd.f32 %v2453_v52, %v2452_v50 }
 0x30b   : > { %v2285_v61 = vpop.f32.mrb[58].mxu0  ;;  %v2349_v2 = vadd.f32 %v2348_v22, %v2347_v59 }
 0x30c   : > { %v2287_v5 = vpop.f32.mrb[59].mxu0  ;;  %v7262_v44 = vadd.f32 %v7001_v29, %v2285_v61  ;;  %v2455_v61 = vsel %vm439_vm0, %v2397_v54, 0.0 }
 0x30d   : > { %v2351_v14 = vadd.f32 %v2350_v7, %v2349_v2  ;;  %v2456_v17 = vadd.f32 %v2455_v61, %v2454_v27 }
 0x30e   : > { %v2399_v33 = vmul.f32 %v7262_v44, %v7262_v44  ;;  %v2358_v58 = vsel %vm439_vm0, %v7262_v44, 0.0 }
 0x30f   : > { %v2353_v57 = vadd.f32 %v2352_v20, %v2351_v14  ;;  %v2458_v59 = vadd.f32 %v2457_v4, %v2456_v17  ;;  %v2937_v17 = vld [vmem:[#allocation2 + $0x1] sm:$0xff] }
 0x310   : > { %v2459_v25 = vsel %vm439_vm0, %v2399_v33, 0.0  ;;  %3001 = vrot.lane.b32.xlu0 %v2937_v17, %s5713_s19 }
 0x311   : > { %v2355_v51 = vadd.f32 %v2354_v15, %v2353_v57  ;;  %v2460_v9 = vadd.f32 %v2459_v25, %v2458_v59  ;;  %v3129_v25 = vld [vmem:[#allocation2 + $0x2] sm:$0xff] }
 0x312   : > { %3193 = vrot.lane.b32.xlu1 %v3129_v25, %s5715_s29 }
 0x313   : > { %v2357_v22 = vadd.f32 %v2356_v0, %v2355_v51 }
 0x315   : > { %v2359_v42 = vadd.f32 %v2358_v58, %v2357_v22  ;;  %v2938_v22 = vld [vmem:[#allocation2 + $0x9] sm:$0xff] }
 0x316   : > { %v2290_v5 = vpop.f32.mrb[60].mxu0  ;;  %3003 = vrot.lane.b32.xlu0 %v2938_v22, %s5713_s19 }
 0x317   : > { %v2292_v24 = vpop.f32.mrb[61].mxu0  ;;  %v7270_v48 = vadd.f32 %v7001_v29, %v2290_v5 }
 0x319   : > { %v2400_v11 = vmul.f32 %v7270_v48, %v7270_v48  ;;  %v2360_v55 = vsel %vm439_vm0, %v7270_v48, 0.0 }
 0x31a   : > { %v2361_v20 = vadd.f32 %v2360_v55, %v2359_v42  ;;  %v3130_v55 = vld [vmem:[#allocation2 + $0xa] sm:$0xff] }
 0x31b   : > { %v2461_v41 = vsel %vm439_vm0, %v2400_v11, 0.0  ;;  %3195 = vrot.lane.b32.xlu0 %v3130_v55, %s5715_s29 }
 0x31c   : > { %v2462_v16 = vadd.f32 %v2461_v41, %v2460_v9 }
 0x320   : > { %v2295_v7 = vpop.f32.mrb[62].mxu0 }
 0x321   : > { %v7287_v1 = vadd.f32 %v7001_v29, %v2295_v7  ;;  %v2297_v2 = vpop.f32.mrb[63].mxu0 }
 0x322   : > { %v2553_v2 = vlaneseq }
 0x323   : > { %v2362_v54 = vsel %vm439_vm0, %v7287_v1, 0.0  ;;  %v2401_v5 = vmul.f32 %v7287_v1, %v7287_v1 }
 0x324   : > { %v2363_v14 = vadd.f32 %v2362_v54, %v2361_v20  ;;  %v7364_v20 = vshrl.u32 %v2553_v2, 7 }
 0x325   : > { %v2463_v24 = vsel %vm439_vm0, %v2401_v5, 0.0 }
 0x326   : > { %v2364_v52 = vrot.slane %v2363_v14, 4  ;;  %v2464_v15 = vadd.f32 %v2463_v24, %v2462_v16  ;;  %v2555_v5 = vsub.s32 0, %v7364_v20 }
 0x328   : > { %v2365_v28 = vadd.f32 %v2364_v52, %v2363_v14  ;;  %v2465_v50 = vrot.slane %v2464_v15, 4  ;;  %v2593_v14 = vsub.s32 1, %v7364_v20 }
 0x32a   : > { %v2366_v57 = vrot.slane %v2365_v28, 2  ;;  %v2466_v29 = vadd.f32 %v2465_v50, %v2464_v15 }
 0x32c   : > { %v2367_v61 = vadd.f32 %v2366_v57, %v2365_v28  ;;  %v2467_v0 = vrot.slane %v2466_v29, 2 }
 0x32e   : > { %v2368_v33 = vrot.slane %v2367_v61, 1  ;;  %v2468_v27 = vadd.f32 %v2467_v0, %v2466_v29 }
 0x330   : > { %v2469_v51 = vrot.slane %v2468_v27, 1  ;;  %v2369_v4 = vadd.f32 %v2368_v33, %v2367_v61 }
 0x332   : > { %v2470_v58 = vadd.f32 %v2469_v51, %v2468_v27 }
 0x334   : > { %v2472_v11 = vsel %vm9307_vm10, %v2369_v4, %v2470_v58 }
 0x335   : > { %5611 = vmatmul.mubr.msk.f32.vlgmr.msra.gmra.mrb[0].mxu1 %vm439_vm0, %v2472_v11 }
 0x408   : > { %v2544_v59 = vpop.f32.mrb[0].mxu1 }
 0x409   : > { %v2548_v42 = vmul.f32 %v2544_v59, %v2544_v59  ;;  %v5612_v7 = vpop.f32.mrb[1].mxu1  ;;  %v7369_v16 = vrot.slane %v2544_v59, %v2555_v5 }
 0x40b   : > { %v2550_v41 = vrot.slane %v2548_v42, 7  ;;  %v2557_v47 = vsub.f32 %v7011_v39, %v7369_v16  ;;  %v2558_v24 = vsub.f32 %v7005_v32, %v7369_v16  ;;  %v2559_v52 = vsub.f32 %v7015_v60, %v7369_v16 }
 0x40c   : > { %v2560_v28 = vsub.f32 %v7021_v31, %v7369_v16  ;;  %v2561_v50 = vsub.f32 %v7031_v35, %v7369_v16  ;;  %v2562_v57 = vsub.f32 %v7042_v56, %v7369_v16  ;;  %v2563_v29 = vsub.f32 %v7052_v21, %v7369_v16 }
 0x40d   : > { %v2552_v9 = vsub.f32 %v2544_v59, %v2550_v41  ;;  %v2564_v39 = vsub.f32 %v7061_v12, %v7369_v16  ;;  %v2565_v32 = vsub.f32 %v7070_v38, %v7369_v16  ;;  %v2566_v60 = vsub.f32 %v7079_v46, %v7369_v16 }
 0x40e   : > { %v2567_v31 = vsub.f32 %v7090_v62, %v7369_v16  ;;  %v2568_v35 = vsub.f32 %v7099_v6, %v7369_v16  ;;  %v2569_v56 = vsub.f32 %v7108_v19, %v7369_v16  ;;  %v2570_v21 = vsub.f32 %v7117_v26, %v7369_v16 }
 0x40f   : > { %v2589_v54 = vadd.f32 1e-05, %v2552_v9  ;;  %v2571_v12 = vsub.f32 %v7126_v37, %v7369_v16  ;;  %v2572_v46 = vsub.f32 %v7135_v63, %v7369_v16  ;;  %v2573_v62 = vsub.f32 %v7146_v34, %v7369_v16 }
 0x410   : > { %v2574_v6 = vsub.f32 %v7155_v45, %v7369_v16  ;;  %v2575_v19 = vsub.f32 %v7164_v49, %v7369_v16  ;;  %v2576_v26 = vsub.f32 %v7173_v13, %v7369_v16  ;;  %v2577_v37 = vsub.f32 %v7182_v18, %v7369_v16 }
 0x411   : > { %5699 = vrsqrt.f32 %v2589_v54  ;;  %v2578_v61 = vsub.f32 %v7191_v53, %v7369_v16  ;;  %v2579_v63 = vsub.f32 %v7200_v23, %v7369_v16  ;;  %v2580_v34 = vsub.f32 %v7209_v43, %v7369_v16 }
 0x412   : > { %v2581_v45 = vsub.f32 %v7218_v8, %v7369_v16  ;;  %v2582_v49 = vsub.f32 %v7227_v36, %v7369_v16  ;;  %v2583_v13 = vsub.f32 %v7236_v40, %v7369_v16  ;;  %v2584_v18 = vsub.f32 %v7245_v10, %v7369_v16 }
 0x413   : > { %v2585_v53 = vsub.f32 %v7254_v30, %v7369_v16  ;;  %v2586_v23 = vsub.f32 %v7262_v44, %v7369_v16  ;;  %v2587_v43 = vsub.f32 %v7270_v48, %v7369_v16  ;;  %v2588_v8 = vsub.f32 %v7287_v1, %v7369_v16  ;;  %v5558_v1 = vld [vmem:[%s9299_s4] ss:$0 sm:$0xff] }
 0x41b   : > { %v5700_v15 = vpop.eup %5699 }
 0x41c   : > { %v2594_v38 = vrot.slane %v5700_v15, %v2593_v14 }
 0x41e   : > { %v2595_v0 = vmul.f32 %v2594_v38, %v2557_v47  ;;  %v2596_v36 = vmul.f32 %v2594_v38, %v2558_v24  ;;  %v2597_v33 = vmul.f32 %v2594_v38, %v2559_v52  ;;  %v2598_v27 = vmul.f32 %v2594_v38, %v2560_v28 }
 0x41f   : > { %v2599_v40 = vmul.f32 %v2594_v38, %v2561_v50  ;;  %v2600_v51 = vmul.f32 %v2594_v38, %v2562_v57  ;;  %v2601_v4 = vmul.f32 %v2594_v38, %v2563_v29  ;;  %v2602_v10 = vmul.f32 %v2594_v38, %v2564_v39 }
 0x420   : > { %v2603_v58 = vmul.f32 %v2594_v38, %v2565_v32  ;;  %v2604_v11 = vmul.f32 %v2594_v38, %v2566_v60  ;;  %v2605_v30 = vmul.f32 %v2594_v38, %v2567_v31  ;;  %v2606_v17 = vmul.f32 %v2594_v38, %v2568_v35 }
 0x421   : > { %v2607_v22 = vmul.f32 %v2594_v38, %v2569_v56  ;;  %v2608_v44 = vmul.f32 %v2594_v38, %v2570_v21  ;;  %v2609_v25 = vmul.f32 %v2594_v38, %v2571_v12  ;;  %v2610_v55 = vmul.f32 %v2594_v38, %v2572_v46 }
 0x422   : > { %v2611_v48 = vmul.f32 %v2594_v38, %v2573_v62  ;;  %v2612_v59 = vmul.f32 %v2594_v38, %v2574_v6  ;;  %v2613_v42 = vmul.f32 %v2594_v38, %v2575_v19  ;;  %v2614_v7 = vmul.f32 %v2594_v38, %v2576_v26 }
 0x423   : > { %v2615_v41 = vmul.f32 %v2594_v38, %v2577_v37  ;;  %v2616_v2 = vmul.f32 %v2594_v38, %v2578_v61  ;;  %v2617_v9 = vmul.f32 %v2594_v38, %v2579_v63  ;;  %v2618_v54 = vmul.f32 %v2594_v38, %v2580_v34  ;;  %v2873_v37 = vld [vmem:[#allocation2] sm:$0xff]  ;;  %v3002_v61 = vpop.permute.xlu0 %3001 }
 0x424   : > { %v2619_v16 = vmul.f32 %v2594_v38, %v2581_v45  ;;  %v2620_v47 = vmul.f32 %v2594_v38, %v2582_v49  ;;  %v2621_v24 = vmul.f32 %v2594_v38, %v2583_v13  ;;  %v2622_v52 = vmul.f32 %v2594_v38, %v2584_v18  ;;  %2905 = vst.msk [vmem:[#allocation3] sm:$0xff] %vm439_vm0, %v2873_v37  ;;  %v5559_v49 = vld [vmem:[%s9300_s5] ss:$0 sm:$0xff]  ;;  %v4413_v37 = vld [vmem:[%s9301_s6 + $0x18] sm:$0xff] }
 0x425   : > { %v2623_v15 = vmul.f32 %v2594_v38, %v2585_v53  ;;  %v2624_v28 = vmul.f32 %v2594_v38, %v2586_v23  ;;  %v2625_v50 = vmul.f32 %v2594_v38, %v2587_v43  ;;  %v2626_v57 = vmul.f32 %v2594_v38, %v2588_v8  ;;  %3097 = vst.msk [vmem:[#allocation3] sm:$0xff] %vm9308_vm1, %v3002_v61 }
 0x426   : > { %v2633_v29 = vmul.f32 %v5558_v1, %v2595_v0  ;;  %v2634_v39 = vmul.f32 %v5558_v1, %v2596_v36  ;;  %v2635_v32 = vmul.f32 %v5558_v1, %v2597_v33  ;;  %v2636_v60 = vmul.f32 %v5558_v1, %v2598_v27 }
 0x427   : > { %v2637_v31 = vmul.f32 %v5558_v1, %v2599_v40  ;;  %v2638_v35 = vmul.f32 %v5558_v1, %v2600_v51  ;;  %v2639_v56 = vmul.f32 %v5558_v1, %v2601_v4  ;;  %v2640_v21 = vmul.f32 %v5558_v1, %v2602_v10  ;;  %v2874_v4 = vld [vmem:[#allocation2 + $0x8] sm:$0xff] }
 0x428   : > { %v2641_v12 = vmul.f32 %v5558_v1, %v2603_v58  ;;  %v2642_v46 = vmul.f32 %v5558_v1, %v2604_v11  ;;  %v2643_v62 = vmul.f32 %v5558_v1, %v2605_v30  ;;  %v2644_v6 = vmul.f32 %v5558_v1, %v2606_v17  ;;  %v3004_v17 = vpop.permute.xlu0 %3003  ;;  %2906 = vst.msk [vmem:[#allocation3 + $0x10] sm:$0xff] %vm439_vm0, %v2874_v4 }
 0x429   : > { %v2645_v19 = vmul.f32 %v5558_v1, %v2607_v22  ;;  %v2646_v26 = vmul.f32 %v5558_v1, %v2608_v44  ;;  %v2647_v63 = vmul.f32 %v5558_v1, %v2609_v25  ;;  %v2648_v34 = vmul.f32 %v5558_v1, %v2610_v55  ;;  %3098 = vst.msk [vmem:[#allocation3 + $0x10] sm:$0xff] %vm9308_vm1, %v3004_v17 }
 0x42a   : > { %v2649_v45 = vmul.f32 %v5558_v1, %v2611_v48  ;;  %v2650_v38 = vmul.f32 %v5558_v1, %v2612_v59  ;;  %v2651_v13 = vmul.f32 %v5558_v1, %v2613_v42  ;;  %v2652_v18 = vmul.f32 %v5558_v1, %v2614_v7 }
 0x42b   : > { %v2653_v53 = vmul.f32 %v5558_v1, %v2615_v41  ;;  %v2654_v23 = vmul.f32 %v5558_v1, %v2616_v2  ;;  %v2655_v43 = vmul.f32 %v5558_v1, %v2617_v9  ;;  %v2656_v8 = vmul.f32 %v5558_v1, %v2618_v54  ;;  %v3194_v54 = vpop.permute.xlu1 %3193 }
 0x42c   : > { %v2657_v0 = vmul.f32 %v5558_v1, %v2619_v16  ;;  %v2658_v36 = vmul.f32 %v5558_v1, %v2620_v47  ;;  %v2659_v33 = vmul.f32 %v5558_v1, %v2621_v24  ;;  %v2660_v27 = vmul.f32 %v5558_v1, %v2622_v52  ;;  %3289 = vst.msk [vmem:[#allocation3] sm:$0xff] %vm9314_vm2, %v3194_v54 }
 0x42d   : > { %v2661_v40 = vmul.f32 %v5558_v1, %v2623_v15  ;;  %v2662_v51 = vmul.f32 %v5558_v1, %v2624_v28  ;;  %v2663_v10 = vmul.f32 %v5558_v1, %v2625_v50  ;;  %v2664_v58 = vmul.f32 %v5558_v1, %v2626_v57 }
 0x42e   : > { %v7446_v11 = vadd.f32 %v5559_v49, %v2633_v29  ;;  %v7448_v30 = vadd.f32 %v5559_v49, %v2634_v39  ;;  %v7451_v22 = vadd.f32 %v5559_v49, %v2635_v32  ;;  %v7453_v44 = vadd.f32 %v5559_v49, %v2636_v60 }
 0x42f   : > { %v7455_v25 = vadd.f32 %v5559_v49, %v2637_v31  ;;  %v7457_v55 = vadd.f32 %v5559_v49, %v2638_v35  ;;  %v7460_v48 = vadd.f32 %v5559_v49, %v2639_v56  ;;  %v7462_v59 = vadd.f32 %v5559_v49, %v2640_v21 }
 0x430   : > { %v7464_v1 = vadd.f32 %v5559_v49, %v2641_v12  ;;  %v7466_v42 = vadd.f32 %v5559_v49, %v2642_v46  ;;  %v7468_v7 = vadd.f32 %v5559_v49, %v2643_v62  ;;  %v7470_v41 = vadd.f32 %v5559_v49, %v2644_v6  ;;  %v4410_v62 = vld [vmem:[%s9301_s6] sm:$0xff]  ;;  %v4411_v6 = vld [vmem:[%s9301_s6 + $0x8] sm:$0xff] }
 0x431   : > { %v7472_v2 = vadd.f32 %v5559_v49, %v2645_v19  ;;  %v7474_v9 = vadd.f32 %v5559_v49, %v2646_v26  ;;  %v7476_v16 = vadd.f32 %v5559_v49, %v2647_v63  ;;  %v7478_v47 = vadd.f32 %v5559_v49, %v2648_v34  ;;  %v3196_v19 = vpop.permute.xlu0 %3195  ;;  %v7528_v26 = vld [vmem:[%s9301_s6 + $0x10] sm:$0xff] }
 0x432   : > { %v7480_v24 = vadd.f32 %v5559_v49, %v2649_v45  ;;  %v7482_v52 = vadd.f32 %v5559_v49, %v2650_v38  ;;  %v7485_v15 = vadd.f32 %v5559_v49, %v2651_v13  ;;  %v7487_v28 = vadd.f32 %v5559_v49, %v2652_v18  ;;  %3290 = vst.msk [vmem:[#allocation3 + $0x10] sm:$0xff] %vm9314_vm2, %v3196_v19 }
 0x433   : > { %v7489_v50 = vadd.f32 %v5559_v49, %v2653_v53  ;;  %v7491_v57 = vadd.f32 %v5559_v49, %v2654_v23  ;;  %v7493_v29 = vadd.f32 %v5559_v49, %v2655_v43  ;;  %v7495_v39 = vadd.f32 %v5559_v49, %v2656_v8 }
 0x434   : > { %v7497_v32 = vadd.f32 %v5559_v49, %v2657_v0  ;;  %v7499_v60 = vadd.f32 %v5559_v49, %v2658_v36  ;;  %v7501_v31 = vadd.f32 %v5559_v49, %v2659_v33  ;;  %v7503_v35 = vadd.f32 %v5559_v49, %v2660_v27 }
 0x435   : > { %v7505_v56 = vadd.f32 %v5559_v49, %v2661_v40  ;;  %v7507_v21 = vadd.f32 %v5559_v49, %v2662_v51  ;;  %v7509_v12 = vadd.f32 %v5559_v49, %v2663_v10  ;;  %v7511_v46 = vadd.f32 %v5559_v49, %v2664_v58 }
 0x436   : > { %vm2703_vm12 = vcmp.gt.f32.partialorder %v7446_v11, 0.0  ;;  %vm2704_vm13 = vcmp.gt.f32.partialorder %v7448_v30, 0.0  ;;  %vm2705_vm14 = vcmp.gt.f32.partialorder %v7451_v22, 0.0  ;;  %vm2706_vm15 = vcmp.gt.f32.partialorder %v7453_v44, 0.0 }
 0x437   : > { %vm2707_vm8 = vcmp.gt.f32.partialorder %v7455_v25, 0.0  ;;  %vm2708_vm9 = vcmp.gt.f32.partialorder %v7457_v55, 0.0  ;;  %vm2709_vm11 = vcmp.gt.f32.partialorder %v7460_v48, 0.0  ;;  %vm2710_vm10 = vcmp.gt.f32.partialorder %v7462_v59, 0.0 }
 0x438   : > { %vm2714_vm5 = vcmp.gt.f32.partialorder %v7470_v41, 0.0  ;;  %v2735_v61 = vmul.f32 0.2, %v7446_v11  ;;  %v2736_v63 = vmul.f32 0.2, %v7448_v30  ;;  %v5651_v45 = vpack.c.bf16 %v4411_v6, %v4410_v62 }
 0x439   : > { %v2737_v34 = vmul.f32 0.2, %v7451_v22  ;;  %vm2719_vm7 = vcmp.gt.f32.partialorder %v7480_v24, 0.0  ;;  %v2738_v38 = vmul.f32 0.2, %v7453_v44  ;;  %v5654_v18 = vpack.c.bf16 %v4413_v37, %v7528_v26 }
 0x43a   : > { %v2739_v49 = vmul.f32 0.2, %v7455_v25  ;;  %v2740_v13 = vmul.f32 0.2, %v7457_v55  ;;  %vm2724_vm1 = vcmp.gt.f32.partialorder %v7491_v57, 0.0  ;;  %v2767_v8 = vsel %vm2703_vm12, %v7446_v11, %v2735_v61  ;;  %5652 = vmatpush1.bf16.msra.mxu1 %v5651_v45 }
 0x43b   : > { %v2741_v53 = vmul.f32 0.2, %v7460_v48  ;;  %v2742_v23 = vmul.f32 0.2, %v7462_v59  ;;  %v2743_v43 = vmul.f32 0.2, %v7464_v1  ;;  %v2768_v27 = vsel %vm2704_vm13, %v7448_v30, %v2736_v63  ;;  %5653 = vmatprep.subr.bf16.mxu1 %v5711_v3 }
 0x43c   : > { %vm2725_vm6 = vcmp.gt.f32.partialorder %v7493_v29, 0.0  ;;  %v2744_v0 = vmul.f32 0.2, %v7466_v42  ;;  %v2745_v36 = vmul.f32 0.2, %v7468_v7  ;;  %2841 = vst.msk [vmem:[#allocation2 + $0x19] sm:$0xff] %vm439_vm0, %v2767_v8  ;;  %v2769_v10 = vsel %vm2705_vm14, %v7451_v22, %v2737_v34 }
 0x43d   : > { %v2746_v33 = vmul.f32 0.2, %v7470_v41  ;;  %vm2729_vm12 = vcmp.gt.f32.partialorder %v7501_v31, 0.0  ;;  %vm2731_vm2 = vcmp.gt.f32.partialorder %v7505_v56, 0.0  ;;  %vm2732_vm3 = vcmp.gt.f32.partialorder %v7507_v21, 0.0  ;;  %2842 = vst.msk [vmem:[#allocation2 + $0x21] sm:$0xff] %vm439_vm0, %v2768_v27 }
 0x43e   : > { %v2747_v40 = vmul.f32 0.2, %v7472_v2  ;;  %v2748_v51 = vmul.f32 0.2, %v7474_v9  ;;  %v2749_v4 = vmul.f32 0.2, %v7476_v16  ;;  %v2770_v17 = vsel %vm2706_vm15, %v7453_v44, %v2738_v38  ;;  %5655 = vmatpush1.bf16.msra.mxu1 %v5654_v18 }
 0x43f   : > { %vm2733_vm13 = vcmp.gt.f32.partialorder %v7509_v12, 0.0  ;;  %vm2734_vm4 = vcmp.gt.f32.partialorder %v7511_v46, 0.0  ;;  %v2750_v58 = vmul.f32 0.2, %v7478_v47  ;;  %v2751_v11 = vmul.f32 0.2, %v7480_v24  ;;  %5656 = vmatprep.subr.bf16.mxu1 %v5711_v3 }
 0x440   : > { %v2752_v30 = vmul.f32 0.2, %v7482_v52  ;;  %2843 = vst.msk [vmem:[#allocation2 + $0x31] sm:$0xff] %vm439_vm0, %v2769_v10  ;;  %v2753_v22 = vmul.f32 0.2, %v7485_v15  ;;  %v2771_v6 = vsel %vm2707_vm8, %v7455_v25, %v2739_v49  ;;  %2844 = vst.msk [vmem:[#allocation2 + $0x39] sm:$0xff] %vm439_vm0, %v2770_v17  ;;  %v2772_v37 = vsel %vm2708_vm9, %v7457_v55, %v2740_v13 }
 0x441   : > { %v2754_v54 = vmul.f32 0.2, %v7487_v28  ;;  %v2755_v62 = vmul.f32 0.2, %v7489_v50  ;;  %v2756_v19 = vmul.f32 0.2, %v7491_v57  ;;  %v2773_v34 = vsel %vm2709_vm11, %v7460_v48, %v2741_v53 }
 0x442   : > { %v2757_v26 = vmul.f32 0.2, %v7493_v29  ;;  %v2758_v44 = vmul.f32 0.2, %v7495_v39  ;;  %2845 = vst.msk [vmem:[#allocation2 + $0x49] sm:$0xff] %vm439_vm0, %v2771_v6  ;;  %2846 = vst.msk [vmem:[#allocation2 + $0x51] sm:$0xff] %vm439_vm0, %v2772_v37  ;;  %v2774_v49 = vsel %vm2710_vm10, %v7462_v59, %v2742_v23  ;;  %v2778_v27 = vsel %vm2714_vm5, %v7470_v41, %v2746_v33 }
 0x443   : > { %v2759_v61 = vmul.f32 0.2, %v7497_v32  ;;  %v2760_v25 = vmul.f32 0.2, %v7499_v60  ;;  %v7613_v63 = vmul.f32 0.2, %v7501_v31  ;;  %v2788_v33 = vsel %vm2724_vm1, %v7491_v57, %v2756_v19 }
 0x444   : > { %v2762_v45 = vmul.f32 0.2, %v7503_v35  ;;  %v2763_v55 = vmul.f32 0.2, %v7505_v56  ;;  %v2764_v38 = vmul.f32 0.2, %v7507_v21 }
 0x445   : > { %2847 = vst.msk [vmem:[#allocation2 + $0x61] sm:$0xff] %vm439_vm0, %v2773_v34  ;;  %v7627_v13 = vmul.f32 0.2, %v7509_v12  ;;  %v7630_v18 = vmul.f32 0.2, %v7511_v46  ;;  %vm9315_vm14 = vcmp.gt.f32.partialorder %v7464_v1, 0.0 }
 0x446   : > { %v2775_v48 = vsel %vm9315_vm14, %v7464_v1, %v2743_v43  ;;  %vm9316_vm15 = vcmp.gt.f32.partialorder %v7466_v42, 0.0  ;;  %v7638_v8 = vld [vmem:[#allocation2 + $0x19] sm:$0xff]  ;;  %2848 = vst.msk [vmem:[#allocation2 + $0x69] sm:$0xff] %vm439_vm0, %v2774_v49  ;;  %vm9317_vm10 = vcmp.gt.f32.partialorder %v7468_v7, 0.0  ;;  %vm9318_vm8 = vcmp.gt.f32.partialorder %v7472_v2, 0.0  ;;  %2852 = vst.msk [vmem:[#allocation2 + $0x99] sm:$0xff] %vm439_vm0, %v2778_v27 }
 0x447   : > { %v2776_v53 = vsel %vm9316_vm15, %v7466_v42, %v2744_v0  ;;  %v3321_v59 = vld [vmem:[#allocation2 + $0x18] sm:$0xff]  ;;  %v2777_v23 = vsel %vm9317_vm10, %v7468_v7, %v2745_v36  ;;  %v2779_v1 = vsel %vm9318_vm8, %v7472_v2, %v2747_v40  ;;  %vm9319_vm9 = vcmp.gt.f32.partialorder %v7474_v9, 0.0  ;;  %3577 = vrot.lane.b32.xlu1 %v7638_v8, %s5714_s28  ;;  %2849 = vst.msk [vmem:[#allocation2 + $0x79] sm:$0xff] %vm439_vm0, %v2775_v48  ;;  %v3322_v7 = vld [vmem:[#allocation2 + $0x20] sm:$0xff] }
 0x448   : > { %v2780_v42 = vsel %vm9319_vm9, %v7474_v9, %v2748_v51  ;;  %2850 = vst.msk [vmem:[#allocation2 + $0x81] sm:$0xff] %vm439_vm0, %v2776_v53  ;;  %2907 = vst.msk [vmem:[#allocation3 + $0x20] sm:$0xff] %vm439_vm0, %v3321_v59  ;;  %vm9320_vm5 = vcmp.gt.f32.partialorder %v7476_v16, 0.0  ;;  %vm9321_vm11 = vcmp.gt.f32.partialorder %v7478_v47, 0.0  ;;  %v2783_v9 = vsel %vm2719_vm7, %v7480_v24, %v2751_v11  ;;  %3385 = vrot.lane.b32.xlu0 %v3321_v59, %s5712_s16  ;;  %v4415_v24 = vld [vmem:[%s9301_s6 + $0x28] sm:$0xff]  ;;  %v7702_v40 = vld [vmem:[#allocation2 + $0x38] sm:$0xff] }
 0x449   : > { %v2781_v41 = vsel %vm9320_vm5, %v7476_v16, %v2749_v4  ;;  %v2782_v2 = vsel %vm9321_vm11, %v7478_v47, %v2750_v58  ;;  %vm9322_vm14 = vcmp.gt.f32.partialorder %v7482_v52, 0.0  ;;  %2851 = vst.msk [vmem:[#allocation2 + $0x91] sm:$0xff] %vm439_vm0, %v2777_v23  ;;  %2853 = vst.msk [vmem:[#allocation2 + $0xa9] sm:$0xff] %vm439_vm0, %v2779_v1  ;;  %v7675_v16 = vld [vmem:[#allocation2 + $0x30] sm:$0xff]  ;;  %v4414_v47 = vld [vmem:[%s9301_s6 + $0x20] sm:$0xff]  ;;  %vm9323_vm7 = vcmp.gt.f32.partialorder %v7485_v15, 0.0 }
 0x44a   : > { %v2784_v43 = vsel %vm9322_vm14, %v7482_v52, %v2752_v30  ;;  %2854 = vst.msk [vmem:[#allocation2 + $0xb1] sm:$0xff] %vm439_vm0, %v2780_v42  ;;  %2908 = vst.msk [vmem:[#allocation3 + $0x30] sm:$0xff] %vm439_vm0, %v3322_v7  ;;  %v2785_v52 = vsel %vm9323_vm7, %v7485_v15, %v2753_v22  ;;  %vm9324_vm15 = vcmp.gt.f32.partialorder %v7487_v28, 0.0  ;;  %vm9325_vm10 = vcmp.gt.f32.partialorder %v7489_v50, 0.0  ;;  %v7700_v15 = vld [vmem:[#allocation2 + $0x32] sm:$0xff]  ;;  %v4418_v37 = vld [vmem:[%s9301_s6 + $0x40] sm:$0xff] }
 0x44b   : > { %v2786_v0 = vsel %vm9324_vm15, %v7487_v28, %v2754_v54  ;;  %v2787_v36 = vsel %vm9325_vm10, %v7489_v50, %v2755_v62  ;;  %2855 = vst.msk [vmem:[#allocation2 + $0xc1] sm:$0xff] %vm439_vm0, %v2781_v41  ;;  %2856 = vst.msk [vmem:[#allocation2 + $0xc9] sm:$0xff] %vm439_vm0, %v2782_v2  ;;  %v7707_v28 = vld [vmem:[%s9301_s6 + $0x30] sm:$0xff]  ;;  %v2789_v50 = vsel %vm2725_vm6, %v7493_v29, %v2757_v26  ;;  %vm9326_vm1 = vcmp.gt.f32.partialorder %v7495_v39, 0.0  ;;  %v7727_v29 = vld [vmem:[#allocation2 + $0x1a] sm:$0xff] }
 0x44c   : > { %2857 = vst.msk [vmem:[#allocation2 + $0xd9] sm:$0xff] %vm439_vm0, %v2783_v9  ;;  %2858 = vst.msk [vmem:[#allocation2 + $0xe1] sm:$0xff] %vm439_vm0, %v2784_v43  ;;  %v2790_v57 = vsel %vm9326_vm1, %v7495_v39, %v2758_v44  ;;  %vm9327_vm8 = vcmp.gt.f32.partialorder %v7497_v32, 0.0  ;;  %vm9328_vm9 = vcmp.gt.f32.partialorder %v7499_v60, 0.0  ;;  %v7731_v39 = vld [vmem:[#allocation2 + $0x48] sm:$0xff]  ;;  %vm9329_vm6 = vcmp.gt.f32.partialorder %v7503_v35, 0.0  ;;  %3769 = vrot.lane.b32.xlu1 %v7727_v29, %s5716_s13  ;;  %3387 = vrot.lane.b32.xlu0 %v3322_v7, %s5712_s16 }
 0x44d   : > { %2909 = vst.msk [vmem:[#allocation3 + $0x40] sm:$0xff] %vm439_vm0, %v7675_v16  ;;  %v2791_v51 = vsel %vm9327_vm8, %v7497_v32, %v2759_v61  ;;  %v2792_v4 = vsel %vm9328_vm9, %v7499_v60, %v2760_v25  ;;  %2859 = vst.msk [vmem:[#allocation2 + $0xf1] sm:$0xff] %vm439_vm0, %v2785_v52  ;;  %v7733_v32 = vld [vmem:[#allocation2 + $0x3a] sm:$0xff]  ;;  %v2793_v60 = vsel %vm2729_vm12, %v7501_v31, %v7613_v63  ;;  %v7756_v31 = vld [vmem:[#allocation2 + $0x50] sm:$0xff]  ;;  %vm9336_vm11 = vcmask 1048448  }
 0x44e   : > { %2860 = vst.msk [vmem:[#allocation2 + $0xf9] sm:$0xff] %vm439_vm0, %v2786_v0  ;;  %2861 = vst.msk [vmem:[#allocation2 + $0x109] sm:$0xff] %vm439_vm0, %v2787_v36  ;;  %v2794_v10 = vsel %vm9329_vm6, %v7503_v35, %v2762_v45  ;;  %v2795_v58 = vsel %vm2731_vm2, %v7505_v56, %v2763_v55  ;;  %v2796_v11 = vsel %vm2732_vm3, %v7507_v21, %v2764_v38  ;;  %v7758_v35 = vld [vmem:[#allocation2 + $0x4a] sm:$0xff]  ;;  %v4417_v56 = vld [vmem:[%s9301_s6 + $0x38] sm:$0xff]  ;;  %vm9330_vm2 = vcmask 523648  }
 0x44f   : > { %2862 = vst.msk [vmem:[#allocation2 + $0x111] sm:$0xff] %vm439_vm0, %v2788_v33  ;;  %4314 = vst.msk [vmem:[#allocation3 + $0x8] sm:$0xff] %vm439_vm0, %v7700_v15  ;;  %v2797_v21 = vsel %vm2733_vm13, %v7509_v12, %v7627_v13  ;;  %v2798_v30 = vsel %vm2734_vm4, %v7511_v46, %v7630_v18  ;;  %v7780_v17 = vld [vmem:[#allocation2 + $0x60] sm:$0xff]  ;;  %v7782_v22 = vld [vmem:[#allocation2 + $0x52] sm:$0xff]  ;;  %v5657_v12 = vpack.c.bf16 %v4415_v24, %v4414_v47  ;;  %vm9331_vm3 = vcmask 654848  }
 0x450   : > { %2910 = vst.msk [vmem:[#allocation3 + $0x50] sm:$0xff] %vm439_vm0, %v7702_v40  ;;  %2863 = vst.msk [vmem:[#allocation2 + $0x121] sm:$0xff] %vm439_vm0, %v2789_v50  ;;  %v7790_v46 = vld [vmem:[#allocation2 + $0x68] sm:$0xff]  ;;  %v7798_v62 = vld [vmem:[#allocation2 + $0x78] sm:$0xff]  ;;  %v5660_v19 = vpack.c.bf16 %v4417_v56, %v7707_v28  ;;  %3962 = vrot.lane.b32.xlu1 %v7675_v16, %s5717_s21  ;;  %vm9332_vm4 = vcmask 786048   ;;  %vm9334_vm13 = vcmask 917248  }
 0x451   : > { %2864 = vst.msk [vmem:[#allocation2 + $0x129] sm:$0xff] %vm439_vm0, %v2790_v57  ;;  %2865 = vst.msk [vmem:[#allocation2 + $0x139] sm:$0xff] %vm439_vm0, %v2791_v51  ;;  %v7792_v54 = vld [vmem:[#allocation2 + $0x62] sm:$0xff]  ;;  %v7800_v6 = vld [vmem:[#allocation2 + $0x6a] sm:$0xff]  ;;  %5658 = vmatpush1.bf16.msra.mxu1 %v5657_v12  ;;  %vm9338_vm7 = vcmask 261248   ;;  %vm9340_vm10 = vcmask 392448  }
 0x452   : > { %2866 = vst.msk [vmem:[#allocation2 + $0x141] sm:$0xff] %vm439_vm0, %v2792_v4  ;;  %4315 = vst.msk [vmem:[#allocation3 + $0x18] sm:$0xff] %vm439_vm0, %v7733_v32  ;;  %v7809_v26 = vld [vmem:[#allocation2 + $0x21] sm:$0xff]  ;;  %5659 = vmatprep.subr.bf16.mxu1 %v5711_v3  ;;  %v7830_v34 = vld [vmem:[#allocation2 + $0x90] sm:$0xff] }
 0x453   : > { %2911 = vst.msk [vmem:[#allocation3 + $0x60] sm:$0xff] %vm439_vm0, %v7731_v39  ;;  %2867 = vst.msk [vmem:[#allocation2 + $0x151] sm:$0xff] %vm439_vm0, %v2793_v60  ;;  %v7811_v44 = vld [vmem:[#allocation2 + $0x80] sm:$0xff]  ;;  %3579 = vrot.lane.b32.xlu0 %v7809_v26, %s5714_s28  ;;  %v4419_v61 = vld [vmem:[%s9301_s6 + $0x48] sm:$0xff] }
 0x454   : > { %2868 = vst.msk [vmem:[#allocation2 + $0x159] sm:$0xff] %vm439_vm0, %v2794_v10  ;;  %2869 = vst.msk [vmem:[#allocation2 + $0x169] sm:$0xff] %vm439_vm0, %v2795_v58  ;;  %v7826_v25 = vld [vmem:[#allocation2 + $0x7a] sm:$0xff]  ;;  %v7835_v45 = vld [vmem:[#allocation2 + $0x31] sm:$0xff]  ;;  %v5663_v55 = vpack.c.bf16 %v4419_v61, %v4418_v37 }
 0x455   : > { %2870 = vst.msk [vmem:[#allocation2 + $0x171] sm:$0xff] %vm439_vm0, %v2796_v11  ;;  %4316 = vst.msk [vmem:[#allocation3 + $0x28] sm:$0xff] %vm439_vm0, %v7758_v35  ;;  %5661 = vmatpush1.bf16.msra.mxu1 %v5660_v19  ;;  %v7837_v38 = vld [vmem:[#allocation2 + $0x82] sm:$0xff]  ;;  %4154 = vrot.lane.b32.xlu1 %v7835_v45, %s5718_s26  ;;  %v4420_v13 = vld [vmem:[%s9301_s6 + $0x50] sm:$0xff] }
 0x456   : > { %2912 = vst.msk [vmem:[#allocation3 + $0x70] sm:$0xff] %vm439_vm0, %v7756_v31  ;;  %2871 = vst.msk [vmem:[#allocation2 + $0x181] sm:$0xff] %vm439_vm0, %v2797_v21  ;;  %v4347_v63 = vld [vmem:[#allocation3 + $0x8] sm:$0xff]  ;;  %v7843_v49 = vld [vmem:[#allocation2 + $0x22] sm:$0xff]  ;;  %5662 = vmatprep.subr.bf16.mxu1 %v5711_v3 }
 0x457   : > { %2872 = vst.msk [vmem:[#allocation2 + $0x189] sm:$0xff] %vm439_vm0, %v2798_v30  ;;  %4317 = vst.msk [vmem:[#allocation3 + $0x38] sm:$0xff] %vm439_vm0, %v7782_v22  ;;  %5561 = vmatprep.mubr.msk.f32.mxu1 %vm439_vm0, %v4347_v63  ;;  %v4421_v18 = vld [vmem:[%s9301_s6 + $0x58] sm:$0xff]  ;;  %3771 = vrot.lane.b32.xlu0 %v7843_v49, %s5716_s13  ;;  %v7862_v23 = vld [vmem:[#allocation2 + $0xa8] sm:$0xff] }
 0x458   : > { %2913 = vst.msk [vmem:[#allocation3 + $0x80] sm:$0xff] %vm439_vm0, %v7780_v17  ;;  %4318 = vst.msk [vmem:[#allocation3 + $0x48] sm:$0xff] %vm439_vm0, %v7792_v54  ;;  %v7856_v48 = vld [vmem:[#allocation2 + $0x98] sm:$0xff]  ;;  %v5666_v53 = vpack.c.bf16 %v4421_v18, %v4420_v13  ;;  %v4422_v1 = vld [vmem:[%s9301_s6 + $0x60] sm:$0xff] }
 0x459   : > { %2914 = vst.msk [vmem:[#allocation3 + $0x90] sm:$0xff] %vm439_vm0, %v7790_v46  ;;  %4319 = vst.msk [vmem:[#allocation3 + $0x58] sm:$0xff] %vm439_vm0, %v7800_v6  ;;  %5664 = vmatpush1.bf16.msra.mxu1 %v5663_v55  ;;  %v7860_v59 = vld [vmem:[#allocation2 + $0x92] sm:$0xff]  ;;  %v7864_v27 = vld [vmem:[#allocation2 + $0x9a] sm:$0xff]  ;;  %3005 = vrot.lane.b32.xlu1 %v7638_v8, %s5713_s19 }
 0x45a   : > { %2915 = vst.msk [vmem:[#allocation3 + $0xa0] sm:$0xff] %vm439_vm0, %v7798_v62  ;;  %2916 = vst.msk [vmem:[#allocation3 + $0xb0] sm:$0xff] %vm439_vm0, %v7811_v44  ;;  %5665 = vmatprep.subr.bf16.mxu1 %v5711_v3  ;;  %v4423_v42 = vld [vmem:[%s9301_s6 + $0x68] sm:$0xff]  ;;  %v7875_v7 = vld [vmem:[#allocation2 + $0xb0] sm:$0xff] }
 0x45b   : > { %4320 = vst.msk [vmem:[#allocation3 + $0x68] sm:$0xff] %vm439_vm0, %v7826_v25  ;;  %2917 = vst.msk [vmem:[#allocation3 + $0xc0] sm:$0xff] %vm439_vm0, %v7830_v34  ;;  %3964 = vrot.lane.b32.xlu0 %v7702_v40, %s5717_s21  ;;  %v7885_v8 = vld [vmem:[#allocation2 + $0xaa] sm:$0xff]  ;;  %v7889_v41 = vld [vmem:[#allocation2 + $0xc0] sm:$0xff]  ;;  %v5669_v43 = vpack.c.bf16 %v4423_v42, %v4422_v1 }
 0x45c   : > { %4321 = vst.msk [vmem:[#allocation3 + $0x78] sm:$0xff] %vm439_vm0, %v7837_v38  ;;  %2918 = vst.msk [vmem:[#allocation3 + $0xd0] sm:$0xff] %vm439_vm0, %v7856_v48  ;;  %v7891_v2 = vld [vmem:[#allocation2 + $0xb2] sm:$0xff]  ;;  %v7900_v24 = vld [vmem:[#allocation2 + $0xc8] sm:$0xff] }
 0x45d   : > { %4322 = vst.msk [vmem:[#allocation3 + $0x88] sm:$0xff] %vm439_vm0, %v7860_v59  ;;  %4323 = vst.msk [vmem:[#allocation3 + $0x98] sm:$0xff] %vm439_vm0, %v7864_v27  ;;  %v7895_v9 = vld [vmem:[#allocation2 + $0x39] sm:$0xff]  ;;  %5667 = vmatpush1.bf16.msra.mxu1 %v5666_v53  ;;  %v4424_v47 = vld [vmem:[%s9301_s6 + $0x70] sm:$0xff]  ;;  %3197 = vrot.lane.b32.xlu1 %v7727_v29, %s5715_s29 }
 0x45e   : > { %2919 = vst.msk [vmem:[#allocation3 + $0xe0] sm:$0xff] %vm439_vm0, %v7862_v23  ;;  %2920 = vst.msk [vmem:[#allocation3 + $0xf0] sm:$0xff] %vm439_vm0, %v7875_v7  ;;  %5668 = vmatprep.subr.bf16.mxu1 %v5711_v3  ;;  %v4425_v52 = vld [vmem:[%s9301_s6 + $0x78] sm:$0xff]  ;;  %v7912_v0 = vld [vmem:[#allocation2 + $0xc2] sm:$0xff] }
 0x45f   : > { %4324 = vst.msk [vmem:[#allocation3 + $0xa8] sm:$0xff] %vm439_vm0, %v7885_v8  ;;  %4325 = vst.msk [vmem:[#allocation3 + $0xb8] sm:$0xff] %vm439_vm0, %v7891_v2  ;;  %v7914_v36 = vld [vmem:[#allocation2 + $0xd8] sm:$0xff]  ;;  %4156 = vrot.lane.b32.xlu0 %v7895_v9, %s5718_s26  ;;  %v7920_v33 = vld [vmem:[#allocation2 + $0xca] sm:$0xff]  ;;  %v5672_v57 = vpack.c.bf16 %v4425_v52, %v4424_v47 }
 0x460   : > { %2921 = vst.msk [vmem:[#allocation3 + $0x100] sm:$0xff] %vm439_vm0, %v7889_v41  ;;  %2922 = vst.msk [vmem:[#allocation3 + $0x110] sm:$0xff] %vm439_vm0, %v7900_v24  ;;  %v7922_v28 = vld [vmem:[#allocation2 + $0xe0] sm:$0xff]  ;;  %v7934_v51 = vld [vmem:[#allocation2 + $0xf0] sm:$0xff] }
 0x461   : > { %4326 = vst.msk [vmem:[#allocation3 + $0xc8] sm:$0xff] %vm439_vm0, %v7912_v0  ;;  %2923 = vst.msk [vmem:[#allocation3 + $0x120] sm:$0xff] %vm439_vm0, %v7914_v36  ;;  %v7928_v50 = vld [vmem:[#allocation2 + $0xda] sm:$0xff]  ;;  %5670 = vmatpush1.bf16.msra.mxu1 %v5669_v43  ;;  %v7936_v4 = vld [vmem:[#allocation2 + $0xe2] sm:$0xff]  ;;  %3389 = vrot.lane.b32.xlu1 %v7675_v16, %s5712_s16 }
 0x462   : > { %4327 = vst.msk [vmem:[#allocation3 + $0xd8] sm:$0xff] %vm439_vm0, %v7920_v33  ;;  %2924 = vst.msk [vmem:[#allocation3 + $0x130] sm:$0xff] %vm439_vm0, %v7922_v28  ;;  %5671 = vmatprep.subr.bf16.mxu1 %v5711_v3  ;;  %v4426_v29 = vld [vmem:[%s9301_s6 + $0x80] sm:$0xff]  ;;  %v4427_v60 = vld [vmem:[%s9301_s6 + $0x88] sm:$0xff] }
 0x463   : > { %4328 = vst.msk [vmem:[#allocation3 + $0xe8] sm:$0xff] %vm439_vm0, %v7928_v50  ;;  %v7949_v10 = vld [vmem:[#allocation2 + $0xf8] sm:$0xff]  ;;  %4329 = vst.msk [vmem:[#allocation3 + $0xf8] sm:$0xff] %vm439_vm0, %v7936_v4  ;;  %3007 = vrot.lane.b32.xlu0 %v7809_v26, %s5713_s19  ;;  %v7961_v58 = vld [vmem:[#allocation2 + $0x108] sm:$0xff]  ;;  %v5675_v56 = vpack.c.bf16 %v4427_v60, %v4426_v29 }
 0x464   : > { %2925 = vst.msk [vmem:[#allocation3 + $0x140] sm:$0xff] %vm439_vm0, %v7934_v51  ;;  %v7957_v16 = vld [vmem:[#allocation2 + $0xf2] sm:$0xff]  ;;  %2926 = vst.msk [vmem:[#allocation3 + $0x150] sm:$0xff] %vm439_vm0, %v7949_v10  ;;  %v7963_v11 = vld [vmem:[#allocation2 + $0xfa] sm:$0xff] }
 0x465   : > { %4330 = vst.msk [vmem:[#allocation3 + $0x108] sm:$0xff] %vm439_vm0, %v7957_v16  ;;  %5673 = vmatpush1.bf16.msra.mxu1 %v5672_v57  ;;  %v7967_v21 = vld [vmem:[#allocation2 + $0x110] sm:$0xff]  ;;  %4331 = vst.msk [vmem:[#allocation3 + $0x118] sm:$0xff] %vm439_vm0, %v7963_v11  ;;  %3581 = vrot.lane.b32.xlu1 %v7835_v45, %s5714_s28  ;;  %v7978_v12 = vld [vmem:[#allocation2 + $0x120] sm:$0xff] }
 0x466   : > { %2927 = vst.msk [vmem:[#allocation3 + $0x160] sm:$0xff] %vm439_vm0, %v7961_v58  ;;  %5674 = vmatprep.subr.bf16.mxu1 %v5711_v3  ;;  %v7976_v30 = vld [vmem:[#allocation2 + $0x10a] sm:$0xff]  ;;  %2928 = vst.msk [vmem:[#allocation3 + $0x170] sm:$0xff] %vm439_vm0, %v7967_v21  ;;  %v7984_v19 = vld [vmem:[#allocation2 + $0x112] sm:$0xff] }
 0x467   : > { %3199 = vrot.lane.b32.xlu0 %v7843_v49, %s5715_s29  ;;  %v7986_v26 = vld [vmem:[#allocation2 + $0x128] sm:$0xff]  ;;  %4332 = vst.msk [vmem:[#allocation3 + $0x128] sm:$0xff] %vm439_vm0, %v7976_v30  ;;  %2929 = vst.msk [vmem:[#allocation3 + $0x180] sm:$0xff] %vm439_vm0, %v7978_v12  ;;  %v7998_v37 = vld [vmem:[#allocation2 + $0x138] sm:$0xff] }
 0x468   : > { %v7992_v3 = vld [vmem:[#allocation2 + $0x122] sm:$0xff]  ;;  %4333 = vst.msk [vmem:[#allocation3 + $0x138] sm:$0xff] %vm439_vm0, %v7984_v19  ;;  %2930 = vst.msk [vmem:[#allocation3 + $0x190] sm:$0xff] %vm439_vm0, %v7986_v26  ;;  %v8000_v61 = vld [vmem:[#allocation2 + $0x12a] sm:$0xff] }
 0x469   : > { %5676 = vmatpush1.bf16.msra.mxu1 %v5675_v56  ;;  %4334 = vst.msk [vmem:[#allocation3 + $0x148] sm:$0xff] %vm439_vm0, %v7992_v3  ;;  %3773 = vrot.lane.b32.xlu1 %v7700_v15, %s5716_s13  ;;  %v8006_v63 = vld [vmem:[#allocation2 + $0x140] sm:$0xff]  ;;  %4335 = vst.msk [vmem:[#allocation3 + $0x158] sm:$0xff] %vm439_vm0, %v8000_v61  ;;  %v8018_v49 = vld [vmem:[#allocation2 + $0x150] sm:$0xff] }
 0x46a   : > { %2931 = vst.msk [vmem:[#allocation3 + $0x1a0] sm:$0xff] %vm439_vm0, %v7998_v37  ;;  %v8014_v55 = vld [vmem:[#allocation2 + $0x13a] sm:$0xff]  ;;  %2932 = vst.msk [vmem:[#allocation3 + $0x1b0] sm:$0xff] %vm439_vm0, %v8006_v63  ;;  %v8020_v13 = vld [vmem:[#allocation2 + $0x142] sm:$0xff] }
 0x46b   : > { %3391 = vrot.lane.b32.xlu0 %v7702_v40, %s5712_s16  ;;  %4336 = vst.msk [vmem:[#allocation3 + $0x168] sm:$0xff] %vm439_vm0, %v8014_v55  ;;  %v8024_v18 = vld [vmem:[#allocation2 + $0x158] sm:$0xff]  ;;  %4337 = vst.msk [vmem:[#allocation3 + $0x178] sm:$0xff] %vm439_vm0, %v8020_v13  ;;  %v8034_v53 = vld [vmem:[#allocation2 + $0x168] sm:$0xff] }
 0x46c   : > { %2933 = vst.msk [vmem:[#allocation3 + $0x1c0] sm:$0xff] %vm439_vm0, %v8018_v49  ;;  %v8032_v40 = vld [vmem:[#allocation2 + $0x152] sm:$0xff]  ;;  %2934 = vst.msk [vmem:[#allocation3 + $0x1d0] sm:$0xff] %vm439_vm0, %v8024_v18  ;;  %v8040_v1 = vld [vmem:[#allocation2 + $0x15a] sm:$0xff] }
 0x46d   : > { %3966 = vrot.lane.b32.xlu1 %v7731_v39, %s5717_s21  ;;  %v8042_v42 = vld [vmem:[#allocation2 + $0x170] sm:$0xff]  ;;  %4338 = vst.msk [vmem:[#allocation3 + $0x188] sm:$0xff] %vm439_vm0, %v8032_v40  ;;  %2935 = vst.msk [vmem:[#allocation3 + $0x1e0] sm:$0xff] %vm439_vm0, %v8034_v53  ;;  %v8063_v57 = vld [vmem:[#allocation2 + $0x182] sm:$0xff] }
 0x46e   : > { %v8048_v43 = vld [vmem:[#allocation2 + $0x16a] sm:$0xff]  ;;  %4339 = vst.msk [vmem:[#allocation3 + $0x198] sm:$0xff] %vm439_vm0, %v8040_v1  ;;  %2936 = vst.msk [vmem:[#allocation3 + $0x1f0] sm:$0xff] %vm439_vm0, %v8042_v42  ;;  %v8054_v52 = vld [vmem:[#allocation2 + $0x172] sm:$0xff] }
 0x46f   : > { %3583 = vrot.lane.b32.xlu0 %v7895_v9, %s5714_s28  ;;  %v4092_v47 = vld [vmem:[#allocation2 + $0x49] sm:$0xff]  ;;  %4340 = vst.msk [vmem:[#allocation3 + $0x1a8] sm:$0xff] %vm439_vm0, %v8048_v43  ;;  %4341 = vst.msk [vmem:[#allocation3 + $0x1b8] sm:$0xff] %vm439_vm0, %v8054_v52  ;;  %v4093_v60 = vld [vmem:[#allocation2 + $0x51] sm:$0xff] }
 0x470   : > { %v8065_v29 = vld [vmem:[#allocation2 + $0x18a] sm:$0xff]  ;;  %4342 = vst.msk [vmem:[#allocation3 + $0x1c8] sm:$0xff] %vm439_vm0, %v8063_v57  ;;  %vm9333_vm12 = vmmov %vm9330_vm2 }
 0x471   : > { %4158 = vrot.lane.b32.xlu1 %v4092_v47, %s5718_s26  ;;  %4343 = vst.msk [vmem:[#allocation3 + $0x1d8] sm:$0xff] %vm439_vm0, %v8065_v29  ;;  %vm9335_vm5 = vmmov %vm9331_vm3 }
 0x472   : > { %vm9337_vm14 = vmmov %vm9332_vm4 }
 0x473   : > { %3775 = vrot.lane.b32.xlu0 %v7733_v32, %s5716_s13  ;;  %vm9339_vm15 = vmmov %vm9334_vm13 }
 0x474   : > { %vm9341_vm1 = vmmov %vm9336_vm11 }
 0x475   : > { %3009 = vrot.lane.b32.xlu1 %v7835_v45, %s5713_s19  ;;  %vm9342_vm8 = vmmov %vm9330_vm2 }
 0x476   : > { %vm9343_vm9 = vmmov %vm9338_vm7 }
 0x477   : > { %3968 = vrot.lane.b32.xlu0 %v7756_v31, %s5717_s21  ;;  %vm9344_vm6 = vmmov %vm9331_vm3 }
 0x479   : > { %3201 = vrot.lane.b32.xlu1 %v7700_v15, %s5715_s29  ;;  %v4094_v15 = vld [vmem:[#allocation2 + $0x61] sm:$0xff] }
 0x47b   : > { %4160 = vrot.lane.b32.xlu0 %v4093_v60, %s5718_s26 }
 0x47d   : > { %3393 = vrot.lane.b32.xlu1 %v7731_v39, %s5712_s16  ;;  %v4095_v39 = vld [vmem:[#allocation2 + $0x69] sm:$0xff] }
 0x47f   : > { %3011 = vrot.lane.b32.xlu0 %v7895_v9, %s5713_s19 }
 0x481   : > { %3585 = vrot.lane.b32.xlu1 %v4092_v47, %s5714_s28 }
 0x483   : > { %3203 = vrot.lane.b32.xlu0 %v7733_v32, %s5715_s29  ;;  %v4096_v32 = vld [vmem:[#allocation2 + $0x79] sm:$0xff] }
 0x485   : > { %3777 = vrot.lane.b32.xlu1 %v7758_v35, %s5716_s13 }
 0x487   : > { %3395 = vrot.lane.b32.xlu0 %v7756_v31, %s5712_s16  ;;  %v4097_v31 = vld [vmem:[#allocation2 + $0x81] sm:$0xff] }
 0x489   : > { %3970 = vrot.lane.b32.xlu1 %v7780_v17, %s5717_s21 }
 0x48b   : > { %3587 = vrot.lane.b32.xlu0 %v4093_v60, %s5714_s28 }
 0x48d   : > { %4162 = vrot.lane.b32.xlu1 %v4094_v15, %s5718_s26 }
 0x48f   : > { %3779 = vrot.lane.b32.xlu0 %v7782_v22, %s5716_s13 }
 0x491   : > { %3013 = vrot.lane.b32.xlu1 %v4092_v47, %s5713_s19  ;;  %v8152_v47 = vld [vmem:[#allocation2 + $0x99] sm:$0xff] }
 0x493   : > { %3972 = vrot.lane.b32.xlu0 %v7790_v46, %s5717_s21 }
 0x495   : > { %3205 = vrot.lane.b32.xlu1 %v7758_v35, %s5715_s29 }
 0x497   : > { %4164 = vrot.lane.b32.xlu0 %v4095_v39, %s5718_s26 }
 0x499   : > { %3397 = vrot.lane.b32.xlu1 %v7780_v17, %s5712_s16 }
 0x49b   : > { %3015 = vrot.lane.b32.xlu0 %v4093_v60, %s5713_s19 }
 0x49d   : > { %3589 = vrot.lane.b32.xlu1 %v4094_v15, %s5714_s28 }
 0x49f   : > { %3207 = vrot.lane.b32.xlu0 %v7782_v22, %s5715_s29 }
 0x4a1   : > { %3781 = vrot.lane.b32.xlu1 %v7792_v54, %s5716_s13 }
 0x4a3   : > { %3399 = vrot.lane.b32.xlu0 %v7790_v46, %s5712_s16 }
 0x4a5   : > { %3974 = vrot.lane.b32.xlu1 %v7798_v62, %s5717_s21 }
 0x4a7   : > { %3591 = vrot.lane.b32.xlu0 %v4095_v39, %s5714_s28 }
 0x4a9   : > { %4166 = vrot.lane.b32.xlu1 %v4096_v32, %s5718_s26 }
 0x4ab   : > { %3783 = vrot.lane.b32.xlu0 %v7800_v6, %s5716_s13 }
 0x4ad   : > { %3017 = vrot.lane.b32.xlu1 %v4094_v15, %s5713_s19 }
 0x4af   : > { %3976 = vrot.lane.b32.xlu0 %v7811_v44, %s5717_s21 }
 0x4b1   : > { %3209 = vrot.lane.b32.xlu1 %v7792_v54, %s5715_s29 }
 0x4b3   : > { %4168 = vrot.lane.b32.xlu0 %v4097_v31, %s5718_s26 }
 0x4b5   : > { %3401 = vrot.lane.b32.xlu1 %v7798_v62, %s5712_s16 }
 0x4b7   : > { %3019 = vrot.lane.b32.xlu0 %v4095_v39, %s5713_s19 }
 0x4b9   : > { %3593 = vrot.lane.b32.xlu1 %v4096_v32, %s5714_s28  ;;  %v3578_v35 = vpop.permute.xlu1 %3577 }
 0x4ba   : > { %v3386_v17 = vpop.permute.xlu0 %3385 }
 0x4bb   : > { %3211 = vrot.lane.b32.xlu0 %v7800_v6, %s5715_s29  ;;  %3481 = vst.msk [vmem:[#allocation3] sm:$0xff] %vm9330_vm2, %v3386_v17  ;;  %v4098_v6 = vld [vmem:[#allocation2 + $0x91] sm:$0xff]  ;;  %vm9345_vm2 = vmmov %vm9340_vm10 }
 0x4bc   : > { %3673 = vst.msk [vmem:[#allocation3] sm:$0xff] %vm9331_vm3, %v3578_v35  ;;  %vm9346_vm3 = vmmov %vm9332_vm4 }
 0x4bd   : > { %3785 = vrot.lane.b32.xlu1 %v7826_v25, %s5716_s13 }
 0x4be   : > { %v3770_v22 = vpop.permute.xlu1 %3769  ;;  %v3388_v46 = vpop.permute.xlu0 %3387 }
 0x4bf   : > { %3403 = vrot.lane.b32.xlu0 %v7811_v44, %s5712_s16  ;;  %3865 = vst.msk [vmem:[#allocation3] sm:$0xff] %vm9332_vm4, %v3770_v22  ;;  %vm9347_vm4 = vmmov %vm9342_vm8 }
 0x4c0   : > { %3482 = vst.msk [vmem:[#allocation3 + $0x10] sm:$0xff] %vm9333_vm12, %v3388_v46  ;;  %vm9348_vm12 = vmmov %vm9334_vm13 }
 0x4c1   : > { %3978 = vrot.lane.b32.xlu1 %v7830_v34, %s5717_s21 }
 0x4c2   : > { %v3963_v54 = vpop.permute.xlu1 %3962 }
 0x4c3   : > { %3595 = vrot.lane.b32.xlu0 %v4097_v31, %s5714_s28  ;;  %4058 = vst.msk [vmem:[#allocation3] sm:$0xff] %vm9334_vm13, %v3963_v54  ;;  %vm9349_vm13 = vmmov %vm9335_vm5 }
 0x4c5   : > { %v3580_v62 = vpop.permute.xlu0 %3579  ;;  %4170 = vrot.lane.b32.xlu1 %v4098_v6, %s5718_s26 }
 0x4c6   : > { %3674 = vst.msk [vmem:[#allocation3 + $0x10] sm:$0xff] %vm9335_vm5, %v3580_v62  ;;  %vm9350_vm5 = vmmov %vm9341_vm1 }
 0x4c7   : > { %3787 = vrot.lane.b32.xlu0 %v7837_v38, %s5716_s13  ;;  %v4155_v44 = vpop.permute.xlu1 %4154 }
 0x4c8   : > { %4250 = vst.msk [vmem:[#allocation3] sm:$0xff] %vm9336_vm11, %v4155_v44  ;;  %v4100_v44 = vld [vmem:[#allocation2 + $0xa9] sm:$0xff]  ;;  %vm9351_vm11 = vmmov %vm9346_vm3 }
 0x4c9   : > { %v3772_v45 = vpop.permute.xlu0 %3771  ;;  %3021 = vrot.lane.b32.xlu1 %v4096_v32, %s5713_s19  ;;  %v4349_v32 = vld [vmem:[#allocation3 + $0x18] sm:$0xff] }
 0x4ca   : > { %3866 = vst.msk [vmem:[#allocation3 + $0x10] sm:$0xff] %vm9337_vm14, %v3772_v45  ;;  %vm9352_vm14 = vmmov %vm9338_vm7 }
 0x4cb   : > { %3980 = vrot.lane.b32.xlu0 %v7856_v48, %s5717_s21  ;;  %v3006_v9 = vpop.permute.xlu1 %3005 }
 0x4cc   : > { %3099 = vst.msk [vmem:[#allocation3 + $0x20] sm:$0xff] %vm9338_vm7, %v3006_v9  ;;  %vm9353_vm7 = vmmov %vm9348_vm12 }
 0x4cd   : > { %v3965_v56 = vpop.permute.xlu0 %3964  ;;  %3213 = vrot.lane.b32.xlu1 %v7826_v25, %s5715_s29 }
 0x4ce   : > { %4059 = vst.msk [vmem:[#allocation3 + $0x10] sm:$0xff] %vm9339_vm15, %v3965_v56  ;;  %vm9354_vm15 = vmmov %vm9345_vm2 }
 0x4cf   : > { %4172 = vrot.lane.b32.xlu0 %v8152_v47, %s5718_s26  ;;  %v3198_v60 = vpop.permute.xlu1 %3197  ;;  %v4346_v15 = vld [vmem:[#allocation3] sm:$0xff] }
 0x4d0   : > { %3291 = vst.msk [vmem:[#allocation3 + $0x20] sm:$0xff] %vm9340_vm10, %v3198_v60  ;;  %4596 = vmatmul.mubr.f32.vlgmr.msra.gmra.mrb[2].mxu1 %v4346_v15  ;;  %v8194_v60 = vld [vmem:[#allocation2 + $0xb1] sm:$0xff]  ;;  %vm9355_vm10 = vmmov %vm9341_vm1 }
 0x4d1   : > { %v4157_v39 = vpop.permute.xlu0 %4156  ;;  %5562 = vmatprep.mubr.msk.f32.mxu1 %vm439_vm0, %v4349_v32  ;;  %3405 = vrot.lane.b32.xlu1 %v7830_v34, %s5712_s16  ;;  %v4351_v34 = vld [vmem:[#allocation3 + $0x28] sm:$0xff]  ;;  %v4353_v32 = vld [vmem:[#allocation3 + $0x38] sm:$0xff] }
 0x4d2   : > { %4251 = vst.msk [vmem:[#allocation3 + $0x10] sm:$0xff] %vm9341_vm1, %v4157_v39  ;;  %vm9356_vm1 = vmmov %vm9347_vm4 }
 0x4d3   : > { %3023 = vrot.lane.b32.xlu0 %v4097_v31, %s5713_s19  ;;  %v3390_v25 = vpop.permute.xlu1 %3389 }
 0x4d4   : > { %3483 = vst.msk [vmem:[#allocation3 + $0x20] sm:$0xff] %vm9342_vm8, %v3390_v25  ;;  %vm9357_vm8 = vmmov %vm9343_vm9 }
 0x4d5   : > { %v3008_v35 = vpop.permute.xlu0 %3007  ;;  %3597 = vrot.lane.b32.xlu1 %v4098_v6, %s5714_s28 }
 0x4d6   : > { %3100 = vst.msk [vmem:[#allocation3 + $0x30] sm:$0xff] %vm9343_vm9, %v3008_v35  ;;  %vm9358_vm9 = vmmov %vm9344_vm6 }
 0x4d7   : > { %3215 = vrot.lane.b32.xlu0 %v7837_v38, %s5715_s29  ;;  %v3582_v17 = vpop.permute.xlu1 %3581 }
 0x4d8   : > { %3675 = vst.msk [vmem:[#allocation3 + $0x20] sm:$0xff] %vm9344_vm6, %v3582_v17  ;;  %vm9359_vm6 = vmmov %vm9345_vm2 }
 0x4d9   : > { %v3200_v22 = vpop.permute.xlu0 %3199  ;;  %v4348_v46 = vld [vmem:[#allocation3 + $0x10] sm:$0xff]  ;;  %3789 = vrot.lane.b32.xlu1 %v7860_v59, %s5716_s13 }
 0x4da   : > { %3292 = vst.msk [vmem:[#allocation3 + $0x30] sm:$0xff] %vm9345_vm2, %v3200_v22  ;;  %4601 = vmatmul.mubr.f32.gmra.mrb[4].mxu1 %v4348_v46  ;;  %vm9360_vm2 = vmmov %vm9346_vm3 }
 0x4db   : > { %3407 = vrot.lane.b32.xlu0 %v7856_v48, %s5712_s16  ;;  %5563 = vmatprep.mubr.msk.f32.mxu1 %vm439_vm0, %v4351_v34  ;;  %v3774_v31 = vpop.permute.xlu1 %3773 }
 0x4dc   : > { %3867 = vst.msk [vmem:[#allocation3 + $0x20] sm:$0xff] %vm9346_vm3, %v3774_v31  ;;  %vm9361_vm3 = vmmov %vm9356_vm1  ;;  %v4102_v31 = vld [vmem:[#allocation2 + $0xc1] sm:$0xff] }
 0x4dd   : > { %v3392_v54 = vpop.permute.xlu0 %3391  ;;  %3982 = vrot.lane.b32.xlu1 %v7862_v23, %s5717_s21 }
 0x4de   : > { %3484 = vst.msk [vmem:[#allocation3 + $0x30] sm:$0xff] %vm9347_vm4, %v3392_v54  ;;  %vm9362_vm4 = vmmov %vm9353_vm7 }
 0x4df   : > { %3599 = vrot.lane.b32.xlu0 %v8152_v47, %s5714_s28  ;;  %v3967_v38 = vpop.permute.xlu1 %3966 }
 0x4e0   : > { %4060 = vst.msk [vmem:[#allocation3 + $0x20] sm:$0xff] %vm9348_vm12, %v3967_v38  ;;  %vm9363_vm12 = vmmov %vm9358_vm9 }
 0x4e1   : > { %v3584_v62 = vpop.permute.xlu0 %3583  ;;  %4174 = vrot.lane.b32.xlu1 %v4100_v44, %s5718_s26 }
 0x4e2   : > { %3676 = vst.msk [vmem:[#allocation3 + $0x30] sm:$0xff] %vm9349_vm13, %v3584_v62  ;;  %vm9364_vm13 = vmmov %vm9350_vm5 }
 0x4e3   : > { %3791 = vrot.lane.b32.xlu0 %v7864_v27, %s5716_s13  ;;  %v4159_v48 = vpop.permute.xlu1 %4158 }
 0x4e4   : > { %4252 = vst.msk [vmem:[#allocation3 + $0x20] sm:$0xff] %vm9350_vm5, %v4159_v48  ;;  %vm9365_vm5 = vmmov %vm9360_vm2  ;;  %v8237_v48 = vld [vmem:[#allocation2 + $0xc9] sm:$0xff] }
 0x4e5   : > { %v3776_v45 = vpop.permute.xlu0 %3775  ;;  %3025 = vrot.lane.b32.xlu1 %v4098_v6, %s5713_s19 }
 0x4e6   : > { %3868 = vst.msk [vmem:[#allocation3 + $0x30] sm:$0xff] %vm9351_vm11, %v3776_v45  ;;  %vm9366_vm11 = vmmov %vm9357_vm8 }
 0x4e7   : > { %3984 = vrot.lane.b32.xlu0 %v7875_v7, %s5717_s21  ;;  %v3010_v9 = vpop.permute.xlu1 %3009 }
 0x4e8   : > { %3101 = vst.msk [vmem:[#allocation3 + $0x40] sm:$0xff] %vm9352_vm14, %v3010_v9  ;;  %vm9367_vm14 = vmmov %vm9362_vm4 }
 0x4e9   : > { %v3969_v56 = vpop.permute.xlu0 %3968  ;;  %3217 = vrot.lane.b32.xlu1 %v7860_v59, %s5715_s29 }
 0x4ea   : > { %4061 = vst.msk [vmem:[#allocation3 + $0x30] sm:$0xff] %vm9353_vm7, %v3969_v56  ;;  %vm9368_vm7 = vmmov %vm9359_vm6  ;;  %v4357_v56 = vld [vmem:[#allocation3 + $0x58] sm:$0xff] }
 0x4eb   : > { %4176 = vrot.lane.b32.xlu0 %v8194_v60, %s5718_s26  ;;  %v3202_v15 = vpop.permute.xlu1 %3201  ;;  %v4350_v39 = vld [vmem:[#allocation3 + $0x20] sm:$0xff] }
 0x4ec   : > { %3293 = vst.msk [vmem:[#allocation3 + $0x40] sm:$0xff] %vm9354_vm15, %v3202_v15  ;;  %4606 = vmatmul.mubr.f32.gmra.mrb[6].mxu1 %v4350_v39  ;;  %vm9369_vm15 = vmmov %vm9355_vm10 }
 0x4ed   : > { %v4161_v6 = vpop.permute.xlu0 %4160  ;;  %3409 = vrot.lane.b32.xlu1 %v7862_v23, %s5712_s16  ;;  %5564 = vmatprep.mubr.msk.f32.mxu1 %vm439_vm0, %v4353_v32 }
 0x4ee   : > { %4253 = vst.msk [vmem:[#allocation3 + $0x30] sm:$0xff] %vm9355_vm10, %v4161_v6  ;;  %vm9370_vm10 = vmmov %vm9356_vm1 }
 0x4ef   : > { %3027 = vrot.lane.b32.xlu0 %v8152_v47, %s5713_s19  ;;  %v3394_v59 = vpop.permute.xlu1 %3393  ;;  %v4355_v47 = vld [vmem:[#allocation3 + $0x48] sm:$0xff] }
 0x4f0   : > { %3485 = vst.msk [vmem:[#allocation3 + $0x40] sm:$0xff] %vm9356_vm1, %v3394_v59  ;;  %vm9371_vm1 = vmmov %vm9357_vm8 }
 0x4f1   : > { %v3012_v25 = vpop.permute.xlu0 %3011  ;;  %3601 = vrot.lane.b32.xlu1 %v4100_v44, %s5714_s28 }
 0x4f2   : > { %3102 = vst.msk [vmem:[#allocation3 + $0x50] sm:$0xff] %vm9357_vm8, %v3012_v25  ;;  %vm9372_vm8 = vmmov %vm9358_vm9 }
 0x4f3   : > { %3219 = vrot.lane.b32.xlu0 %v7864_v27, %s5715_s29  ;;  %v3586_v35 = vpop.permute.xlu1 %3585 }
 0x4f4   : > { %3677 = vst.msk [vmem:[#allocation3 + $0x40] sm:$0xff] %vm9358_vm9, %v3586_v35  ;;  %vm9373_vm9 = vmmov %vm9359_vm6  ;;  %v4104_v35 = vld [vmem:[#allocation2 + $0xd9] sm:$0xff] }
 0x4f5   : > { %v3204_v17 = vpop.permute.xlu0 %3203  ;;  %v4352_v23 = vld [vmem:[#allocation3 + $0x30] sm:$0xff]  ;;  %3793 = vrot.lane.b32.xlu1 %v7885_v8, %s5716_s13 }
 0x4f6   : > { %3294 = vst.msk [vmem:[#allocation3 + $0x50] sm:$0xff] %vm9359_vm6, %v3204_v17  ;;  %4611 = vmatmul.mubr.f32.gmra.mrb[8].mxu1 %v4352_v23  ;;  %vm9374_vm6 = vmmov %vm9360_vm2 }
 0x4f7   : > { %3411 = vrot.lane.b32.xlu0 %v7875_v7, %s5712_s16  ;;  %5565 = vmatprep.mubr.msk.f32.mxu1 %vm439_vm0, %v4355_v47  ;;  %v3778_v22 = vpop.permute.xlu1 %3777 }
 0x4f8   : > { %3869 = vst.msk [vmem:[#allocation3 + $0x40] sm:$0xff] %vm9360_vm2, %v3778_v22  ;;  %vm9375_vm2 = vmmov %vm9361_vm3  ;;  %v8280_v22 = vld [vmem:[#allocation2 + $0xe1] sm:$0xff] }
 0x4f9   : > { %v3396_v46 = vpop.permute.xlu0 %3395  ;;  %3986 = vrot.lane.b32.xlu1 %v7889_v41, %s5717_s21 }
 0x4fa   : > { %3486 = vst.msk [vmem:[#allocation3 + $0x50] sm:$0xff] %vm9361_vm3, %v3396_v46  ;;  %vm9376_vm3 = vmmov %vm9362_vm4 }
 0x4fb   : > { %3603 = vrot.lane.b32.xlu0 %v8194_v60, %s5714_s28  ;;  %v3971_v27 = vpop.permute.xlu1 %3970 }
 0x4fc   : > { %4062 = vst.msk [vmem:[#allocation3 + $0x40] sm:$0xff] %vm9362_vm4, %v3971_v27  ;;  %vm9377_vm4 = vmmov %vm9372_vm8 }
 0x4fd   : > { %v3588_v34 = vpop.permute.xlu0 %3587  ;;  %4178 = vrot.lane.b32.xlu1 %v4102_v31, %s5718_s26 }
 0x4fe   : > { %3678 = vst.msk [vmem:[#allocation3 + $0x50] sm:$0xff] %vm9363_vm12, %v3588_v34  ;;  %vm9378_vm12 = vmmov %vm9364_vm13 }
 0x4ff   : > { %3795 = vrot.lane.b32.xlu0 %v7891_v2, %s5716_s13  ;;  %v4163_v7 = vpop.permute.xlu1 %4162 }
 0x500   : > { %4254 = vst.msk [vmem:[#allocation3 + $0x40] sm:$0xff] %vm9364_vm13, %v4163_v7  ;;  %vm9379_vm13 = vmmov %vm9365_vm5 }
 0x501   : > { %v3780_v54 = vpop.permute.xlu0 %3779  ;;  %3029 = vrot.lane.b32.xlu1 %v4100_v44, %s5713_s19 }
 0x502   : > { %3870 = vst.msk [vmem:[#allocation3 + $0x50] sm:$0xff] %vm9365_vm5, %v3780_v54  ;;  %vm9380_vm5 = vmmov %vm9371_vm1 }
 0x503   : > { %3988 = vrot.lane.b32.xlu0 %v7900_v24, %s5717_s21  ;;  %v3014_v38 = vpop.permute.xlu1 %3013 }
 0x504   : > { %3103 = vst.msk [vmem:[#allocation3 + $0x60] sm:$0xff] %vm9366_vm11, %v3014_v38  ;;  %vm9381_vm11 = vmmov %vm9376_vm3 }
 0x505   : > { %v3973_v62 = vpop.permute.xlu0 %3972  ;;  %3221 = vrot.lane.b32.xlu1 %v7885_v8, %s5715_s29 }
 0x506   : > { %4063 = vst.msk [vmem:[#allocation3 + $0x50] sm:$0xff] %vm9367_vm14, %v3973_v62  ;;  %vm9382_vm14 = vmmov %vm9368_vm7  ;;  %v4363_v62 = vld [vmem:[#allocation3 + $0x88] sm:$0xff] }
 0x507   : > { %4180 = vrot.lane.b32.xlu0 %v8237_v48, %s5718_s26  ;;  %v3206_v45 = vpop.permute.xlu1 %3205  ;;  %v4354_v9 = vld [vmem:[#allocation3 + $0x40] sm:$0xff] }
 0x508   : > { %3295 = vst.msk [vmem:[#allocation3 + $0x60] sm:$0xff] %vm9368_vm7, %v3206_v45  ;;  %4616 = vmatmul.mubr.f32.gmra.mrb[10].mxu1 %v4354_v9  ;;  %vm9383_vm7 = vmmov %vm9378_vm12 }
 0x509   : > { %v4165_v44 = vpop.permute.xlu0 %4164  ;;  %3413 = vrot.lane.b32.xlu1 %v7889_v41, %s5712_s16  ;;  %5566 = vmatprep.mubr.msk.f32.mxu1 %vm439_vm0, %v4357_v56 }
 0x50a   : > { %4255 = vst.msk [vmem:[#allocation3 + $0x50] sm:$0xff] %vm9369_vm15, %v4165_v44  ;;  %vm9384_vm15 = vmmov %vm9375_vm2  ;;  %v4106_v44 = vld [vmem:[#allocation2 + $0xf1] sm:$0xff] }
 0x50b   : > { %3031 = vrot.lane.b32.xlu0 %v8194_v60, %s5713_s19  ;;  %v3398_v8 = vpop.permute.xlu1 %3397  ;;  %v4359_v60 = vld [vmem:[#allocation3 + $0x68] sm:$0xff] }
 0x50c   : > { %3487 = vst.msk [vmem:[#allocation3 + $0x60] sm:$0xff] %vm9370_vm10, %v3398_v8  ;;  %vm9385_vm10 = vmmov %vm9371_vm1 }
 0x50d   : > { %v3016_v15 = vpop.permute.xlu0 %3015  ;;  %3605 = vrot.lane.b32.xlu1 %v4102_v31, %s5714_s28 }
 0x50e   : > { %3104 = vst.msk [vmem:[#allocation3 + $0x70] sm:$0xff] %vm9371_vm1, %v3016_v15  ;;  %vm9386_vm1 = vmmov %vm9377_vm4 }
 0x50f   : > { %3223 = vrot.lane.b32.xlu0 %v7891_v2, %s5715_s29  ;;  %v3590_v39 = vpop.permute.xlu1 %3589 }
 0x510   : > { %3679 = vst.msk [vmem:[#allocation3 + $0x60] sm:$0xff] %vm9372_vm8, %v3590_v39  ;;  %vm9387_vm8 = vmmov %vm9373_vm9  ;;  %v8323_v39 = vld [vmem:[#allocation2 + $0xf9] sm:$0xff] }
 0x511   : > { %v3208_v6 = vpop.permute.xlu0 %3207  ;;  %v4356_v41 = vld [vmem:[#allocation3 + $0x50] sm:$0xff]  ;;  %3797 = vrot.lane.b32.xlu1 %v7912_v0, %s5716_s13 }
 0x512   : > { %3296 = vst.msk [vmem:[#allocation3 + $0x70] sm:$0xff] %vm9373_vm9, %v3208_v6  ;;  %4621 = vmatmul.mubr.f32.gmra.mrb[12].mxu1 %v4356_v41  ;;  %vm9388_vm9 = vmmov %vm9374_vm6 }
 0x513   : > { %3415 = vrot.lane.b32.xlu0 %v7900_v24, %s5712_s16  ;;  %5567 = vmatprep.mubr.msk.f32.mxu1 %vm439_vm0, %v4359_v60  ;;  %v3782_v32 = vpop.permute.xlu1 %3781 }
 0x514   : > { %3871 = vst.msk [vmem:[#allocation3 + $0x60] sm:$0xff] %vm9374_vm6, %v3782_v32  ;;  %vm9389_vm6 = vmmov %vm9375_vm2  ;;  %v4365_v32 = vld [vmem:[#allocation3 + $0x98] sm:$0xff] }
 0x515   : > { %v3400_v59 = vpop.permute.xlu0 %3399  ;;  %3990 = vrot.lane.b32.xlu1 %v7914_v36, %s5717_s21 }
 0x516   : > { %3488 = vst.msk [vmem:[#allocation3 + $0x70] sm:$0xff] %vm9375_vm2, %v3400_v59  ;;  %vm9390_vm2 = vmmov %vm9376_vm3 }
 0x517   : > { %3607 = vrot.lane.b32.xlu0 %v8237_v48, %s5714_s28  ;;  %v3975_v2 = vpop.permute.xlu1 %3974 }
 0x518   : > { %4064 = vst.msk [vmem:[#allocation3 + $0x60] sm:$0xff] %vm9376_vm3, %v3975_v2  ;;  %vm9391_vm3 = vmmov %vm9386_vm1 }
 0x519   : > { %v3592_v25 = vpop.permute.xlu0 %3591  ;;  %4182 = vrot.lane.b32.xlu1 %v4104_v35, %s5718_s26 }
 0x51a   : > { %3680 = vst.msk [vmem:[#allocation3 + $0x70] sm:$0xff] %vm9377_vm4, %v3592_v25  ;;  %vm9392_vm4 = vmmov %vm9383_vm7 }
 0x51b   : > { %3799 = vrot.lane.b32.xlu0 %v7920_v33, %s5716_s13  ;;  %v4167_v24 = vpop.permute.xlu1 %4166 }
 0x51c   : > { %4256 = vst.msk [vmem:[#allocation3 + $0x60] sm:$0xff] %vm9378_vm12, %v4167_v24  ;;  %vm9393_vm12 = vmmov %vm9388_vm9 }
 0x51d   : > { %v3784_v17 = vpop.permute.xlu0 %3783  ;;  %3033 = vrot.lane.b32.xlu1 %v4102_v31, %s5713_s19  ;;  %v4361_v31 = vld [vmem:[#allocation3 + $0x78] sm:$0xff] }
 0x51e   : > { %3872 = vst.msk [vmem:[#allocation3 + $0x70] sm:$0xff] %vm9379_vm13, %v3784_v17  ;;  %vm9394_vm13 = vmmov %vm9380_vm5 }
 0x51f   : > { %3992 = vrot.lane.b32.xlu0 %v7922_v28, %s5717_s21  ;;  %v3018_v23 = vpop.permute.xlu1 %3017 }
 0x520   : > { %3105 = vst.msk [vmem:[#allocation3 + $0x80] sm:$0xff] %vm9380_vm5, %v3018_v23  ;;  %vm9395_vm5 = vmmov %vm9390_vm2 }
 0x521   : > { %v3977_v47 = vpop.permute.xlu0 %3976  ;;  %3225 = vrot.lane.b32.xlu1 %v7912_v0, %s5715_s29 }
 0x522   : > { %4065 = vst.msk [vmem:[#allocation3 + $0x70] sm:$0xff] %vm9381_vm11, %v3977_v47  ;;  %vm9396_vm11 = vmmov %vm9387_vm8  ;;  %v4108_v47 = vld [vmem:[#allocation2 + $0x109] sm:$0xff] }
 0x523   : > { %4184 = vrot.lane.b32.xlu0 %v8280_v22, %s5718_s26  ;;  %v3210_v46 = vpop.permute.xlu1 %3209  ;;  %v4358_v27 = vld [vmem:[#allocation3 + $0x60] sm:$0xff] }
 0x524   : > { %3297 = vst.msk [vmem:[#allocation3 + $0x80] sm:$0xff] %vm9382_vm14, %v3210_v46  ;;  %4626 = vmatmul.mubr.f32.gmra.mrb[14].mxu1 %v4358_v27  ;;  %vm9397_vm14 = vmmov %vm9392_vm4 }
 0x525   : > { %v4169_v34 = vpop.permute.xlu0 %4168  ;;  %3417 = vrot.lane.b32.xlu1 %v7914_v36, %s5712_s16  ;;  %5568 = vmatprep.mubr.msk.f32.mxu1 %vm439_vm0, %v4361_v31 }
 0x526   : > { %4257 = vst.msk [vmem:[#allocation3 + $0x70] sm:$0xff] %vm9383_vm7, %v4169_v34  ;;  %vm9398_vm7 = vmmov %vm9389_vm6  ;;  %v8366_v34 = vld [vmem:[#allocation2 + $0x111] sm:$0xff] }
 0x527   : > { %3035 = vrot.lane.b32.xlu0 %v8237_v48, %s5713_s19  ;;  %v3402_v0 = vpop.permute.xlu1 %3401 }
 0x528   : > { %3489 = vst.msk [vmem:[#allocation3 + $0x80] sm:$0xff] %vm9384_vm15, %v3402_v0  ;;  %vm9399_vm15 = vmmov %vm9385_vm10 }
 0x529   : > { %v3020_v7 = vpop.permute.xlu0 %3019  ;;  %3609 = vrot.lane.b32.xlu1 %v4104_v35, %s5714_s28 }
 0x52a   : > { %3106 = vst.msk [vmem:[#allocation3 + $0x90] sm:$0xff] %vm9385_vm10, %v3020_v7  ;;  %vm9400_vm10 = vmmov %vm9386_vm1 }
 0x52b   : > { %3227 = vrot.lane.b32.xlu0 %v7920_v33, %s5715_s29  ;;  %v3594_v54 = vpop.permute.xlu1 %3593 }
 0x52c   : > { %3681 = vst.msk [vmem:[#allocation3 + $0x80] sm:$0xff] %vm9386_vm1, %v3594_v54  ;;  %vm9401_vm1 = vmmov %vm9387_vm8  ;;  %v4369_v54 = vld [vmem:[#allocation3 + $0xb8] sm:$0xff] }
 0x52d   : > { %v3212_v38 = vpop.permute.xlu0 %3211  ;;  %v4360_v36 = vld [vmem:[#allocation3 + $0x70] sm:$0xff]  ;;  %3801 = vrot.lane.b32.xlu1 %v7928_v50, %s5716_s13 }
 0x52e   : > { %3298 = vst.msk [vmem:[#allocation3 + $0x90] sm:$0xff] %vm9387_vm8, %v3212_v38  ;;  %4631 = vmatmul.mubr.f32.gmra.mrb[16].mxu1 %v4360_v36  ;;  %vm9402_vm8 = vmmov %vm9388_vm9 }
 0x52f   : > { %3419 = vrot.lane.b32.xlu0 %v7922_v28, %s5712_s16  ;;  %5569 = vmatprep.mubr.msk.f32.mxu1 %vm439_vm0, %v4363_v62  ;;  %v3786_v48 = vpop.permute.xlu1 %3785 }
 0x530   : > { %3873 = vst.msk [vmem:[#allocation3 + $0x80] sm:$0xff] %vm9388_vm9, %v3786_v48  ;;  %vm9403_vm9 = vmmov %vm9389_vm6  ;;  %v4371_v48 = vld [vmem:[#allocation3 + $0xc8] sm:$0xff] }
 0x531   : > { %v3404_v45 = vpop.permute.xlu0 %3403  ;;  %3994 = vrot.lane.b32.xlu1 %v7934_v51, %s5717_s21 }
 0x532   : > { %3490 = vst.msk [vmem:[#allocation3 + $0x90] sm:$0xff] %vm9389_vm6, %v3404_v45  ;;  %vm9404_vm6 = vmmov %vm9390_vm2 }
 0x533   : > { %3611 = vrot.lane.b32.xlu0 %v8280_v22, %s5714_s28  ;;  %v3979_v33 = vpop.permute.xlu1 %3978 }
 0x534   : > { %4066 = vst.msk [vmem:[#allocation3 + $0x80] sm:$0xff] %vm9390_vm2, %v3979_v33  ;;  %vm9405_vm2 = vmmov %vm9391_vm3 }
 0x535   : > { %v3596_v9 = vpop.permute.xlu0 %3595  ;;  %4186 = vrot.lane.b32.xlu1 %v4106_v44, %s5718_s26 }
 0x536   : > { %3682 = vst.msk [vmem:[#allocation3 + $0x90] sm:$0xff] %vm9391_vm3, %v3596_v9  ;;  %vm9406_vm3 = vmmov %vm9392_vm4 }
 0x537   : > { %3803 = vrot.lane.b32.xlu0 %v7936_v4, %s5716_s13  ;;  %v4171_v28 = vpop.permute.xlu1 %4170 }
 0x538   : > { %4258 = vst.msk [vmem:[#allocation3 + $0x80] sm:$0xff] %vm9392_vm4, %v4171_v28  ;;  %vm9407_vm4 = vmmov %vm9402_vm8 }
 0x539   : > { %v3788_v56 = vpop.permute.xlu0 %3787  ;;  %3037 = vrot.lane.b32.xlu1 %v4104_v35, %s5713_s19  ;;  %v4367_v35 = vld [vmem:[#allocation3 + $0xa8] sm:$0xff] }
 0x53a   : > { %3874 = vst.msk [vmem:[#allocation3 + $0x90] sm:$0xff] %vm9393_vm12, %v3788_v56  ;;  %vm9408_vm12 = vmmov %vm9394_vm13 }
 0x53b   : > { %3996 = vrot.lane.b32.xlu0 %v7949_v10, %s5717_s21  ;;  %v3022_v8 = vpop.permute.xlu1 %3021 }
 0x53c   : > { %3107 = vst.msk [vmem:[#allocation3 + $0xa0] sm:$0xff] %vm9394_vm13, %v3022_v8  ;;  %vm9409_vm13 = vmmov %vm9395_vm5 }
 0x53d   : > { %v3981_v15 = vpop.permute.xlu0 %3980  ;;  %3229 = vrot.lane.b32.xlu1 %v7928_v50, %s5715_s29 }
 0x53e   : > { %4067 = vst.msk [vmem:[#allocation3 + $0x90] sm:$0xff] %vm9395_vm5, %v3981_v15  ;;  %vm9410_vm5 = vmmov %vm9401_vm1  ;;  %v8409_v15 = vld [vmem:[#allocation2 + $0x129] sm:$0xff] }
 0x53f   : > { %4188 = vrot.lane.b32.xlu0 %v8323_v39, %s5718_s26  ;;  %v3214_v6 = vpop.permute.xlu1 %3213  ;;  %v4362_v41 = vld [vmem:[#allocation3 + $0x80] sm:$0xff] }
 0x540   : > { %3299 = vst.msk [vmem:[#allocation3 + $0xa0] sm:$0xff] %vm9396_vm11, %v3214_v6  ;;  %4636 = vmatmul.mubr.f32.gmra.mrb[18].mxu1 %v4362_v41  ;;  %vm9411_vm11 = vmmov %vm9406_vm3 }
 0x541   : > { %v4173_v60 = vpop.permute.xlu0 %4172  ;;  %3421 = vrot.lane.b32.xlu1 %v7934_v51, %s5712_s16  ;;  %5570 = vmatprep.mubr.msk.f32.mxu1 %vm439_vm0, %v4365_v32 }
 0x542   : > { %4259 = vst.msk [vmem:[#allocation3 + $0x90] sm:$0xff] %vm9397_vm14, %v4173_v60  ;;  %vm9412_vm14 = vmmov %vm9398_vm7  ;;  %v4373_v60 = vld [vmem:[#allocation3 + $0xd8] sm:$0xff] }
 0x543   : > { %3039 = vrot.lane.b32.xlu0 %v8280_v22, %s5713_s19  ;;  %v3406_v50 = vpop.permute.xlu1 %3405 }
 0x544   : > { %3491 = vst.msk [vmem:[#allocation3 + $0xa0] sm:$0xff] %vm9398_vm7, %v3406_v50  ;;  %vm9413_vm7 = vmmov %vm9408_vm12 }
 0x545   : > { %v3024_v59 = vpop.permute.xlu0 %3023  ;;  %3613 = vrot.lane.b32.xlu1 %v4106_v44, %s5714_s28 }
 0x546   : > { %3108 = vst.msk [vmem:[#allocation3 + $0xb0] sm:$0xff] %vm9399_vm15, %v3024_v59  ;;  %vm9414_vm15 = vmmov %vm9405_vm2 }
 0x547   : > { %3231 = vrot.lane.b32.xlu0 %v7936_v4, %s5715_s29  ;;  %v3598_v2 = vpop.permute.xlu1 %3597 }
 0x548   : > { %3683 = vst.msk [vmem:[#allocation3 + $0xa0] sm:$0xff] %vm9400_vm10, %v3598_v2  ;;  %vm9415_vm10 = vmmov %vm9401_vm1  ;;  %v4375_v2 = vld [vmem:[#allocation3 + $0xe8] sm:$0xff] }
 0x549   : > { %v3216_v25 = vpop.permute.xlu0 %3215  ;;  %v4364_v51 = vld [vmem:[#allocation3 + $0x90] sm:$0xff]  ;;  %3805 = vrot.lane.b32.xlu1 %v7957_v16, %s5716_s13 }
 0x54a   : > { %3300 = vst.msk [vmem:[#allocation3 + $0xb0] sm:$0xff] %vm9401_vm1, %v3216_v25  ;;  %4641 = vmatmul.mubr.f32.gmra.mrb[20].mxu1 %v4364_v51  ;;  %vm9416_vm1 = vmmov %vm9407_vm4 }
 0x54b   : > { %3423 = vrot.lane.b32.xlu0 %v7949_v10, %s5712_s16  ;;  %5571 = vmatprep.mubr.msk.f32.mxu1 %vm439_vm0, %v4367_v35  ;;  %v3790_v24 = vpop.permute.xlu1 %3789 }
 0x54c   : > { %3875 = vst.msk [vmem:[#allocation3 + $0xa0] sm:$0xff] %vm9402_vm8, %v3790_v24  ;;  %vm9417_vm8 = vmmov %vm9403_vm9  ;;  %v4112_v24 = vld [vmem:[#allocation2 + $0x139] sm:$0xff] }
 0x54d   : > { %v3408_v17 = vpop.permute.xlu0 %3407  ;;  %3998 = vrot.lane.b32.xlu1 %v7961_v58, %s5717_s21 }
 0x54e   : > { %3492 = vst.msk [vmem:[#allocation3 + $0xb0] sm:$0xff] %vm9403_vm9, %v3408_v17  ;;  %vm9418_vm9 = vmmov %vm9404_vm6 }
 0x54f   : > { %3615 = vrot.lane.b32.xlu0 %v8323_v39, %s5714_s28  ;;  %v3983_v4 = vpop.permute.xlu1 %3982 }
 0x550   : > { %4068 = vst.msk [vmem:[#allocation3 + $0xa0] sm:$0xff] %vm9404_vm6, %v3983_v4  ;;  %vm9419_vm6 = vmmov %vm9405_vm2 }
 0x551   : > { %v3600_v23 = vpop.permute.xlu0 %3599  ;;  %4190 = vrot.lane.b32.xlu1 %v4108_v47, %s5718_s26 }
 0x552   : > { %3684 = vst.msk [vmem:[#allocation3 + $0xb0] sm:$0xff] %vm9405_vm2, %v3600_v23  ;;  %vm9420_vm2 = vmmov %vm9406_vm3 }
 0x553   : > { %3807 = vrot.lane.b32.xlu0 %v7963_v11, %s5716_s13  ;;  %v4175_v10 = vpop.permute.xlu1 %4174 }
 0x554   : > { %4260 = vst.msk [vmem:[#allocation3 + $0xa0] sm:$0xff] %vm9406_vm3, %v4175_v10  ;;  %vm9421_vm3 = vmmov %vm9416_vm1 }
 0x555   : > { %v3792_v22 = vpop.permute.xlu0 %3791  ;;  %3041 = vrot.lane.b32.xlu1 %v4106_v44, %s5713_s19  ;;  %v4110_v44 = vld [vmem:[#allocation2 + $0x121] sm:$0xff] }
 0x556   : > { %3876 = vst.msk [vmem:[#allocation3 + $0xb0] sm:$0xff] %vm9407_vm4, %v3792_v22  ;;  %vm9422_vm4 = vmmov %vm9413_vm7 }
 0x557   : > { %4000 = vrot.lane.b32.xlu0 %v7967_v21, %s5717_s21  ;;  %v3026_v46 = vpop.permute.xlu1 %3025 }
 0x558   : > { %3109 = vst.msk [vmem:[#allocation3 + $0xc0] sm:$0xff] %vm9408_vm12, %v3026_v46  ;;  %vm9423_vm12 = vmmov %vm9418_vm9 }
 0x559   : > { %v3985_v27 = vpop.permute.xlu0 %3984  ;;  %3233 = vrot.lane.b32.xlu1 %v7957_v16, %s5715_s29 }
 0x55a   : > { %4069 = vst.msk [vmem:[#allocation3 + $0xb0] sm:$0xff] %vm9409_vm13, %v3985_v27  ;;  %vm9424_vm13 = vmmov %vm9410_vm5  ;;  %v4377_v27 = vld [vmem:[#allocation3 + $0xf8] sm:$0xff] }
 0x55b   : > { %4192 = vrot.lane.b32.xlu0 %v8366_v34, %s5718_s26  ;;  %v3218_v31 = vpop.permute.xlu1 %3217  ;;  %v4366_v0 = vld [vmem:[#allocation3 + $0xa0] sm:$0xff] }
 0x55c   : > { %3301 = vst.msk [vmem:[#allocation3 + $0xc0] sm:$0xff] %vm9410_vm5, %v3218_v31  ;;  %4646 = vmatmul.mubr.f32.gmra.mrb[22].mxu1 %v4366_v0  ;;  %vm9425_vm5 = vmmov %vm9420_vm2 }
 0x55d   : > { %v4177_v7 = vpop.permute.xlu0 %4176  ;;  %3425 = vrot.lane.b32.xlu1 %v7961_v58, %s5712_s16  ;;  %5572 = vmatprep.mubr.msk.f32.mxu1 %vm439_vm0, %v4369_v54 }
 0x55e   : > { %4261 = vst.msk [vmem:[#allocation3 + $0xb0] sm:$0xff] %vm9411_vm11, %v4177_v7  ;;  %vm9426_vm11 = vmmov %vm9417_vm8  ;;  %v4379_v7 = vld [vmem:[#allocation3 + $0x108] sm:$0xff] }
 0x55f   : > { %3043 = vrot.lane.b32.xlu0 %v8323_v39, %s5713_s19  ;;  %v3410_v16 = vpop.permute.xlu1 %3409 }
 0x560   : > { %3493 = vst.msk [vmem:[#allocation3 + $0xc0] sm:$0xff] %vm9412_vm14, %v3410_v16  ;;  %vm9427_vm14 = vmmov %vm9422_vm4 }
 0x561   : > { %v3028_v38 = vpop.permute.xlu0 %3027  ;;  %3617 = vrot.lane.b32.xlu1 %v4108_v47, %s5714_s28 }
 0x562   : > { %3110 = vst.msk [vmem:[#allocation3 + $0xd0] sm:$0xff] %vm9413_vm7, %v3028_v38  ;;  %vm9428_vm7 = vmmov %vm9419_vm6 }
 0x563   : > { %3235 = vrot.lane.b32.xlu0 %v7963_v11, %s5715_s29  ;;  %v3602_v36 = vpop.permute.xlu1 %3601 }
 0x564   : > { %3685 = vst.msk [vmem:[#allocation3 + $0xc0] sm:$0xff] %vm9414_vm15, %v3602_v36  ;;  %vm9429_vm15 = vmmov %vm9415_vm10 }
 0x565   : > { %v3220_v62 = vpop.permute.xlu0 %3219  ;;  %v4368_v58 = vld [vmem:[#allocation3 + $0xb0] sm:$0xff]  ;;  %3809 = vrot.lane.b32.xlu1 %v7976_v30, %s5716_s13 }
 0x566   : > { %3302 = vst.msk [vmem:[#allocation3 + $0xd0] sm:$0xff] %vm9415_vm10, %v3220_v62  ;;  %4651 = vmatmul.mubr.f32.gmra.mrb[24].mxu1 %v4368_v58  ;;  %vm9430_vm10 = vmmov %vm9416_vm1  ;;  %v8486_v62 = vld [vmem:[#allocation2 + $0x151] sm:$0xff] }
 0x567   : > { %3427 = vrot.lane.b32.xlu0 %v7967_v21, %s5712_s16  ;;  %5573 = vmatprep.mubr.msk.f32.mxu1 %vm439_vm0, %v4371_v48  ;;  %v3794_v45 = vpop.permute.xlu1 %3793 }
 0x568   : > { %3877 = vst.msk [vmem:[#allocation3 + $0xc0] sm:$0xff] %vm9416_vm1, %v3794_v45  ;;  %vm9431_vm1 = vmmov %vm9417_vm8 }
 0x569   : > { %v3412_v33 = vpop.permute.xlu0 %3411  ;;  %4002 = vrot.lane.b32.xlu1 %v7978_v12, %s5717_s21 }
 0x56a   : > { %3494 = vst.msk [vmem:[#allocation3 + $0xd0] sm:$0xff] %vm9417_vm8, %v3412_v33  ;;  %vm9432_vm8 = vmmov %vm9418_vm9 }
 0x56b   : > { %3619 = vrot.lane.b32.xlu0 %v8366_v34, %s5714_s28  ;;  %v3987_v11 = vpop.permute.xlu1 %3986 }
 0x56c   : > { %4070 = vst.msk [vmem:[#allocation3 + $0xc0] sm:$0xff] %vm9418_vm9, %v3987_v11  ;;  %vm9433_vm9 = vmmov %vm9419_vm6 }
 0x56d   : > { %v3604_v9 = vpop.permute.xlu0 %3603  ;;  %4194 = vrot.lane.b32.xlu1 %v4110_v44, %s5718_s26 }
 0x56e   : > { %3686 = vst.msk [vmem:[#allocation3 + $0xd0] sm:$0xff] %vm9419_vm6, %v3604_v9  ;;  %vm9434_vm6 = vmmov %vm9420_vm2 }
 0x56f   : > { %3811 = vrot.lane.b32.xlu0 %v7984_v19, %s5716_s13  ;;  %v4179_v21 = vpop.permute.xlu1 %4178 }
 0x570   : > { %4262 = vst.msk [vmem:[#allocation3 + $0xc0] sm:$0xff] %vm9420_vm2, %v4179_v21  ;;  %vm9435_vm2 = vmmov %vm9421_vm3 }
 0x571   : > { %v3796_v28 = vpop.permute.xlu0 %3795  ;;  %3045 = vrot.lane.b32.xlu1 %v4108_v47, %s5713_s19  ;;  %v8452_v47 = vld [vmem:[#allocation2 + $0x141] sm:$0xff] }
 0x572   : > { %3878 = vst.msk [vmem:[#allocation3 + $0xd0] sm:$0xff] %vm9421_vm3, %v3796_v28  ;;  %vm9436_vm3 = vmmov %vm9422_vm4 }
 0x573   : > { %4004 = vrot.lane.b32.xlu0 %v7986_v26, %s5717_s21  ;;  %v3030_v56 = vpop.permute.xlu1 %3029 }
 0x574   : > { %3111 = vst.msk [vmem:[#allocation3 + $0xe0] sm:$0xff] %vm9422_vm4, %v3030_v56  ;;  %vm9437_vm4 = vmmov %vm9432_vm8 }
 0x575   : > { %v3989_v8 = vpop.permute.xlu0 %3988  ;;  %3237 = vrot.lane.b32.xlu1 %v7976_v30, %s5715_s29 }
 0x576   : > { %4071 = vst.msk [vmem:[#allocation3 + $0xd0] sm:$0xff] %vm9423_vm12, %v3989_v8  ;;  %vm9438_vm12 = vmmov %vm9424_vm13  ;;  %v4381_v8 = vld [vmem:[#allocation3 + $0x118] sm:$0xff] }
 0x577   : > { %4196 = vrot.lane.b32.xlu0 %v8409_v15, %s5718_s26  ;;  %v3222_v39 = vpop.permute.xlu1 %3221  ;;  %v4370_v6 = vld [vmem:[#allocation3 + $0xc0] sm:$0xff] }
 0x578   : > { %3303 = vst.msk [vmem:[#allocation3 + $0xe0] sm:$0xff] %vm9424_vm13, %v3222_v39  ;;  %4656 = vmatmul.mubr.f32.gmra.mrb[26].mxu1 %v4370_v6  ;;  %vm9439_vm13 = vmmov %vm9425_vm5 }
 0x579   : > { %v4181_v41 = vpop.permute.xlu0 %4180  ;;  %3429 = vrot.lane.b32.xlu1 %v7978_v12, %s5712_s16  ;;  %5574 = vmatprep.mubr.msk.f32.mxu1 %vm439_vm0, %v4373_v60 }
 0x57a   : > { %4263 = vst.msk [vmem:[#allocation3 + $0xd0] sm:$0xff] %vm9425_vm5, %v4181_v41  ;;  %vm9440_vm5 = vmmov %vm9431_vm1  ;;  %v4383_v41 = vld [vmem:[#allocation3 + $0x128] sm:$0xff] }
 0x57b   : > { %3047 = vrot.lane.b32.xlu0 %v8366_v34, %s5713_s19  ;;  %v3414_v30 = vpop.permute.xlu1 %3413 }
 0x57c   : > { %3495 = vst.msk [vmem:[#allocation3 + $0xe0] sm:$0xff] %vm9426_vm11, %v3414_v30  ;;  %vm9441_vm11 = vmmov %vm9436_vm3 }
 0x57d   : > { %v3032_v32 = vpop.permute.xlu0 %3031  ;;  %3621 = vrot.lane.b32.xlu1 %v4110_v44, %s5714_s28 }
 0x57e   : > { %3112 = vst.msk [vmem:[#allocation3 + $0xf0] sm:$0xff] %vm9427_vm14, %v3032_v32  ;;  %vm9442_vm14 = vmmov %vm9428_vm7 }
 0x57f   : > { %3239 = vrot.lane.b32.xlu0 %v7984_v19, %s5715_s29  ;;  %v3606_v50 = vpop.permute.xlu1 %3605 }
 0x580   : > { %3687 = vst.msk [vmem:[#allocation3 + $0xe0] sm:$0xff] %vm9428_vm7, %v3606_v50  ;;  %vm9443_vm7 = vmmov %vm9438_vm12 }
 0x581   : > { %v3224_v59 = vpop.permute.xlu0 %3223  ;;  %v4372_v12 = vld [vmem:[#allocation3 + $0xd0] sm:$0xff]  ;;  %3813 = vrot.lane.b32.xlu1 %v7992_v3, %s5716_s13 }
 0x582   : > { %3304 = vst.msk [vmem:[#allocation3 + $0xf0] sm:$0xff] %vm9429_vm15, %v3224_v59  ;;  %4661 = vmatmul.mubr.f32.gmra.mrb[28].mxu1 %v4372_v12  ;;  %vm9444_vm15 = vmmov %vm9435_vm2  ;;  %v8537_v59 = vld [vmem:[#allocation2 + $0x169] sm:$0xff] }
 0x583   : > { %3431 = vrot.lane.b32.xlu0 %v7986_v26, %s5712_s16  ;;  %5575 = vmatprep.mubr.msk.f32.mxu1 %vm439_vm0, %v4375_v2  ;;  %v3798_v25 = vpop.permute.xlu1 %3797 }
 0x584   : > { %3879 = vst.msk [vmem:[#allocation3 + $0xe0] sm:$0xff] %vm9430_vm10, %v3798_v25  ;;  %vm9445_vm10 = vmmov %vm9431_vm1 }
 0x585   : > { %v3416_v51 = vpop.permute.xlu0 %3415  ;;  %4006 = vrot.lane.b32.xlu1 %v7998_v37, %s5717_s21 }
 0x586   : > { %3496 = vst.msk [vmem:[#allocation3 + $0xf0] sm:$0xff] %vm9431_vm1, %v3416_v51  ;;  %vm9446_vm1 = vmmov %vm9437_vm4 }
 0x587   : > { %3623 = vrot.lane.b32.xlu0 %v8409_v15, %s5714_s28  ;;  %v3991_v19 = vpop.permute.xlu1 %3990 }
 0x588   : > { %4072 = vst.msk [vmem:[#allocation3 + $0xe0] sm:$0xff] %vm9432_vm8, %v3991_v19  ;;  %vm9447_vm8 = vmmov %vm9433_vm9 }
 0x589   : > { %v3608_v35 = vpop.permute.xlu0 %3607  ;;  %4198 = vrot.lane.b32.xlu1 %v4112_v24, %s5718_s26 }
 0x58a   : > { %3688 = vst.msk [vmem:[#allocation3 + $0xf0] sm:$0xff] %vm9433_vm9, %v3608_v35  ;;  %vm9448_vm9 = vmmov %vm9434_vm6 }
 0x58b   : > { %3815 = vrot.lane.b32.xlu0 %v8000_v61, %s5716_s13  ;;  %v4183_v26 = vpop.permute.xlu1 %4182 }
 0x58c   : > { %4264 = vst.msk [vmem:[#allocation3 + $0xe0] sm:$0xff] %vm9434_vm6, %v4183_v26  ;;  %vm9449_vm6 = vmmov %vm9435_vm2 }
 0x58d   : > { %v3800_v17 = vpop.permute.xlu0 %3799  ;;  %3049 = vrot.lane.b32.xlu1 %v4110_v44, %s5713_s19  ;;  %v8502_v44 = vld [vmem:[#allocation2 + $0x159] sm:$0xff] }
 0x58e   : > { %3880 = vst.msk [vmem:[#allocation3 + $0xf0] sm:$0xff] %vm9435_vm2, %v3800_v17  ;;  %vm9450_vm2 = vmmov %vm9436_vm3 }
 0x58f   : > { %4008 = vrot.lane.b32.xlu0 %v8006_v63, %s5717_s21  ;;  %v3034_v4 = vpop.permute.xlu1 %3033 }
 0x590   : > { %3113 = vst.msk [vmem:[#allocation3 + $0x100] sm:$0xff] %vm9436_vm3, %v3034_v4  ;;  %vm9451_vm3 = vmmov %vm9446_vm1 }
 0x591   : > { %v3993_v23 = vpop.permute.xlu0 %3992  ;;  %3241 = vrot.lane.b32.xlu1 %v7992_v3, %s5715_s29 }
 0x592   : > { %4073 = vst.msk [vmem:[#allocation3 + $0xf0] sm:$0xff] %vm9437_vm4, %v3993_v23  ;;  %vm9452_vm4 = vmmov %vm9443_vm7  ;;  %v4385_v23 = vld [vmem:[#allocation3 + $0x138] sm:$0xff] }
 0x593   : > { %4200 = vrot.lane.b32.xlu0 %v8452_v47, %s5718_s26  ;;  %v3226_v10 = vpop.permute.xlu1 %3225  ;;  %v4374_v22 = vld [vmem:[#allocation3 + $0xe0] sm:$0xff] }
 0x594   : > { %3305 = vst.msk [vmem:[#allocation3 + $0x100] sm:$0xff] %vm9438_vm12, %v3226_v10  ;;  %4666 = vmatmul.mubr.f32.gmra.mrb[30].mxu1 %v4374_v22  ;;  %vm9453_vm12 = vmmov %vm9448_vm9 }
 0x595   : > { %v4185_v46 = vpop.permute.xlu0 %4184  ;;  %3433 = vrot.lane.b32.xlu1 %v7998_v37, %s5712_s16  ;;  %5576 = vmatprep.mubr.msk.f32.mxu1 %vm439_vm0, %v4377_v27 }
 0x596   : > { %4265 = vst.msk [vmem:[#allocation3 + $0xf0] sm:$0xff] %vm9439_vm13, %v4185_v46  ;;  %vm9454_vm13 = vmmov %vm9440_vm5  ;;  %v4387_v46 = vld [vmem:[#allocation3 + $0x148] sm:$0xff] }
 0x597   : > { %3051 = vrot.lane.b32.xlu0 %v8409_v15, %s5713_s19  ;;  %v3418_v3 = vpop.permute.xlu1 %3417 }
 0x598   : > { %3497 = vst.msk [vmem:[#allocation3 + $0x100] sm:$0xff] %vm9440_vm5, %v3418_v3  ;;  %vm9455_vm5 = vmmov %vm9450_vm2 }
 0x599   : > { %v3036_v34 = vpop.permute.xlu0 %3035  ;;  %3625 = vrot.lane.b32.xlu1 %v4112_v24, %s5714_s28 }
 0x59a   : > { %3114 = vst.msk [vmem:[#allocation3 + $0x110] sm:$0xff] %vm9441_vm11, %v3036_v34  ;;  %vm9456_vm11 = vmmov %vm9447_vm8 }
 0x59b   : > { %3243 = vrot.lane.b32.xlu0 %v8000_v61, %s5715_s29  ;;  %v3610_v31 = vpop.permute.xlu1 %3609 }
 0x59c   : > { %3689 = vst.msk [vmem:[#allocation3 + $0x100] sm:$0xff] %vm9442_vm14, %v3610_v31  ;;  %vm9457_vm14 = vmmov %vm9452_vm4 }
 0x59d   : > { %v3228_v0 = vpop.permute.xlu0 %3227  ;;  %v4376_v37 = vld [vmem:[#allocation3 + $0xf0] sm:$0xff]  ;;  %3817 = vrot.lane.b32.xlu1 %v8014_v55, %s5716_s13 }
 0x59e   : > { %3306 = vst.msk [vmem:[#allocation3 + $0x110] sm:$0xff] %vm9443_vm7, %v3228_v0  ;;  %4671 = vmatmul.mubr.f32.gmra.mrb[32].mxu1 %v4376_v37  ;;  %vm9458_vm7 = vmmov %vm9449_vm6  ;;  %v4118_v37 = vld [vmem:[#allocation2 + $0x181] sm:$0xff] }
 0x59f   : > { %3435 = vrot.lane.b32.xlu0 %v8006_v63, %s5712_s16  ;;  %5577 = vmatprep.mubr.msk.f32.mxu1 %vm439_vm0, %v4379_v7  ;;  %v3802_v54 = vpop.permute.xlu1 %3801 }
 0x5a0   : > { %3881 = vst.msk [vmem:[#allocation3 + $0x100] sm:$0xff] %vm9444_vm15, %v3802_v54  ;;  %vm9459_vm15 = vmmov %vm9445_vm10 }
 0x5a1   : > { %v3420_v16 = vpop.permute.xlu0 %3419  ;;  %4010 = vrot.lane.b32.xlu1 %v8018_v49, %s5717_s21 }
 0x5a2   : > { %3498 = vst.msk [vmem:[#allocation3 + $0x110] sm:$0xff] %vm9445_vm10, %v3420_v16  ;;  %vm9460_vm10 = vmmov %vm9446_vm1  ;;  %v3927_v16 = vld [vmem:[#allocation2 + $0x188] sm:$0xff] }
 0x5a3   : > { %3627 = vrot.lane.b32.xlu0 %v8452_v47, %s5714_s28  ;;  %v3995_v61 = vpop.permute.xlu1 %3994  ;;  %v8483_v38 = vpop.f32.mrb[2].mxu1 }
 0x5a4   : > { %4074 = vst.msk [vmem:[#allocation3 + $0x100] sm:$0xff] %vm9446_vm1, %v3995_v61  ;;  %v4599_v63 = vpop.f32.mrb[3].mxu1  ;;  %vm9461_vm1 = vmmov %vm9447_vm8 }
 0x5a5   : > { %v3612_v36 = vpop.permute.xlu0 %3611  ;;  %4202 = vrot.lane.b32.xlu1 %v8486_v62, %s5718_s26 }
 0x5a6   : > { %3690 = vst.msk [vmem:[#allocation3 + $0x110] sm:$0xff] %vm9447_vm8, %v3612_v36  ;;  %vm9462_vm8 = vmmov %vm9448_vm9 }
 0x5a7   : > { %3819 = vrot.lane.b32.xlu0 %v8020_v13, %s5716_s13  ;;  %v4187_v58 = vpop.permute.xlu1 %4186 }
 0x5a8   : > { %4266 = vst.msk [vmem:[#allocation3 + $0x100] sm:$0xff] %vm9448_vm9, %v4187_v58  ;;  %vm9463_vm9 = vmmov %vm9449_vm6  ;;  %v4119_v58 = vld [vmem:[#allocation2 + $0x189] sm:$0xff] }
 0x5a9   : > { %v3804_v48 = vpop.permute.xlu0 %3803  ;;  %3053 = vrot.lane.b32.xlu1 %v4112_v24, %s5713_s19  ;;  %v8554_v24 = vld [vmem:[#allocation2 + $0x171] sm:$0xff] }
 0x5aa   : > { %3882 = vst.msk [vmem:[#allocation3 + $0x110] sm:$0xff] %vm9449_vm6, %v3804_v48  ;;  %vm9464_vm6 = vmmov %vm9450_vm2 }
 0x5ab   : > { %4012 = vrot.lane.b32.xlu0 %v8024_v18, %s5717_s21  ;;  %v3038_v45 = vpop.permute.xlu1 %3037 }
 0x5ac   : > { %3115 = vst.msk [vmem:[#allocation3 + $0x120] sm:$0xff] %vm9450_vm2, %v3038_v45  ;;  %vm9465_vm2 = vmmov %vm9451_vm3 }
 0x5ad   : > { %v3997_v33 = vpop.permute.xlu0 %3996  ;;  %v8499_v11 = vpop.f32.mrb[4].mxu1  ;;  %3245 = vrot.lane.b32.xlu1 %v8014_v55, %s5715_s29 }
 0x5ae   : > { %4075 = vst.msk [vmem:[#allocation3 + $0x110] sm:$0xff] %vm9451_vm3, %v3997_v33  ;;  %v4604_v9 = vpop.f32.mrb[5].mxu1  ;;  %vm9466_vm3 = vmmov %vm9452_vm4 }
 0x5af   : > { %4204 = vrot.lane.b32.xlu0 %v8502_v44, %s5718_s26  ;;  %v3230_v21 = vpop.permute.xlu1 %3229  ;;  %v4378_v28 = vld [vmem:[#allocation3 + $0x100] sm:$0xff]  ;;  %v4389_v9 = vld [vmem:[#allocation3 + $0x158] sm:$0xff] }
 0x5b0   : > { %3307 = vst.msk [vmem:[#allocation3 + $0x120] sm:$0xff] %vm9452_vm4, %v3230_v21  ;;  %4676 = vmatmul.mubr.f32.gmra.mrb[34].mxu1 %v4378_v28  ;;  %vm9467_vm4 = vmmov %vm9462_vm8 }
 0x5b1   : > { %v4189_v56 = vpop.permute.xlu0 %4188  ;;  %3437 = vrot.lane.b32.xlu1 %v8018_v49, %s5712_s16  ;;  %5578 = vmatprep.mubr.msk.f32.mxu1 %vm439_vm0, %v4381_v8  ;;  %v4391_v8 = vld [vmem:[#allocation3 + $0x168] sm:$0xff] }
 0x5b2   : > { %4267 = vst.msk [vmem:[#allocation3 + $0x110] sm:$0xff] %vm9453_vm12, %v4189_v56  ;;  %vm9468_vm12 = vmmov %vm9454_vm13 }
 0x5b3   : > { %3055 = vrot.lane.b32.xlu0 %v8452_v47, %s5713_s19  ;;  %v3422_v55 = vpop.permute.xlu1 %3421 }
 0x5b4   : > { %3499 = vst.msk [vmem:[#allocation3 + $0x120] sm:$0xff] %vm9454_vm13, %v3422_v55  ;;  %vm9469_vm13 = vmmov %vm9455_vm5  ;;  %v3928_v55 = vld [vmem:[#allocation2 + $0x198] sm:$0xff] }
 0x5b5   : > { %v3040_v15 = vpop.permute.xlu0 %3039  ;;  %3629 = vrot.lane.b32.xlu1 %v8486_v62, %s5714_s28 }
 0x5b6   : > { %3116 = vst.msk [vmem:[#allocation3 + $0x130] sm:$0xff] %vm9455_vm5, %v3040_v15  ;;  %vm9470_vm5 = vmmov %vm9461_vm1 }
 0x5b7   : > { %3247 = vrot.lane.b32.xlu0 %v8020_v13, %s5715_s29  ;;  %v3614_v39 = vpop.permute.xlu1 %3613 }
 0x5b8   : > { %3691 = vst.msk [vmem:[#allocation3 + $0x120] sm:$0xff] %vm9456_vm11, %v3614_v39  ;;  %vm9471_vm11 = vmmov %vm9466_vm3 }
 0x5b9   : > { %v3232_v6 = vpop.permute.xlu0 %3231  ;;  %v4380_v49 = vld [vmem:[#allocation3 + $0x110] sm:$0xff]  ;;  %3821 = vrot.lane.b32.xlu1 %v8032_v40, %s5716_s13 }
 0x5ba   : > { %3308 = vst.msk [vmem:[#allocation3 + $0x130] sm:$0xff] %vm9457_vm14, %v3232_v6  ;;  %4681 = vmatmul.mubr.f32.gmra.mrb[36].mxu1 %v4380_v49  ;;  %vm9472_vm14 = vmmov %vm9458_vm7 }
 0x5bb   : > { %3439 = vrot.lane.b32.xlu0 %v8024_v18, %s5712_s16  ;;  %5579 = vmatprep.mubr.msk.f32.mxu1 %vm439_vm0, %v4383_v41  ;;  %v3806_v60 = vpop.permute.xlu1 %3805 }
 0x5bc   : > { %3883 = vst.msk [vmem:[#allocation3 + $0x120] sm:$0xff] %vm9458_vm7, %v3806_v60  ;;  %vm9473_vm7 = vmmov %vm9468_vm12 }
 0x5bd   : > { %v3424_v30 = vpop.permute.xlu0 %3423  ;;  %4014 = vrot.lane.b32.xlu1 %v8034_v53, %s5717_s21 }
 0x5be   : > { %3500 = vst.msk [vmem:[#allocation3 + $0x130] sm:$0xff] %vm9459_vm15, %v3424_v30  ;;  %vm9474_vm15 = vmmov %vm9465_vm2 }
 0x5bf   : > { %3631 = vrot.lane.b32.xlu0 %v8502_v44, %s5714_s28  ;;  %v3999_v13 = vpop.permute.xlu1 %3998  ;;  %v8534_v32 = vpop.f32.mrb[6].mxu1 }
 0x5c0   : > { %4076 = vst.msk [vmem:[#allocation3 + $0x120] sm:$0xff] %vm9460_vm10, %v3999_v13  ;;  %v4609_v18 = vpop.f32.mrb[7].mxu1  ;;  %vm9475_vm10 = vmmov %vm9461_vm1 }
 0x5c1   : > { %v3616_v50 = vpop.permute.xlu0 %3615  ;;  %4206 = vrot.lane.b32.xlu1 %v8537_v59, %s5718_s26 }
 0x5c2   : > { %3692 = vst.msk [vmem:[#allocation3 + $0x130] sm:$0xff] %vm9461_vm1, %v3616_v50  ;;  %vm9476_vm1 = vmmov %vm9467_vm4  ;;  %v4121_v50 = vld [vmem:[#allocation2 + $0x1a1] sm:$0xff] }
 0x5c3   : > { %3823 = vrot.lane.b32.xlu0 %v8040_v1, %s5716_s13  ;;  %v4191_v12 = vpop.permute.xlu1 %4190 }
 0x5c4   : > { %4268 = vst.msk [vmem:[#allocation3 + $0x120] sm:$0xff] %vm9462_vm8, %v4191_v12  ;;  %vm9477_vm8 = vmmov %vm9463_vm9 }
 0x5c5   : > { %v3808_v2 = vpop.permute.xlu0 %3807  ;;  %3057 = vrot.lane.b32.xlu1 %v8486_v62, %s5713_s19 }
 0x5c6   : > { %3884 = vst.msk [vmem:[#allocation3 + $0x130] sm:$0xff] %vm9463_vm9, %v3808_v2  ;;  %vm9478_vm9 = vmmov %vm9464_vm6 }
 0x5c7   : > { %4016 = vrot.lane.b32.xlu0 %v8042_v42, %s5717_s21  ;;  %v3042_v25 = vpop.permute.xlu1 %3041 }
 0x5c8   : > { %3117 = vst.msk [vmem:[#allocation3 + $0x140] sm:$0xff] %vm9464_vm6, %v3042_v25  ;;  %vm9479_vm6 = vmmov %vm9465_vm2 }
 0x5c9   : > { %v4001_v51 = vpop.permute.xlu0 %4000  ;;  %v8551_v19 = vpop.f32.mrb[8].mxu1  ;;  %3249 = vrot.lane.b32.xlu1 %v8032_v40, %s5715_s29 }
 0x5ca   : > { %4077 = vst.msk [vmem:[#allocation3 + $0x130] sm:$0xff] %vm9465_vm2, %v4001_v51  ;;  %v4614_v35 = vpop.f32.mrb[9].mxu1  ;;  %vm9480_vm2 = vmmov %vm9466_vm3 }
 0x5cb   : > { %4208 = vrot.lane.b32.xlu0 %v8554_v24, %s5718_s26  ;;  %v3234_v26 = vpop.permute.xlu1 %3233  ;;  %v4382_v17 = vld [vmem:[#allocation3 + $0x120] sm:$0xff] }
 0x5cc   : > { %3309 = vst.msk [vmem:[#allocation3 + $0x140] sm:$0xff] %vm9466_vm3, %v3234_v26  ;;  %4686 = vmatmul.mubr.f32.gmra.mrb[38].mxu1 %v4382_v17  ;;  %vm9481_vm3 = vmmov %vm9476_vm1 }
 0x5cd   : > { %v4193_v4 = vpop.permute.xlu0 %4192  ;;  %3441 = vrot.lane.b32.xlu1 %v8034_v53, %s5712_s16  ;;  %5580 = vmatprep.mubr.msk.f32.mxu1 %vm439_vm0, %v4385_v23 }
 0x5ce   : > { %4269 = vst.msk [vmem:[#allocation3 + $0x130] sm:$0xff] %vm9467_vm4, %v4193_v4  ;;  %vm9482_vm4 = vmmov %vm9473_vm7 }
 0x5cf   : > { %3059 = vrot.lane.b32.xlu0 %v8502_v44, %s5713_s19  ;;  %v3426_v40 = vpop.permute.xlu1 %3425 }
 0x5d0   : > { %3501 = vst.msk [vmem:[#allocation3 + $0x140] sm:$0xff] %vm9468_vm12, %v3426_v40  ;;  %vm9483_vm12 = vmmov %vm9478_vm9  ;;  %v4395_v40 = vld [vmem:[#allocation3 + $0x188] sm:$0xff] }
 0x5d1   : > { %v3044_v47 = vpop.permute.xlu0 %3043  ;;  %3633 = vrot.lane.b32.xlu1 %v8537_v59, %s5714_s28 }
 0x5d2   : > { %3118 = vst.msk [vmem:[#allocation3 + $0x150] sm:$0xff] %vm9469_vm13, %v3044_v47  ;;  %vm9484_vm13 = vmmov %vm9470_vm5 }
 0x5d3   : > { %3251 = vrot.lane.b32.xlu0 %v8040_v1, %s5715_s29  ;;  %v3618_v10 = vpop.permute.xlu1 %3617  ;;  %v3926_v1 = vld [vmem:[#allocation2 + $0x180] sm:$0xff] }
 0x5d4   : > { %3693 = vst.msk [vmem:[#allocation3 + $0x140] sm:$0xff] %vm9470_vm5, %v3618_v10  ;;  %vm9485_vm5 = vmmov %vm9480_vm2 }
 0x5d5   : > { %v3236_v22 = vpop.permute.xlu0 %3235  ;;  %v4384_v53 = vld [vmem:[#allocation3 + $0x130] sm:$0xff]  ;;  %3825 = vrot.lane.b32.xlu1 %v8048_v43, %s5716_s13 }
 0x5d6   : > { %3310 = vst.msk [vmem:[#allocation3 + $0x150] sm:$0xff] %vm9471_vm11, %v3236_v22  ;;  %4691 = vmatmul.mubr.f32.gmra.mrb[40].mxu1 %v4384_v53  ;;  %vm9486_vm11 = vmmov %vm9477_vm8 }
 0x5d7   : > { %3443 = vrot.lane.b32.xlu0 %v8042_v42, %s5712_s16  ;;  %5581 = vmatprep.mubr.msk.f32.mxu1 %vm439_vm0, %v4387_v46  ;;  %v3810_v27 = vpop.permute.xlu1 %3809 }
 0x5d8   : > { %3885 = vst.msk [vmem:[#allocation3 + $0x140] sm:$0xff] %vm9472_vm14, %v3810_v27  ;;  %vm9487_vm14 = vmmov %vm9482_vm4 }
 0x5d9   : > { %v3428_v3 = vpop.permute.xlu0 %3427  ;;  %4018 = vrot.lane.b32.xlu1 %v3926_v1, %s5717_s21 }
 0x5da   : > { %3502 = vst.msk [vmem:[#allocation3 + $0x150] sm:$0xff] %vm9473_vm7, %v3428_v3  ;;  %vm9488_vm7 = vmmov %vm9479_vm6 }
 0x5db   : > { %3635 = vrot.lane.b32.xlu0 %v8554_v24, %s5714_s28  ;;  %v4003_v34 = vpop.permute.xlu1 %4002  ;;  %v8585_v31 = vpop.f32.mrb[10].mxu1 }
 0x5dc   : > { %4078 = vst.msk [vmem:[#allocation3 + $0x140] sm:$0xff] %vm9474_vm15, %v4003_v34  ;;  %v4619_v42 = vpop.f32.mrb[11].mxu1  ;;  %vm9489_vm15 = vmmov %vm9475_vm10 }
 0x5dd   : > { %v3620_v0 = vpop.permute.xlu0 %3619  ;;  %4210 = vrot.lane.b32.xlu1 %v4118_v37, %s5718_s26 }
 0x5de   : > { %3694 = vst.msk [vmem:[#allocation3 + $0x150] sm:$0xff] %vm9475_vm10, %v3620_v0  ;;  %vm9490_vm10 = vmmov %vm9476_vm1 }
 0x5df   : > { %3827 = vrot.lane.b32.xlu0 %v8054_v52, %s5716_s13  ;;  %v4195_v7 = vpop.permute.xlu1 %4194 }
 0x5e0   : > { %4270 = vst.msk [vmem:[#allocation3 + $0x140] sm:$0xff] %vm9476_vm1, %v4195_v7  ;;  %vm9491_vm1 = vmmov %vm9477_vm8 }
 0x5e1   : > { %v3812_v54 = vpop.permute.xlu0 %3811  ;;  %3061 = vrot.lane.b32.xlu1 %v8537_v59, %s5713_s19 }
 0x5e2   : > { %3886 = vst.msk [vmem:[#allocation3 + $0x150] sm:$0xff] %vm9477_vm8, %v3812_v54  ;;  %vm9492_vm8 = vmmov %vm9478_vm9 }
 0x5e3   : > { %4020 = vrot.lane.b32.xlu0 %v3927_v16, %s5717_s21  ;;  %v3046_v61 = vpop.permute.xlu1 %3045 }
 0x5e4   : > { %3119 = vst.msk [vmem:[#allocation3 + $0x160] sm:$0xff] %vm9478_vm9, %v3046_v61  ;;  %vm9493_vm9 = vmmov %vm9479_vm6  ;;  %v4397_v61 = vld [vmem:[#allocation3 + $0x198] sm:$0xff] }
 0x5e5   : > { %v4005_v36 = vpop.permute.xlu0 %4004  ;;  %v8598_v63 = vpop.f32.mrb[12].mxu1  ;;  %3253 = vrot.lane.b32.xlu1 %v8048_v43, %s5715_s29 }
 0x5e6   : > { %4079 = vst.msk [vmem:[#allocation3 + $0x150] sm:$0xff] %vm9479_vm6, %v4005_v36  ;;  %v4624_v62 = vpop.f32.mrb[13].mxu1  ;;  %vm9494_vm6 = vmmov %vm9480_vm2 }
 0x5e7   : > { %4212 = vrot.lane.b32.xlu0 %v4119_v58, %s5718_s26  ;;  %v3238_v48 = vpop.permute.xlu1 %3237  ;;  %v4386_v45 = vld [vmem:[#allocation3 + $0x140] sm:$0xff] }
 0x5e8   : > { %3311 = vst.msk [vmem:[#allocation3 + $0x160] sm:$0xff] %vm9480_vm2, %v3238_v48  ;;  %4696 = vmatmul.mubr.f32.gmra.mrb[42].mxu1 %v4386_v45  ;;  %vm9495_vm2 = vmmov %vm9481_vm3 }
 0x5e9   : > { %v4197_v33 = vpop.permute.xlu0 %4196  ;;  %3445 = vrot.lane.b32.xlu1 %v3926_v1, %s5712_s16  ;;  %5582 = vmatprep.mubr.msk.f32.mxu1 %vm439_vm0, %v4389_v9 }
 0x5ea   : > { %4271 = vst.msk [vmem:[#allocation3 + $0x150] sm:$0xff] %vm9481_vm3, %v4197_v33  ;;  %vm9496_vm3 = vmmov %vm9482_vm4  ;;  %v4399_v33 = vld [vmem:[#allocation3 + $0x1a8] sm:$0xff] }
 0x5eb   : > { %3063 = vrot.lane.b32.xlu0 %v8554_v24, %s5713_s19  ;;  %v3430_v44 = vpop.permute.xlu1 %3429  ;;  %v4393_v24 = vld [vmem:[#allocation3 + $0x178] sm:$0xff] }
 0x5ec   : > { %3503 = vst.msk [vmem:[#allocation3 + $0x160] sm:$0xff] %vm9482_vm4, %v3430_v44  ;;  %vm9497_vm4 = vmmov %vm9492_vm8 }
 0x5ed   : > { %v3048_v43 = vpop.permute.xlu0 %3047  ;;  %3637 = vrot.lane.b32.xlu1 %v4118_v37, %s5714_s28 }
 0x5ee   : > { %3120 = vst.msk [vmem:[#allocation3 + $0x170] sm:$0xff] %vm9483_vm12, %v3048_v43  ;;  %vm9498_vm12 = vmmov %vm9484_vm13 }
 0x5ef   : > { %3255 = vrot.lane.b32.xlu0 %v8054_v52, %s5715_s29  ;;  %v3622_v21 = vpop.permute.xlu1 %3621  ;;  %v4120_v52 = vld [vmem:[#allocation2 + $0x199] sm:$0xff] }
 0x5f0   : > { %3695 = vst.msk [vmem:[#allocation3 + $0x160] sm:$0xff] %vm9484_vm13, %v3622_v21  ;;  %vm9499_vm13 = vmmov %vm9485_vm5 }
 0x5f1   : > { %v3240_v28 = vpop.permute.xlu0 %3239  ;;  %v4388_v56 = vld [vmem:[#allocation3 + $0x150] sm:$0xff]  ;;  %3829 = vrot.lane.b32.xlu1 %v8063_v57, %s5716_s13 }
 0x5f2   : > { %3312 = vst.msk [vmem:[#allocation3 + $0x170] sm:$0xff] %vm9485_vm5, %v3240_v28  ;;  %4701 = vmatmul.mubr.f32.gmra.mrb[44].mxu1 %v4388_v56  ;;  %v3929_v57 = vld [vmem:[#allocation2 + $0x1a0] sm:$0xff]  ;;  %vm9500_vm5 = vmmov %vm9491_vm1 }
 0x5f3   : > { %3447 = vrot.lane.b32.xlu0 %v3927_v16, %s5712_s16  ;;  %5583 = vmatprep.mubr.msk.f32.mxu1 %vm439_vm0, %v4391_v8  ;;  %v3814_v15 = vpop.permute.xlu1 %3813 }
 0x5f4   : > { %3887 = vst.msk [vmem:[#allocation3 + $0x160] sm:$0xff] %vm9486_vm11, %v3814_v15  ;;  %vm9501_vm11 = vmmov %vm9496_vm3 }
 0x5f5   : > { %v3432_v39 = vpop.permute.xlu0 %3431  ;;  %4022 = vrot.lane.b32.xlu1 %v3928_v55, %s5717_s21 }
 0x5f6   : > { %3504 = vst.msk [vmem:[#allocation3 + $0x170] sm:$0xff] %vm9487_vm14, %v3432_v39  ;;  %vm9502_vm14 = vmmov %vm9488_vm7 }
 0x5f7   : > { %3639 = vrot.lane.b32.xlu0 %v4119_v58, %s5714_s28  ;;  %v4007_v6 = vpop.permute.xlu1 %4006  ;;  %v8625_v49 = vpop.f32.mrb[14].mxu1 }
 0x5f8   : > { %4080 = vst.msk [vmem:[#allocation3 + $0x160] sm:$0xff] %vm9488_vm7, %v4007_v6  ;;  %v4629_v60 = vpop.f32.mrb[15].mxu1  ;;  %vm9503_vm7 = vmmov %vm9498_vm12 }
 0x5f9   : > { %v3624_v41 = vpop.permute.xlu0 %3623  ;;  %4214 = vrot.lane.b32.xlu1 %v4120_v52, %s5718_s26 }
 0x5fa   : > { %3696 = vst.msk [vmem:[#allocation3 + $0x170] sm:$0xff] %vm9489_vm15, %v3624_v41  ;;  %vm9504_vm15 = vmmov %vm9495_vm2 }
 0x5fb   : > { %4024 = vrot.lane.b32.xlu0 %v3929_v57, %s5717_s21  ;;  %v4199_v30 = vpop.permute.xlu1 %4198 }
 0x5fc   : > { %4272 = vst.msk [vmem:[#allocation3 + $0x160] sm:$0xff] %vm9490_vm10, %v4199_v30  ;;  %vm9505_vm10 = vmmov %vm9491_vm1  ;;  %v4401_v30 = vld [vmem:[#allocation3 + $0x1b8] sm:$0xff] }
 0x5fd   : > { %v3816_v13 = vpop.permute.xlu0 %3815  ;;  %3831 = vrot.lane.b32.xlu1 %v8065_v29, %s5716_s13 }
 0x5fe   : > { %3888 = vst.msk [vmem:[#allocation3 + $0x170] sm:$0xff] %vm9491_vm1, %v3816_v13  ;;  %vm9506_vm1 = vmmov %vm9497_vm4 }
 0x5ff   : > { %v3050_v18 = vpop.permute.xlu1 %3049 }
 0x600   : > { %3121 = vst.msk [vmem:[#allocation3 + $0x180] sm:$0xff] %vm9492_vm8, %v3050_v18  ;;  %vm9507_vm8 = vmmov %vm9493_vm9 }
 0x601   : > { %v4009_v59 = vpop.permute.xlu0 %4008  ;;  %v8636_v12 = vpop.f32.mrb[16].mxu1  ;;  %4216 = vrot.lane.b32.xlu1 %v4121_v50, %s5718_s26 }
 0x602   : > { %4081 = vst.msk [vmem:[#allocation3 + $0x170] sm:$0xff] %vm9493_vm9, %v4009_v59  ;;  %v4634_v2 = vpop.f32.mrb[17].mxu1  ;;  %vm9508_vm9 = vmmov %vm9494_vm6 }
 0x603   : > { %v3242_v25 = vpop.permute.xlu1 %3241  ;;  %v4390_v51 = vld [vmem:[#allocation3 + $0x160] sm:$0xff] }
 0x604   : > { %3313 = vst.msk [vmem:[#allocation3 + $0x180] sm:$0xff] %vm9494_vm6, %v3242_v25  ;;  %4706 = vmatmul.mubr.f32.gmra.mrb[46].mxu1 %v4390_v51  ;;  %vm9509_vm6 = vmmov %vm9495_vm2  ;;  %v4403_v25 = vld [vmem:[#allocation3 + $0x1c8] sm:$0xff] }
 0x605   : > { %v4201_v35 = vpop.permute.xlu0 %4200  ;;  %5584 = vmatprep.mubr.msk.f32.mxu1 %vm439_vm0, %v4393_v24 }
 0x606   : > { %4273 = vst.msk [vmem:[#allocation3 + $0x170] sm:$0xff] %vm9495_vm2, %v4201_v35  ;;  %vm9510_vm2 = vmmov %vm9496_vm3 }
 0x607   : > { %v3434_v29 = vpop.permute.xlu1 %3433 }
 0x608   : > { %3505 = vst.msk [vmem:[#allocation3 + $0x180] sm:$0xff] %vm9496_vm3, %v3434_v29  ;;  %vm9511_vm3 = vmmov %vm9506_vm1 }
 0x609   : > { %v3052_v26 = vpop.permute.xlu0 %3051 }
 0x60a   : > { %3122 = vst.msk [vmem:[#allocation3 + $0x190] sm:$0xff] %vm9497_vm4, %v3052_v26  ;;  %vm9512_vm4 = vmmov %vm9503_vm7 }
 0x60b   : > { %v3626_v17 = vpop.permute.xlu1 %3625 }
 0x60c   : > { %3697 = vst.msk [vmem:[#allocation3 + $0x180] sm:$0xff] %vm9498_vm12, %v3626_v17  ;;  %vm9513_vm12 = vmmov %vm9508_vm9 }
 0x60d   : > { %v3244_v4 = vpop.permute.xlu0 %3243  ;;  %v4392_v23 = vld [vmem:[#allocation3 + $0x170] sm:$0xff] }
 0x60e   : > { %3314 = vst.msk [vmem:[#allocation3 + $0x190] sm:$0xff] %vm9499_vm13, %v3244_v4  ;;  %4711 = vmatmul.mubr.f32.gmra.mrb[48].mxu1 %v4392_v23  ;;  %vm9514_vm13 = vmmov %vm9500_vm5 }
 0x60f   : > { %5585 = vmatprep.mubr.msk.f32.mxu1 %vm439_vm0, %v4395_v40  ;;  %v3818_v47 = vpop.permute.xlu1 %3817 }
 0x610   : > { %3889 = vst.msk [vmem:[#allocation3 + $0x180] sm:$0xff] %vm9500_vm5, %v3818_v47  ;;  %vm9515_vm5 = vmmov %vm9510_vm2 }
 0x611   : > { %v3436_v10 = vpop.permute.xlu0 %3435 }
 0x612   : > { %3506 = vst.msk [vmem:[#allocation3 + $0x190] sm:$0xff] %vm9501_vm11, %v3436_v10  ;;  %vm9516_vm11 = vmmov %vm9507_vm8 }
 0x613   : > { %v4011_v22 = vpop.permute.xlu1 %4010  ;;  %v8650_v53 = vpop.f32.mrb[18].mxu1 }
 0x614   : > { %4082 = vst.msk [vmem:[#allocation3 + $0x180] sm:$0xff] %vm9502_vm14, %v4011_v22  ;;  %v4639_v27 = vpop.f32.mrb[19].mxu1  ;;  %vm9517_vm14 = vmmov %vm9512_vm4 }
 0x615   : > { %v3628_v46 = vpop.permute.xlu0 %3627 }
 0x616   : > { %3698 = vst.msk [vmem:[#allocation3 + $0x190] sm:$0xff] %vm9503_vm7, %v3628_v46  ;;  %vm9518_vm7 = vmmov %vm9509_vm6 }
 0x617   : > { %v4203_v3 = vpop.permute.xlu1 %4202 }
 0x618   : > { %4274 = vst.msk [vmem:[#allocation3 + $0x180] sm:$0xff] %vm9504_vm15, %v4203_v3  ;;  %vm9519_vm15 = vmmov %vm9505_vm10 }
 0x619   : > { %v3820_v1 = vpop.permute.xlu0 %3819 }
 0x61a   : > { %3890 = vst.msk [vmem:[#allocation3 + $0x190] sm:$0xff] %vm9505_vm10, %v3820_v1  ;;  %vm9520_vm10 = vmmov %vm9506_vm1  ;;  %v4405_v1 = vld [vmem:[#allocation3 + $0x1d8] sm:$0xff] }
 0x61b   : > { %v3054_v34 = vpop.permute.xlu1 %3053 }
 0x61c   : > { %3123 = vst.msk [vmem:[#allocation3 + $0x1a0] sm:$0xff] %vm9506_vm1, %v3054_v34  ;;  %vm9521_vm1 = vmmov %vm9507_vm8 }
 0x61d   : > { %v4013_v0 = vpop.permute.xlu0 %4012  ;;  %v8657_v42 = vpop.f32.mrb[20].mxu1 }
 0x61e   : > { %4083 = vst.msk [vmem:[#allocation3 + $0x190] sm:$0xff] %vm9507_vm8, %v4013_v0  ;;  %v4644_v37 = vpop.f32.mrb[21].mxu1  ;;  %vm9522_vm8 = vmmov %vm9508_vm9 }
 0x61f   : > { %v3246_v7 = vpop.permute.xlu1 %3245  ;;  %v4394_v54 = vld [vmem:[#allocation3 + $0x180] sm:$0xff] }
 0x620   : > { %3315 = vst.msk [vmem:[#allocation3 + $0x1a0] sm:$0xff] %vm9508_vm9, %v3246_v7  ;;  %4716 = vmatmul.mubr.f32.gmra.mrb[50].mxu1 %v4394_v54  ;;  %vm9523_vm9 = vmmov %vm9509_vm6  ;;  %v4407_v7 = vld [vmem:[#allocation3 + $0x1e8] sm:$0xff] }
 0x621   : > { %v4205_v16 = vpop.permute.xlu0 %4204  ;;  %5586 = vmatprep.mubr.msk.f32.mxu1 %vm439_vm0, %v4397_v61 }
 0x622   : > { %4275 = vst.msk [vmem:[#allocation3 + $0x190] sm:$0xff] %vm9509_vm6, %v4205_v16  ;;  %vm9524_vm6 = vmmov %vm9510_vm2 }
 0x623   : > { %v3438_v36 = vpop.permute.xlu1 %3437 }
 0x624   : > { %3507 = vst.msk [vmem:[#allocation3 + $0x1a0] sm:$0xff] %vm9510_vm2, %v3438_v36  ;;  %vm9525_vm2 = vmmov %vm9511_vm3 }
 0x625   : > { %v3056_v62 = vpop.permute.xlu0 %3055 }
 0x626   : > { %3124 = vst.msk [vmem:[#allocation3 + $0x1b0] sm:$0xff] %vm9511_vm3, %v3056_v62  ;;  %vm9526_vm3 = vmmov %vm9512_vm4  ;;  %v4929_v62 = vld [vmem:[%s9305_s10] sm:$0xff] }
 0x627   : > { %v3630_v58 = vpop.permute.xlu1 %3629 }
 0x628   : > { %3699 = vst.msk [vmem:[#allocation3 + $0x1a0] sm:$0xff] %vm9512_vm4, %v3630_v58  ;;  %vm9527_vm4 = vmmov %vm9522_vm8  ;;  %v4930_v58 = vld [vmem:[%s9305_s10 + $0x8] sm:$0xff] }
 0x629   : > { %v3248_v48 = vpop.permute.xlu0 %3247  ;;  %v4396_v45 = vld [vmem:[#allocation3 + $0x190] sm:$0xff] }
 0x62a   : > { %3316 = vst.msk [vmem:[#allocation3 + $0x1b0] sm:$0xff] %vm9513_vm12, %v3248_v48  ;;  %4721 = vmatmul.mubr.f32.gmra.mrb[52].mxu1 %v4396_v45  ;;  %vm9528_vm12 = vmmov %vm9514_vm13 }
 0x62b   : > { %5587 = vmatprep.mubr.msk.f32.mxu1 %vm439_vm0, %v4399_v33  ;;  %v3822_v9 = vpop.permute.xlu1 %3821  ;;  %v5678_v33 = vpack.c.bf16 %v4930_v58, %v4929_v62 }
 0x62c   : > { %3891 = vst.msk [vmem:[#allocation3 + $0x1a0] sm:$0xff] %vm9514_vm13, %v3822_v9  ;;  %vm9529_vm13 = vmmov %vm9515_vm5 }
 0x62d   : > { %v3440_v44 = vpop.permute.xlu0 %3439  ;;  %5679 = vmatpush3.bf16.msra.mxu0 %v5678_v33 }
 0x62e   : > { %3508 = vst.msk [vmem:[#allocation3 + $0x1b0] sm:$0xff] %vm9515_vm5, %v3440_v44  ;;  %vm9530_vm5 = vmmov %vm9521_vm1 }
 0x62f   : > { %v4015_v43 = vpop.permute.xlu1 %4014  ;;  %v8670_v21 = vpop.f32.mrb[22].mxu1 }
 0x630   : > { %4084 = vst.msk [vmem:[#allocation3 + $0x1a0] sm:$0xff] %vm9516_vm11, %v4015_v43  ;;  %v4649_v56 = vpop.f32.mrb[23].mxu1  ;;  %vm9531_vm11 = vmmov %vm9526_vm3 }
 0x631   : > { %v3632_v28 = vpop.permute.xlu0 %3631 }
 0x632   : > { %3700 = vst.msk [vmem:[#allocation3 + $0x1b0] sm:$0xff] %vm9517_vm14, %v3632_v28  ;;  %vm9532_vm14 = vmmov %vm9518_vm7 }
 0x633   : > { %v4207_v8 = vpop.permute.xlu1 %4206 }
 0x634   : > { %4276 = vst.msk [vmem:[#allocation3 + $0x1a0] sm:$0xff] %vm9518_vm7, %v4207_v8  ;;  %vm9533_vm7 = vmmov %vm9528_vm12 }
 0x635   : > { %v3824_v55 = vpop.permute.xlu0 %3823 }
 0x636   : > { %3892 = vst.msk [vmem:[#allocation3 + $0x1b0] sm:$0xff] %vm9519_vm15, %v3824_v55  ;;  %vm9534_vm15 = vmmov %vm9525_vm2 }
 0x637   : > { %v3058_v15 = vpop.permute.xlu1 %3057 }
 0x638   : > { %3125 = vst.msk [vmem:[#allocation3 + $0x1c0] sm:$0xff] %vm9520_vm10, %v3058_v15  ;;  %vm9535_vm10 = vmmov %vm9521_vm1  ;;  %v4409_v15 = vld [vmem:[#allocation3 + $0x1f8] sm:$0xff] }
 0x639   : > { %v4017_v39 = vpop.permute.xlu0 %4016  ;;  %v8677_v52 = vpop.f32.mrb[24].mxu1 }
 0x63a   : > { %4085 = vst.msk [vmem:[#allocation3 + $0x1b0] sm:$0xff] %vm9521_vm1, %v4017_v39  ;;  %v4654_v6 = vpop.f32.mrb[25].mxu1  ;;  %vm9536_vm1 = vmmov %vm9527_vm4 }
 0x63b   : > { %v3250_v57 = vpop.permute.xlu1 %3249  ;;  %v4398_v41 = vld [vmem:[#allocation3 + $0x1a0] sm:$0xff] }
 0x63c   : > { %3317 = vst.msk [vmem:[#allocation3 + $0x1c0] sm:$0xff] %vm9522_vm8, %v3250_v57  ;;  %4726 = vmatmul.mubr.f32.gmra.mrb[54].mxu1 %v4398_v41  ;;  %vm9537_vm8 = vmmov %vm9523_vm9 }
 0x63d   : > { %v4209_v60 = vpop.permute.xlu0 %4208  ;;  %5588 = vmatprep.mubr.msk.f32.mxu1 %vm439_vm0, %v4401_v30 }
 0x63e   : > { %4277 = vst.msk [vmem:[#allocation3 + $0x1b0] sm:$0xff] %vm9523_vm9, %v4209_v60  ;;  %vm9538_vm9 = vmmov %vm9524_vm6 }
 0x63f   : > { %v3442_v13 = vpop.permute.xlu1 %3441 }
 0x640   : > { %3509 = vst.msk [vmem:[#allocation3 + $0x1c0] sm:$0xff] %vm9524_vm6, %v3442_v13  ;;  %vm9539_vm6 = vmmov %vm9525_vm2 }
 0x641   : > { %v3060_v50 = vpop.permute.xlu0 %3059 }
 0x642   : > { %3126 = vst.msk [vmem:[#allocation3 + $0x1d0] sm:$0xff] %vm9525_vm2, %v3060_v50  ;;  %vm9540_vm2 = vmmov %vm9526_vm3 }
 0x643   : > { %v3634_v18 = vpop.permute.xlu1 %3633 }
 0x644   : > { %3701 = vst.msk [vmem:[#allocation3 + $0x1c0] sm:$0xff] %vm9526_vm3, %v3634_v18  ;;  %vm9541_vm3 = vmmov %vm9536_vm1 }
 0x645   : > { %v3252_v59 = vpop.permute.xlu0 %3251  ;;  %v4400_v2 = vld [vmem:[#allocation3 + $0x1b0] sm:$0xff] }
 0x646   : > { %3318 = vst.msk [vmem:[#allocation3 + $0x1d0] sm:$0xff] %vm9527_vm4, %v3252_v59  ;;  %4731 = vmatmul.mubr.f32.gmra.mrb[56].mxu1 %v4400_v2  ;;  %vm9542_vm4 = vmmov %vm9533_vm7 }
 0x647   : > { %5589 = vmatprep.mubr.msk.f32.mxu1 %vm439_vm0, %v4403_v25  ;;  %v3826_v51 = vpop.permute.xlu1 %3825 }
 0x648   : > { %3893 = vst.msk [vmem:[#allocation3 + $0x1c0] sm:$0xff] %vm9528_vm12, %v3826_v51  ;;  %vm9543_vm12 = vmmov %vm9538_vm9 }
 0x649   : > { %v3444_v35 = vpop.permute.xlu0 %3443 }
 0x64a   : > { %3510 = vst.msk [vmem:[#allocation3 + $0x1d0] sm:$0xff] %vm9529_vm13, %v3444_v35  ;;  %vm9544_vm13 = vmmov %vm9530_vm5 }
 0x64b   : > { %v4019_v24 = vpop.permute.xlu1 %4018  ;;  %v8690_v29 = vpop.f32.mrb[26].mxu1 }
 0x64c   : > { %4086 = vst.msk [vmem:[#allocation3 + $0x1c0] sm:$0xff] %vm9530_vm5, %v4019_v24  ;;  %v4659_v17 = vpop.f32.mrb[27].mxu1  ;;  %vm9545_vm5 = vmmov %vm9540_vm2 }
 0x64d   : > { %v3636_v26 = vpop.permute.xlu0 %3635 }
 0x64e   : > { %3702 = vst.msk [vmem:[#allocation3 + $0x1d0] sm:$0xff] %vm9531_vm11, %v3636_v26  ;;  %vm9546_vm11 = vmmov %vm9537_vm8 }
 0x64f   : > { %v4211_v4 = vpop.permute.xlu1 %4210 }
 0x650   : > { %4278 = vst.msk [vmem:[#allocation3 + $0x1c0] sm:$0xff] %vm9532_vm14, %v4211_v4  ;;  %vm9547_vm14 = vmmov %vm9542_vm4 }
 0x651   : > { %v3828_v23 = vpop.permute.xlu0 %3827 }
 0x652   : > { %3894 = vst.msk [vmem:[#allocation3 + $0x1d0] sm:$0xff] %vm9533_vm7, %v3828_v23  ;;  %vm9548_vm7 = vmmov %vm9535_vm10 }
 0x653   : > { %v3062_v40 = vpop.permute.xlu1 %3061 }
 0x654   : > { %3127 = vst.msk [vmem:[#allocation3 + $0x1e0] sm:$0xff] %vm9534_vm15, %v3062_v40  ;;  %vm9549_vm15 = vmmov %vm9537_vm8 }
 0x655   : > { %v4021_v47 = vpop.permute.xlu0 %4020  ;;  %v8697_v10 = vpop.f32.mrb[28].mxu1 }
 0x656   : > { %4087 = vst.msk [vmem:[#allocation3 + $0x1d0] sm:$0xff] %vm9535_vm10, %v4021_v47  ;;  %v4664_v22 = vpop.f32.mrb[29].mxu1  ;;  %vm9550_vm10 = vcmask 1040384  }
 0x657   : > { %v3254_v46 = vpop.permute.xlu1 %3253  ;;  %v4402_v27 = vld [vmem:[#allocation3 + $0x1c0] sm:$0xff] }
 0x658   : > { %3319 = vst.msk [vmem:[#allocation3 + $0x1e0] sm:$0xff] %vm9536_vm1, %v3254_v46  ;;  %4736 = vmatmul.mubr.f32.gmra.mrb[58].mxu1 %v4402_v27  ;;  %v8750_v27 = vld [vmem:[%s9302_s7] ss:$0 sm:$0xff] }
 0x659   : > { %v4213_v3 = vpop.permute.xlu0 %4212  ;;  %5590 = vmatprep.mubr.msk.f32.mxu1 %vm439_vm0, %v4405_v1  ;;  %v8758_v1 = vadd.f32 %v8750_v27, %v8483_v38  ;;  %v8791_v58 = vadd.f32 %v8750_v27, %v8598_v63 }
 0x65a   : > { %4279 = vst.msk [vmem:[#allocation3 + $0x1d0] sm:$0xff] %vm9537_vm8, %v4213_v3  ;;  %v8754_v3 = vadd.f32 %v8750_v27, %v8499_v11 }
 0x65b   : > { %v3446_v34 = vpop.permute.xlu1 %3445  ;;  %v4827_v11 = vmul.f32 %v8758_v1, %v8758_v1 }
 0x65c   : > { %3511 = vst.msk [vmem:[#allocation3 + $0x1e0] sm:$0xff] %vm9538_vm9, %v3446_v34  ;;  %v4759_v38 = vsel %vm439_vm0, %v8754_v3, 0.0 }
 0x65d   : > { %v3064_v0 = vpop.permute.xlu0 %3063 }
 0x65e   : > { %3128 = vst.msk [vmem:[#allocation3 + $0x1f0] sm:$0xff] %vm9539_vm6, %v3064_v0  ;;  %v8764_v0 = vadd.f32 %v8750_v27, %v8534_v32  ;;  %v8780_v32 = vadd.f32 %v8750_v27, %v8585_v31 }
 0x65f   : > { %v3638_v37 = vpop.permute.xlu1 %3637 }
 0x660   : > { %3703 = vst.msk [vmem:[#allocation3 + $0x1e0] sm:$0xff] %vm9540_vm2, %v3638_v37 }
 0x661   : > { %v3256_v54 = vpop.permute.xlu0 %3255  ;;  %v4404_v16 = vld [vmem:[#allocation3 + $0x1d0] sm:$0xff] }
 0x662   : > { %3320 = vst.msk [vmem:[#allocation3 + $0x1f0] sm:$0xff] %vm9541_vm3, %v3256_v54  ;;  %4741 = vmatmul.mubr.f32.gmra.mrb[60].mxu1 %v4404_v16  ;;  %v8770_v54 = vadd.f32 %v8750_v27, %v8551_v19  ;;  %v4829_v16 = vmul.f32 %v8764_v0, %v8764_v0  ;;  %v4761_v19 = vsel %vm439_vm0, %v8764_v0, 0.0 }
 0x663   : > { %5591 = vmatprep.mubr.msk.f32.mxu1 %vm439_vm0, %v4407_v7  ;;  %v3830_v61 = vpop.permute.xlu1 %3829  ;;  %v4828_v7 = vmul.f32 %v8754_v3, %v8754_v3 }
 0x664   : > { %3895 = vst.msk [vmem:[#allocation3 + $0x1e0] sm:$0xff] %vm9542_vm4, %v3830_v61  ;;  %v4758_v61 = vsel %vm439_vm0, %v8758_v1, 0.0  ;;  %v4830_v62 = vmul.f32 %v8770_v54, %v8770_v54  ;;  %v4862_v31 = vsel %vm439_vm0, %v4829_v16, 0.0  ;;  %v8839_v16 = vadd.f32 %v8750_v27, %v8670_v21 }
 0x665   : > { %v3448_v36 = vpop.permute.xlu0 %3447  ;;  %v4760_v33 = vadd.f32 %v4759_v38, %v4758_v61 }
 0x666   : > { %3512 = vst.msk [vmem:[#allocation3 + $0x1f0] sm:$0xff] %vm9543_vm12, %v3448_v36  ;;  %v4860_v36 = vsel %vm439_vm0, %v4828_v7, 0.0 }
 0x667   : > { %v4023_v48 = vpop.permute.xlu1 %4022  ;;  %v8716_v45 = vpop.f32.mrb[30].mxu1  ;;  %v4762_v63 = vadd.f32 %v4761_v19, %v4760_v33 }
 0x668   : > { %4088 = vst.msk [vmem:[#allocation3 + $0x1e0] sm:$0xff] %vm9544_vm13, %v4023_v48  ;;  %v4669_v44 = vpop.f32.mrb[31].mxu1  ;;  %v4859_v48 = vsel %vm439_vm0, %v4827_v11, 0.0 }
 0x669   : > { %v3640_v9 = vpop.permute.xlu0 %3639  ;;  %v4831_v44 = vmul.f32 %v8780_v32, %v8780_v32 }
 0x66a   : > { %3704 = vst.msk [vmem:[#allocation3 + $0x1f0] sm:$0xff] %vm9545_vm5, %v3640_v9  ;;  %v4763_v9 = vsel %vm439_vm0, %v8770_v54, 0.0 }
 0x66b   : > { %v4215_v43 = vpop.permute.xlu1 %4214 }
 0x66c   : > { %4280 = vst.msk [vmem:[#allocation3 + $0x1e0] sm:$0xff] %vm9546_vm11, %v4215_v43  ;;  %v8801_v43 = vadd.f32 %v8750_v27, %v8625_v49  ;;  %v4764_v49 = vadd.f32 %v4763_v9, %v4762_v63 }
 0x66d   : > { %v4025_v28 = vpop.permute.xlu0 %4024 }
 0x66f   : > { %v3832_v56 = vpop.permute.xlu1 %3831 }
 0x670   : > { %3896 = vst.msk [vmem:[#allocation3 + $0x1f0] sm:$0xff] %vm9547_vm14, %v3832_v56  ;;  %v4861_v56 = vadd.f32 %v4860_v36, %v4859_v48  ;;  %v8848_v48 = vadd.f32 %v8750_v27, %v8677_v52  ;;  %v4777_v52 = vsel %vm439_vm0, %v8839_v16, 0.0 }
 0x671   : > { %v8722_v8 = vpop.f32.mrb[32].mxu1  ;;  %4089 = vst.msk [vmem:[#allocation3 + $0x1f0] sm:$0xff] %vm9548_vm7, %v4025_v28 }
 0x672   : > { %v4674_v55 = vpop.f32.mrb[33].mxu1 }
 0x673   : > { %v4217_v39 = vpop.permute.xlu1 %4216  ;;  %v4406_v6 = vld [vmem:[#allocation3 + $0x1e0] sm:$0xff] }
 0x674   : > { %4281 = vst.msk [vmem:[#allocation3 + $0x1f0] sm:$0xff] %vm9549_vm15, %v4217_v39  ;;  %4746 = vmatmul.mubr.f32.gmra.mrb[62].mxu1 %v4406_v6  ;;  %v4765_v39 = vsel %vm439_vm0, %v8780_v32, 0.0  ;;  %v4832_v6 = vmul.f32 %v8791_v58, %v8791_v58 }
 0x675   : > { %5592 = vmatprep.mubr.msk.f32.mxu1 %vm439_vm0, %v4409_v15  ;;  %v4864_v15 = vsel %vm439_vm0, %v4830_v62, 0.0 }
 0x67b   : > { %v4408_v57 = vld [vmem:[#allocation3 + $0x1f0] sm:$0xff] }
 0x67c   : > { %4751 = vmatmul.mubr.f32.gmra.mrb[64].mxu1 %v4408_v57  ;;  %v8812_v57 = vadd.f32 %v8750_v27, %v8636_v12  ;;  %v4769_v12 = vsel %vm439_vm0, %v8801_v43, 0.0 }
 0x683   : > { %v8727_v41 = vpop.f32.mrb[34].mxu1 }
 0x684   : > { %v4679_v60 = vpop.f32.mrb[35].mxu1 }
 0x685   : > { %v4863_v60 = vadd.f32 %v4862_v31, %v4861_v56  ;;  %v8857_v56 = vadd.f32 %v8750_v27, %v8690_v29  ;;  %v4779_v29 = vsel %vm439_vm0, %v8848_v48, 0.0 }
 0x68d   : > { %v8729_v30 = vpop.f32.mrb[36].mxu1 }
 0x68e   : > { %v4684_v13 = vpop.f32.mrb[37].mxu1 }
 0x68f   : > { %v4866_v13 = vsel %vm439_vm0, %v4831_v44, 0.0  ;;  %v4837_v44 = vmul.f32 %v8839_v16, %v8839_v16 }
 0x69f   : > { %v8731_v50 = vpop.f32.mrb[38].mxu1 }
 0x6a0   : > { %v4689_v18 = vpop.f32.mrb[39].mxu1 }
 0x6a1   : > { %v4767_v18 = vsel %vm439_vm0, %v8791_v58, 0.0 }
 0x6a9   : > { %v8733_v59 = vpop.f32.mrb[40].mxu1 }
 0x6aa   : > { %v4694_v2 = vpop.f32.mrb[41].mxu1 }
 0x6ab   : > { %v4833_v2 = vmul.f32 %v8801_v43, %v8801_v43 }
 0x6ad   : > { %v4870_v11 = vsel %vm439_vm0, %v4833_v2, 0.0  ;;  %v8875_v2 = vadd.f32 %v8750_v27, %v8716_v45 }
 0x6bb   : > { %v8735_v25 = vpop.f32.mrb[42].mxu1 }
 0x6bc   : > { %v4699_v51 = vpop.f32.mrb[43].mxu1 }
 0x6bd   : > { %v8821_v51 = vadd.f32 %v8750_v27, %v8650_v53  ;;  %v4771_v53 = vsel %vm439_vm0, %v8812_v57, 0.0 }
 0x6bf   : > { %v4835_v38 = vmul.f32 %v8821_v51, %v8821_v51 }
 0x6c1   : > { %v4874_v9 = vsel %vm439_vm0, %v4835_v38, 0.0  ;;  %v4841_v38 = vmul.f32 %v8875_v2, %v8875_v2 }
 0x6c5   : > { %v8737_v35 = vpop.f32.mrb[44].mxu1 }
 0x6c6   : > { %v4704_v24 = vpop.f32.mrb[45].mxu1 }
 0x6c7   : > { %v4865_v24 = vadd.f32 %v4864_v15, %v4863_v60 }
 0x6d7   : > { %v8739_v26 = vpop.f32.mrb[46].mxu1 }
 0x6d8   : > { %v4709_v17 = vpop.f32.mrb[47].mxu1 }
 0x6d9   : > { %v4766_v17 = vadd.f32 %v4765_v39, %v4764_v49  ;;  %v4838_v39 = vmul.f32 %v8848_v48, %v8848_v48 }
 0x6db   : > { %v4768_v7 = vadd.f32 %v4767_v18, %v4766_v17  ;;  %v4839_v18 = vmul.f32 %v8857_v56, %v8857_v56 }
 0x6dd   : > { %v4770_v36 = vadd.f32 %v4769_v12, %v4768_v7  ;;  %v4882_v45 = vsel %vm439_vm0, %v4839_v18, 0.0 }
 0x6df   : > { %v4772_v31 = vadd.f32 %v4771_v53, %v4770_v36 }
 0x6e1   : > { %v8741_v4 = vpop.f32.mrb[48].mxu1 }
 0x6e2   : > { %v4714_v23 = vpop.f32.mrb[49].mxu1 }
 0x6e3   : > { %v4868_v23 = vsel %vm439_vm0, %v4832_v6, 0.0  ;;  %v8866_v6 = vadd.f32 %v8750_v27, %v8697_v10  ;;  %v4781_v10 = vsel %vm439_vm0, %v8857_v56, 0.0 }
 0x6e5   : > { %v4840_v12 = vmul.f32 %v8866_v6, %v8866_v6  ;;  %v4783_v53 = vsel %vm439_vm0, %v8866_v6, 0.0 }
 0x6f3   : > { %v8743_v40 = vpop.f32.mrb[50].mxu1 }
 0x6f4   : > { %v4719_v47 = vpop.f32.mrb[51].mxu1 }
 0x6f5   : > { %v4834_v47 = vmul.f32 %v8812_v57, %v8812_v57 }
 0x6f7   : > { %v4872_v19 = vsel %vm439_vm0, %v4834_v47, 0.0  ;;  %v8884_v47 = vadd.f32 %v8750_v27, %v8722_v8 }
 0x6fd   : > { %v8745_v22 = vpop.f32.mrb[52].mxu1 }
 0x6fe   : > { %v4724_v46 = vpop.f32.mrb[53].mxu1 }
 0x6ff   : > { %v8830_v46 = vadd.f32 %v8750_v27, %v8657_v42  ;;  %v4773_v42 = vsel %vm439_vm0, %v8821_v51, 0.0 }
 0x701   : > { %v4836_v62 = vmul.f32 %v8830_v46, %v8830_v46  ;;  %v4775_v21 = vsel %vm439_vm0, %v8830_v46, 0.0 }
 0x703   : > { %v4876_v15 = vsel %vm439_vm0, %v4836_v62, 0.0  ;;  %v4785_v62 = vsel %vm439_vm0, %v8875_v2, 0.0 }
 0x70f   : > { %v8760_v34 = vpop.f32.mrb[54].mxu1 }
 0x710   : > { %v4729_v37 = vpop.f32.mrb[55].mxu1 }
 0x711   : > { %v4867_v37 = vadd.f32 %v4866_v13, %v4865_v24  ;;  %v4878_v13 = vsel %vm439_vm0, %v4837_v44, 0.0  ;;  %v4787_v44 = vsel %vm439_vm0, %v8884_v47, 0.0 }
 0x713   : > { %v4869_v61 = vadd.f32 %v4868_v23, %v4867_v37  ;;  %v4880_v23 = vsel %vm439_vm0, %v4838_v39, 0.0 }
 0x715   : > { %v4871_v33 = vadd.f32 %v4870_v11, %v4869_v61  ;;  %v8895_v61 = vadd.f32 %v8750_v27, %v8727_v41  ;;  %v4886_v41 = vsel %vm439_vm0, %v4841_v38, 0.0 }
 0x717   : > { %v4873_v63 = vadd.f32 %v4872_v19, %v4871_v33  ;;  %v4842_v33 = vmul.f32 %v8884_v47, %v8884_v47 }
 0x719   : > { %v8803_v28 = vpop.f32.mrb[56].mxu1  ;;  %v4875_v60 = vadd.f32 %v4874_v9, %v4873_v63  ;;  %v4843_v63 = vmul.f32 %v8895_v61, %v8895_v61  ;;  %v4888_v39 = vsel %vm439_vm0, %v4842_v33, 0.0 }
 0x71a   : > { %v4734_v55 = vpop.f32.mrb[57].mxu1 }
 0x71b   : > { %v4774_v55 = vadd.f32 %v4773_v42, %v4772_v31  ;;  %v4877_v24 = vadd.f32 %v4876_v15, %v4875_v60  ;;  %v4884_v42 = vsel %vm439_vm0, %v4840_v12, 0.0  ;;  %v8904_v31 = vadd.f32 %v8750_v27, %v8729_v30 }
 0x71c   : > { %v4789_v30 = vsel %vm439_vm0, %v8895_v61, 0.0  ;;  %v4890_v18 = vsel %vm439_vm0, %v4843_v63, 0.0 }
 0x71d   : > { %v4776_v49 = vadd.f32 %v4775_v21, %v4774_v55  ;;  %v4879_v37 = vadd.f32 %v4878_v13, %v4877_v24  ;;  %v8913_v55 = vadd.f32 %v8750_v27, %v8731_v50  ;;  %v4844_v60 = vmul.f32 %v8904_v31, %v8904_v31 }
 0x71e   : > { %v4791_v50 = vsel %vm439_vm0, %v8904_v31, 0.0 }
 0x71f   : > { %v4778_v17 = vadd.f32 %v4777_v52, %v4776_v49  ;;  %v4881_v19 = vadd.f32 %v4880_v23, %v4879_v37  ;;  %v8922_v49 = vadd.f32 %v8750_v27, %v8733_v59  ;;  %v4845_v24 = vmul.f32 %v8913_v55, %v8913_v55 }
 0x720   : > { %v4892_v59 = vsel %vm439_vm0, %v4844_v60, 0.0 }
 0x721   : > { %v4780_v7 = vadd.f32 %v4779_v29, %v4778_v17  ;;  %v4883_v9 = vadd.f32 %v4882_v45, %v4881_v19  ;;  %v8931_v17 = vadd.f32 %v8750_v27, %v8735_v25  ;;  %v4846_v45 = vmul.f32 %v8922_v49, %v8922_v49 }
 0x722   : > { %v4894_v25 = vsel %vm439_vm0, %v4845_v24, 0.0  ;;  %v4795_v19 = vsel %vm439_vm0, %v8922_v49, 0.0 }
 0x723   : > { %v4782_v8 = vadd.f32 %v4781_v10, %v4780_v7  ;;  %v4885_v15 = vadd.f32 %v4884_v42, %v4883_v9  ;;  %v4793_v7 = vsel %vm439_vm0, %v8913_v55, 0.0  ;;  %v8949_v42 = vadd.f32 %v8750_v27, %v8739_v26 }
 0x724   : > { %v4896_v9 = vsel %vm439_vm0, %v4846_v45, 0.0 }
 0x725   : > { %v4784_v21 = vadd.f32 %v4783_v53, %v4782_v8  ;;  %v4887_v13 = vadd.f32 %v4886_v41, %v4885_v15  ;;  %v8940_v53 = vadd.f32 %v8750_v27, %v8737_v35  ;;  %v4847_v8 = vmul.f32 %v8931_v17, %v8931_v17 }
 0x726   : > { %v4797_v35 = vsel %vm439_vm0, %v8931_v17, 0.0  ;;  %v8958_v41 = vadd.f32 %v8750_v27, %v8741_v4  ;;  %v4801_v4 = vsel %vm439_vm0, %v8949_v42, 0.0 }
 0x727   : > { %v4786_v52 = vadd.f32 %v4785_v62, %v4784_v21  ;;  %v4889_v10 = vadd.f32 %v4888_v39, %v4887_v13  ;;  %v4848_v21 = vmul.f32 %v8940_v53, %v8940_v53  ;;  %v4898_v15 = vsel %vm439_vm0, %v4847_v8, 0.0 }
 0x728   : > { %v4799_v26 = vsel %vm439_vm0, %v8940_v53, 0.0  ;;  %v8967_v39 = vadd.f32 %v8750_v27, %v8743_v40  ;;  %v4803_v40 = vsel %vm439_vm0, %v8958_v41, 0.0 }
 0x729   : > { %v4788_v29 = vadd.f32 %v4787_v44, %v4786_v52  ;;  %v4891_v38 = vadd.f32 %v4890_v18, %v4889_v10  ;;  %v4849_v52 = vmul.f32 %v8949_v42, %v8949_v42  ;;  %v4900_v13 = vsel %vm439_vm0, %v4848_v21, 0.0 }
 0x72a   : > { %v8976_v18 = vadd.f32 %v8750_v27, %v8745_v22  ;;  %v4805_v22 = vsel %vm439_vm0, %v8967_v39, 0.0 }
 0x72b   : > { %v8886_v11 = vpop.f32.mrb[58].mxu1  ;;  %v4790_v12 = vadd.f32 %v4789_v30, %v4788_v29  ;;  %v4893_v62 = vadd.f32 %v4892_v59, %v4891_v38  ;;  %v4850_v29 = vmul.f32 %v8958_v41, %v8958_v41  ;;  %v4902_v10 = vsel %vm439_vm0, %v4849_v52, 0.0 }
 0x72c   : > { %v4739_v36 = vpop.f32.mrb[59].mxu1  ;;  %v4852_v38 = vmul.f32 %v8976_v18, %v8976_v18 }
 0x72d   : > { %v4792_v36 = vadd.f32 %v4791_v50, %v4790_v12  ;;  %v4895_v44 = vadd.f32 %v4894_v25, %v4893_v62  ;;  %v4851_v12 = vmul.f32 %v8967_v39, %v8967_v39  ;;  %v4904_v45 = vsel %vm439_vm0, %v4850_v29, 0.0 }
 0x72e   : > { %v4908_v21 = vsel %vm439_vm0, %v4852_v38, 0.0 }
 0x72f   : > { %v4794_v33 = vadd.f32 %v4793_v7, %v4792_v36  ;;  %v4897_v30 = vadd.f32 %v4896_v9, %v4895_v44  ;;  %v8994_v36 = vadd.f32 %v8750_v27, %v8803_v28  ;;  %v4906_v8 = vsel %vm439_vm0, %v4851_v12, 0.0 }
 0x731   : > { %v4796_v63 = vadd.f32 %v4795_v19, %v4794_v33  ;;  %v4899_v50 = vadd.f32 %v4898_v15, %v4897_v30  ;;  %v9003_v33 = vadd.f32 %v8750_v27, %v8886_v11  ;;  %v4854_v44 = vmul.f32 %v8994_v36, %v8994_v36 }
 0x732   : > { %v4811_v11 = vsel %vm439_vm0, %v8994_v36, 0.0 }
 0x733   : > { %v4798_v60 = vadd.f32 %v4797_v35, %v4796_v63  ;;  %v4901_v59 = vadd.f32 %v4900_v13, %v4899_v50 }
 0x735   : > { %v4742_v23 = vpop.f32.mrb[60].mxu1  ;;  %v4800_v24 = vadd.f32 %v4799_v26, %v4798_v60  ;;  %v4903_v25 = vadd.f32 %v4902_v10, %v4901_v59  ;;  %v4855_v60 = vmul.f32 %v9003_v33, %v9003_v33 }
 0x736   : > { %v4744_v37 = vpop.f32.mrb[61].mxu1  ;;  %v9011_v63 = vadd.f32 %v8750_v27, %v4742_v23  ;;  %v4912_v23 = vsel %vm439_vm0, %v4854_v44, 0.0 }
 0x737   : > { %v8985_v37 = vadd.f32 %v8750_v27, %v8760_v34  ;;  %v4802_v7 = vadd.f32 %v4801_v4, %v4800_v24  ;;  %v4807_v34 = vsel %vm439_vm0, %v8976_v18, 0.0  ;;  %v4905_v9 = vadd.f32 %v4904_v45, %v4903_v25 }
 0x738   : > { %v4813_v24 = vsel %vm439_vm0, %v9003_v33, 0.0  ;;  %v4856_v10 = vmul.f32 %v9011_v63, %v9011_v63  ;;  %v4914_v59 = vsel %vm439_vm0, %v4855_v60, 0.0 }
 0x739   : > { %v4804_v19 = vadd.f32 %v4803_v40, %v4802_v7  ;;  %v4853_v62 = vmul.f32 %v8985_v37, %v8985_v37  ;;  %v4809_v28 = vsel %vm439_vm0, %v8985_v37, 0.0  ;;  %v4907_v15 = vadd.f32 %v4906_v8, %v4905_v9 }
 0x73a   : > { %v4815_v7 = vsel %vm439_vm0, %v9011_v63, 0.0  ;;  %v4916_v25 = vsel %vm439_vm0, %v4856_v10, 0.0 }
 0x73b   : > { %v4806_v35 = vadd.f32 %v4805_v22, %v4804_v19  ;;  %v4910_v30 = vsel %vm439_vm0, %v4853_v62, 0.0  ;;  %v4909_v29 = vadd.f32 %v4908_v21, %v4907_v15 }
 0x73d   : > { %v4808_v26 = vadd.f32 %v4807_v34, %v4806_v35  ;;  %v4911_v40 = vadd.f32 %v4910_v30, %v4909_v29 }
 0x73f   : > { %v4810_v50 = vadd.f32 %v4809_v28, %v4808_v26  ;;  %v4913_v22 = vadd.f32 %v4912_v23, %v4911_v40 }
 0x741   : > { %v4812_v12 = vadd.f32 %v4811_v11, %v4810_v50  ;;  %v4915_v8 = vadd.f32 %v4914_v59, %v4913_v22 }
 0x743   : > { %v4814_v38 = vadd.f32 %v4813_v24, %v4812_v12  ;;  %v4917_v28 = vadd.f32 %v4916_v25, %v4915_v8 }
 0x745   : > { %v4816_v34 = vadd.f32 %v4815_v7, %v4814_v38 }
 0x747   : > { %v4747_v52 = vpop.f32.mrb[62].mxu1 }
 0x748   : > { %v9019_v13 = vadd.f32 %v8750_v27, %v4747_v52  ;;  %v4749_v4 = vpop.f32.mrb[63].mxu1 }
 0x74a   : > { %v4857_v45 = vmul.f32 %v9019_v13, %v9019_v13  ;;  %v4817_v19 = vsel %vm439_vm0, %v9019_v13, 0.0 }
 0x74b   : > { %v4818_v44 = vadd.f32 %v4817_v19, %v4816_v34 }
 0x74c   : > { %v4918_v9 = vsel %vm439_vm0, %v4857_v45, 0.0 }
 0x74d   : > { %v4919_v52 = vadd.f32 %v4918_v9, %v4917_v28 }
 0x74f   : > { %v4752_v62 = vpop.f32.mrb[64].mxu1 }
 0x750   : > { %v9036_v35 = vadd.f32 %v8750_v27, %v4752_v62  ;;  %v4754_v21 = vpop.f32.mrb[65].mxu1 }
 0x752   : > { %v4819_v15 = vsel %vm439_vm0, %v9036_v35, 0.0  ;;  %v4858_v26 = vmul.f32 %v9036_v35, %v9036_v35 }
 0x753   : > { %v4820_v30 = vadd.f32 %v4819_v15, %v4818_v44 }
 0x754   : > { %v4920_v11 = vsel %vm439_vm0, %v4858_v26, 0.0 }
 0x755   : > { %v4821_v60 = vrot.slane %v4820_v30, 4  ;;  %v4921_v4 = vadd.f32 %v4920_v11, %v4919_v52 }
 0x757   : > { %v4822_v29 = vadd.f32 %v4821_v60, %v4820_v30  ;;  %v4922_v50 = vrot.slane %v4921_v4, 4 }
 0x759   : > { %v4823_v23 = vrot.slane %v4822_v29, 2  ;;  %v4923_v27 = vadd.f32 %v4922_v50, %v4921_v4 }
 0x75b   : > { %v4824_v24 = vadd.f32 %v4823_v23, %v4822_v29  ;;  %v4924_v10 = vrot.slane %v4923_v27, 2 }
 0x75d   : > { %v4825_v40 = vrot.slane %v4824_v24, 1  ;;  %v4925_v12 = vadd.f32 %v4924_v10, %v4923_v27 }
 0x75f   : > { %v4926_v59 = vrot.slane %v4925_v12, 1  ;;  %v4826_v7 = vadd.f32 %v4825_v40, %v4824_v24 }
 0x761   : > { %v4927_v45 = vadd.f32 %v4926_v59, %v4925_v12 }
 0x763   : > { %v4928_v22 = vsel %vm9550_vm10, %v4826_v7, %v4927_v45  ;;  %v5594_v7 = vld [vmem:[%s9303_s8] ss:$0 sm:$0xff] }
 0x764   : > { %5618 = vmatmul.mubr.msk.f32.vlgmr.msra.gmra.mrb[64].mxu0 %vm439_vm0, %v4928_v22 }
 0x837   : > { %v5000_v38 = vpop.f32.mrb[64].mxu0 }
 0x838   : > { %v5004_v25 = vmul.f32 %v5000_v38, %v5000_v38  ;;  %v5619_v19 = vpop.f32.mrb[65].mxu0  ;;  %v9047_v9 = vrot.slane %v5000_v38, %v2555_v5 }
 0x83a   : > { %v5006_v8 = vrot.slane %v5004_v25, 7  ;;  %v5013_v21 = vsub.f32 %v8758_v1, %v9047_v9  ;;  %v5014_v28 = vsub.f32 %v8754_v3, %v9047_v9  ;;  %v5015_v44 = vsub.f32 %v8764_v0, %v9047_v9 }
 0x83b   : > { %v5016_v15 = vsub.f32 %v8770_v54, %v9047_v9  ;;  %v5017_v26 = vsub.f32 %v8780_v32, %v9047_v9  ;;  %v5018_v5 = vsub.f32 %v8791_v58, %v9047_v9  ;;  %v5019_v52 = vsub.f32 %v8801_v43, %v9047_v9 }
 0x83c   : > { %v5008_v34 = vsub.f32 %v5000_v38, %v5006_v8  ;;  %v5020_v1 = vsub.f32 %v8812_v57, %v9047_v9  ;;  %v5021_v3 = vsub.f32 %v8821_v51, %v9047_v9  ;;  %v5022_v0 = vsub.f32 %v8830_v46, %v9047_v9 }
 0x83d   : > { %v5023_v54 = vsub.f32 %v8839_v16, %v9047_v9  ;;  %v5024_v32 = vsub.f32 %v8848_v48, %v9047_v9  ;;  %v5025_v58 = vsub.f32 %v8857_v56, %v9047_v9  ;;  %v5026_v43 = vsub.f32 %v8866_v6, %v9047_v9 }
 0x83e   : > { %v5045_v62 = vadd.f32 1e-05, %v5008_v34  ;;  %v5027_v57 = vsub.f32 %v8875_v2, %v9047_v9  ;;  %v5028_v51 = vsub.f32 %v8884_v47, %v9047_v9  ;;  %v5029_v46 = vsub.f32 %v8895_v61, %v9047_v9 }
 0x83f   : > { %v5030_v16 = vsub.f32 %v8904_v31, %v9047_v9  ;;  %v5031_v48 = vsub.f32 %v8913_v55, %v9047_v9  ;;  %v5032_v56 = vsub.f32 %v8922_v49, %v9047_v9  ;;  %v5033_v6 = vsub.f32 %v8931_v17, %v9047_v9 }
 0x840   : > { %5701 = vrsqrt.f32 %v5045_v62  ;;  %v5034_v2 = vsub.f32 %v8940_v53, %v9047_v9  ;;  %v5035_v47 = vsub.f32 %v8949_v42, %v9047_v9  ;;  %v5036_v61 = vsub.f32 %v8958_v41, %v9047_v9 }
 0x841   : > { %v5037_v31 = vsub.f32 %v8967_v39, %v9047_v9  ;;  %v5038_v55 = vsub.f32 %v8976_v18, %v9047_v9  ;;  %v5039_v49 = vsub.f32 %v8985_v37, %v9047_v9  ;;  %v5040_v17 = vsub.f32 %v8994_v36, %v9047_v9 }
 0x842   : > { %v5041_v42 = vsub.f32 %v9003_v33, %v9047_v9  ;;  %v5042_v41 = vsub.f32 %v9011_v63, %v9047_v9  ;;  %v5043_v39 = vsub.f32 %v9019_v13, %v9047_v9  ;;  %v5044_v18 = vsub.f32 %v9036_v35, %v9047_v9 }
 0x84a   : > { %v5702_v30 = vpop.eup %5701 }
 0x84b   : > { %v5050_v53 = vrot.slane %v5702_v30, %v2593_v14 }
 0x84d   : > { %v5051_v11 = vmul.f32 %v5050_v53, %v5013_v21  ;;  %v5052_v37 = vmul.f32 %v5050_v53, %v5014_v28  ;;  %v5053_v60 = vmul.f32 %v5050_v53, %v5015_v44  ;;  %v5054_v4 = vmul.f32 %v5050_v53, %v5016_v15 }
 0x84e   : > { %v5055_v36 = vmul.f32 %v5050_v53, %v5017_v26  ;;  %v5056_v29 = vmul.f32 %v5050_v53, %v5018_v5  ;;  %v5057_v20 = vmul.f32 %v5050_v53, %v5019_v52  ;;  %v5058_v14 = vmul.f32 %v5050_v53, %v5020_v1 }
 0x84f   : > { %v5059_v50 = vmul.f32 %v5050_v53, %v5021_v3  ;;  %v5060_v23 = vmul.f32 %v5050_v53, %v5022_v0  ;;  %v5061_v33 = vmul.f32 %v5050_v53, %v5023_v54  ;;  %v5062_v27 = vmul.f32 %v5050_v53, %v5024_v32 }
 0x850   : > { %v5063_v24 = vmul.f32 %v5050_v53, %v5025_v58  ;;  %v5064_v63 = vmul.f32 %v5050_v53, %v5026_v43  ;;  %v5065_v10 = vmul.f32 %v5050_v53, %v5027_v57  ;;  %v5066_v40 = vmul.f32 %v5050_v53, %v5028_v51 }
 0x851   : > { %v5067_v13 = vmul.f32 %v5050_v53, %v5029_v46  ;;  %v5068_v12 = vmul.f32 %v5050_v53, %v5030_v16  ;;  %v5069_v59 = vmul.f32 %v5050_v53, %v5031_v48  ;;  %v5070_v35 = vmul.f32 %v5050_v53, %v5032_v56 }
 0x852   : > { %v5071_v45 = vmul.f32 %v5050_v53, %v5033_v6  ;;  %v5072_v22 = vmul.f32 %v5050_v53, %v5034_v2  ;;  %v5073_v38 = vmul.f32 %v5050_v53, %v5035_v47  ;;  %v5074_v25 = vmul.f32 %v5050_v53, %v5036_v61  ;;  %v5595_v47 = vld [vmem:[%s9304_s9] ss:$0 sm:$0xff] }
 0x853   : > { %v5075_v19 = vmul.f32 %v5050_v53, %v5037_v31  ;;  %v5076_v8 = vmul.f32 %v5050_v53, %v5038_v55  ;;  %v5077_v34 = vmul.f32 %v5050_v53, %v5039_v49  ;;  %v5078_v62 = vmul.f32 %v5050_v53, %v5040_v17 }
 0x854   : > { %v5079_v9 = vmul.f32 %v5050_v53, %v5041_v42  ;;  %v5080_v21 = vmul.f32 %v5050_v53, %v5042_v41  ;;  %v5081_v28 = vmul.f32 %v5050_v53, %v5043_v39  ;;  %v5082_v44 = vmul.f32 %v5050_v53, %v5044_v18 }
 0x855   : > { %v5089_v15 = vmul.f32 %v5594_v7, %v5051_v11  ;;  %v5090_v26 = vmul.f32 %v5594_v7, %v5052_v37  ;;  %v5091_v5 = vmul.f32 %v5594_v7, %v5053_v60  ;;  %v5092_v52 = vmul.f32 %v5594_v7, %v5054_v4 }
 0x856   : > { %v5093_v1 = vmul.f32 %v5594_v7, %v5055_v36  ;;  %v5094_v3 = vmul.f32 %v5594_v7, %v5056_v29  ;;  %v5095_v0 = vmul.f32 %v5594_v7, %v5057_v20  ;;  %v5096_v54 = vmul.f32 %v5594_v7, %v5058_v14 }
 0x857   : > { %v5097_v32 = vmul.f32 %v5594_v7, %v5059_v50  ;;  %v5098_v58 = vmul.f32 %v5594_v7, %v5060_v23  ;;  %v5099_v43 = vmul.f32 %v5594_v7, %v5061_v33  ;;  %v5100_v57 = vmul.f32 %v5594_v7, %v5062_v27 }
 0x858   : > { %v5101_v51 = vmul.f32 %v5594_v7, %v5063_v24  ;;  %v5102_v46 = vmul.f32 %v5594_v7, %v5064_v63  ;;  %v5103_v16 = vmul.f32 %v5594_v7, %v5065_v10  ;;  %v5104_v48 = vmul.f32 %v5594_v7, %v5066_v40 }
 0x859   : > { %v5105_v56 = vmul.f32 %v5594_v7, %v5067_v13  ;;  %v5106_v6 = vmul.f32 %v5594_v7, %v5068_v12  ;;  %v5107_v30 = vmul.f32 %v5594_v7, %v5069_v59  ;;  %v5108_v2 = vmul.f32 %v5594_v7, %v5070_v35  ;;  %v5159_v59 = vld [vmem:[%s9127_s27] sm:$0xff]  ;;  %v5160_v35 = vld [vmem:[%s9127_s27 + $0x8] sm:$0xff] }
 0x85a   : > { %v5109_v61 = vmul.f32 %v5594_v7, %v5071_v45  ;;  %v5110_v31 = vmul.f32 %v5594_v7, %v5072_v22  ;;  %v5111_v55 = vmul.f32 %v5594_v7, %v5073_v38  ;;  %v5112_v49 = vmul.f32 %v5594_v7, %v5074_v25  ;;  %v5162_v45 = vld [vmem:[%s9127_s27 + $0x18] sm:$0xff] }
 0x85b   : > { %v5113_v17 = vmul.f32 %v5594_v7, %v5075_v19  ;;  %v5114_v53 = vmul.f32 %v5594_v7, %v5076_v8  ;;  %v5115_v42 = vmul.f32 %v5594_v7, %v5077_v34  ;;  %v5116_v41 = vmul.f32 %v5594_v7, %v5078_v62  ;;  %v5163_v8 = vld [vmem:[%s9127_s27 + $0x20] sm:$0xff]  ;;  %v5164_v34 = vld [vmem:[%s9127_s27 + $0x28] sm:$0xff]  ;;  %v5165_v62 = vld [vmem:[%s9127_s27 + $0x30] sm:$0xff] }
 0x85c   : > { %v5117_v39 = vmul.f32 %v5594_v7, %v5079_v9  ;;  %v5118_v18 = vmul.f32 %v5594_v7, %v5080_v21  ;;  %v5119_v11 = vmul.f32 %v5594_v7, %v5081_v28  ;;  %v5120_v37 = vmul.f32 %v5594_v7, %v5082_v44  ;;  %v5161_v7 = vld [vmem:[%s9127_s27 + $0x10] sm:$0xff]  ;;  %v5166_v9 = vld [vmem:[%s9127_s27 + $0x38] sm:$0xff] }
 0x85d   : > { %v5127_v60 = vadd.f32 %v5595_v47, %v5089_v15  ;;  %v5128_v4 = vadd.f32 %v5595_v47, %v5090_v26  ;;  %v5129_v36 = vadd.f32 %v5595_v47, %v5091_v5  ;;  %v5130_v29 = vadd.f32 %v5595_v47, %v5092_v52  ;;  %v5167_v26 = vld [vmem:[%s9127_s27 + $0x40] sm:$0xff]  ;;  %v5168_v5 = vld [vmem:[%s9127_s27 + $0x48] sm:$0xff]  ;;  %v5169_v52 = vld [vmem:[%s9127_s27 + $0x50] sm:$0xff] }
 0x85e   : > { %v5131_v20 = vadd.f32 %v5595_v47, %v5093_v1  ;;  %v5132_v14 = vadd.f32 %v5595_v47, %v5094_v3  ;;  %v5133_v50 = vadd.f32 %v5595_v47, %v5095_v0  ;;  %v5134_v23 = vadd.f32 %v5595_v47, %v5096_v54 }
 0x85f   : > { %v5135_v33 = vadd.f32 %v5595_v47, %v5097_v32  ;;  %v5136_v27 = vadd.f32 %v5595_v47, %v5098_v58  ;;  %v5137_v24 = vadd.f32 %v5595_v47, %v5099_v43  ;;  %v5138_v63 = vadd.f32 %v5595_v47, %v5100_v57  ;;  %v5170_v32 = vld [vmem:[%s9127_s27 + $0x58] sm:$0xff]  ;;  %v5171_v58 = vld [vmem:[%s9127_s27 + $0x60] sm:$0xff]  ;;  %v5172_v43 = vld [vmem:[%s9127_s27 + $0x68] sm:$0xff] }
 0x860   : > { %v9129_v10 = vadd.f32 %v5595_v47, %v5101_v51  ;;  %v9131_v40 = vadd.f32 %v5595_v47, %v5102_v46  ;;  %v9133_v13 = vadd.f32 %v5595_v47, %v5103_v16  ;;  %v9135_v12 = vadd.f32 %v5595_v47, %v5104_v48  ;;  %v5173_v48 = vld [vmem:[%s9127_s27 + $0x70] sm:$0xff] }
 0x861   : > { %v9141_v22 = vadd.f32 %v5595_v47, %v5105_v56  ;;  %v9143_v38 = vadd.f32 %v5595_v47, %v5106_v6  ;;  %v9145_v25 = vadd.f32 %v5595_v47, %v5107_v30  ;;  %v9147_v19 = vadd.f32 %v5595_v47, %v5108_v2  ;;  %v5174_v56 = vld [vmem:[%s9127_s27 + $0x78] sm:$0xff]  ;;  %v5175_v6 = vld [vmem:[%s9127_s27 + $0x80] sm:$0xff]  ;;  %v5176_v30 = vld [vmem:[%s9127_s27 + $0x88] sm:$0xff] }
 0x862   : > { %v9153_v21 = vadd.f32 %v5595_v47, %v5109_v61  ;;  %v9155_v28 = vadd.f32 %v5595_v47, %v5110_v31  ;;  %v9157_v44 = vadd.f32 %v5595_v47, %v5111_v55  ;;  %v9159_v15 = vadd.f32 %v5595_v47, %v5112_v49  ;;  %v5177_v2 = vld [vmem:[%s9127_s27 + $0x90] sm:$0xff]  ;;  %v5178_v61 = vld [vmem:[%s9127_s27 + $0x98] sm:$0xff] }
 0x863   : > { %v9164_v1 = vadd.f32 %v5595_v47, %v5113_v17  ;;  %v9166_v3 = vadd.f32 %v5595_v47, %v5114_v53  ;;  %v9168_v0 = vadd.f32 %v5595_v47, %v5115_v42  ;;  %v9170_v54 = vadd.f32 %v5595_v47, %v5116_v41  ;;  %v5179_v53 = vld [vmem:[%s9127_s27 + $0xa0] sm:$0xff]  ;;  %v5180_v42 = vld [vmem:[%s9127_s27 + $0xa8] sm:$0xff] }
 0x864   : > { %v9182_v57 = vadd.f32 %v5595_v47, %v5117_v39  ;;  %v9184_v51 = vadd.f32 %v5595_v47, %v5118_v18  ;;  %v9186_v46 = vadd.f32 %v5595_v47, %v5119_v11  ;;  %v9188_v16 = vadd.f32 %v5595_v47, %v5120_v37  ;;  %v5181_v47 = vld [vmem:[%s9127_s27 + $0xb0] sm:$0xff]  ;;  %v5182_v37 = vld [vmem:[%s9127_s27 + $0xb8] sm:$0xff] }
 0x865   : > { %v5191_v31 = vadd.f32 %v5159_v59, %v5127_v60  ;;  %v5192_v55 = vadd.f32 %v5160_v35, %v5128_v4  ;;  %v5193_v49 = vadd.f32 %v5161_v7, %v5129_v36  ;;  %v5194_v17 = vadd.f32 %v5162_v45, %v5130_v29  ;;  %v5184_v60 = vld [vmem:[%s9127_s27 + $0xc8] sm:$0xff] }
 0x866   : > { %9551 = vst [vmem:[#allocation4_spill] sm:$0xff] %v9188_v16  ;;  %v5195_v41 = vadd.f32 %v5163_v8, %v5131_v20  ;;  %v5196_v39 = vadd.f32 %v5164_v34, %v5132_v14  ;;  %v5197_v18 = vadd.f32 %v5165_v62, %v5133_v50  ;;  %v5198_v11 = vadd.f32 %v5166_v9, %v5134_v23  ;;  %v5183_v16 = vld [vmem:[%s9127_s27 + $0xc0] sm:$0xff]  ;;  %v5185_v20 = vld [vmem:[%s9127_s27 + $0xd0] sm:$0xff]  ;;  %v5186_v14 = vld [vmem:[%s9127_s27 + $0xd8] sm:$0xff] }
 0x867   : > { %v5199_v4 = vadd.f32 %v5167_v26, %v5135_v33  ;;  %v5200_v36 = vadd.f32 %v5168_v5, %v5136_v27  ;;  %v5201_v29 = vadd.f32 %v5169_v52, %v5137_v24  ;;  %v5202_v59 = vadd.f32 %v5170_v32, %v5138_v63  ;;  %5223 = vst.msk [vmem:[%s9180_s14] sm:$0xff] %vm439_vm0, %v5191_v31  ;;  %v5187_v50 = vld [vmem:[%s9127_s27 + $0xe0] sm:$0xff]  ;;  %v5188_v63 = vld [vmem:[%s9127_s27 + $0xe8] sm:$0xff] }
 0x868   : > { %5224 = vst.msk [vmem:[%s9180_s14 + $0x8] sm:$0xff] %vm439_vm0, %v5192_v55  ;;  %5225 = vst.msk [vmem:[%s9180_s14 + $0x10] sm:$0xff] %vm439_vm0, %v5193_v49  ;;  %v5203_v23 = vadd.f32 %v5171_v58, %v9129_v10  ;;  %v5204_v33 = vadd.f32 %v5172_v43, %v9131_v40  ;;  %v5205_v27 = vadd.f32 %v5173_v48, %v9133_v13  ;;  %v5189_v10 = vld [vmem:[%s9127_s27 + $0xf0] sm:$0xff]  ;;  %v5190_v40 = vld [vmem:[%s9127_s27 + $0xf8] sm:$0xff] }
 0x869   : > { %5226 = vst.msk [vmem:[%s9180_s14 + $0x18] sm:$0xff] %vm439_vm0, %v5194_v17  ;;  %v5206_v24 = vadd.f32 %v5174_v56, %v9135_v12  ;;  %5227 = vst.msk [vmem:[%s9180_s14 + $0x20] sm:$0xff] %vm439_vm0, %v5195_v41  ;;  %v5207_v13 = vadd.f32 %v5175_v6, %v9141_v22  ;;  %v5208_v35 = vadd.f32 %v5176_v30, %v9143_v38 }
 0x86a   : > { %5228 = vst.msk [vmem:[%s9180_s14 + $0x28] sm:$0xff] %vm439_vm0, %v5196_v39  ;;  %5229 = vst.msk [vmem:[%s9180_s14 + $0x30] sm:$0xff] %vm439_vm0, %v5197_v18  ;;  %v5209_v12 = vadd.f32 %v5177_v2, %v9145_v25  ;;  %v5210_v7 = vadd.f32 %v5178_v61, %v9147_v19  ;;  %v5211_v45 = vadd.f32 %v5179_v53, %v9153_v21 }
 0x86b   : > { %5230 = vst.msk [vmem:[%s9180_s14 + $0x38] sm:$0xff] %vm439_vm0, %v5198_v11  ;;  %5231 = vst.msk [vmem:[%s9180_s14 + $0x40] sm:$0xff] %vm439_vm0, %v5199_v4  ;;  %v5212_v22 = vadd.f32 %v5180_v42, %v9155_v28  ;;  %v5213_v38 = vadd.f32 %v5181_v47, %v9157_v44  ;;  %v5214_v25 = vadd.f32 %v5182_v37, %v9159_v15 }
 0x86c   : > { %5232 = vst.msk [vmem:[%s9180_s14 + $0x48] sm:$0xff] %vm439_vm0, %v5200_v36  ;;  %5233 = vst.msk [vmem:[%s9180_s14 + $0x50] sm:$0xff] %vm439_vm0, %v5201_v29  ;;  %v5215_v19 = vadd.f32 %v5183_v16, %v9164_v1  ;;  %v5216_v8 = vadd.f32 %v5184_v60, %v9166_v3  ;;  %v5217_v34 = vadd.f32 %v5185_v20, %v9168_v0 }
 0x86d   : > { %5234 = vst.msk [vmem:[%s9180_s14 + $0x58] sm:$0xff] %vm439_vm0, %v5202_v59  ;;  %5235 = vst.msk [vmem:[%s9180_s14 + $0x60] sm:$0xff] %vm439_vm0, %v5203_v23  ;;  %v5218_v62 = vadd.f32 %v5186_v14, %v9170_v54  ;;  %v5219_v9 = vadd.f32 %v5187_v50, %v9182_v57  ;;  %v5220_v21 = vadd.f32 %v5188_v63, %v9184_v51  ;;  %v9552_v44 = vld [vmem:[#allocation4_spill] sm:$0xff] }
 0x86e   : > { %5236 = vst.msk [vmem:[%s9180_s14 + $0x68] sm:$0xff] %vm439_vm0, %v5204_v33  ;;  %5237 = vst.msk [vmem:[%s9180_s14 + $0x70] sm:$0xff] %vm439_vm0, %v5205_v27  ;;  %v5221_v28 = vadd.f32 %v5189_v10, %v9186_v46  ;;  %v5222_v15 = vadd.f32 %v5190_v40, %v9552_v44 }
 0x86f   : > { %5238 = vst.msk [vmem:[%s9180_s14 + $0x78] sm:$0xff] %vm439_vm0, %v5206_v24  ;;  %5239 = vst.msk [vmem:[%s9180_s14 + $0x80] sm:$0xff] %vm439_vm0, %v5207_v13 }
 0x870   : > { %5240 = vst.msk [vmem:[%s9180_s14 + $0x88] sm:$0xff] %vm439_vm0, %v5208_v35  ;;  %5241 = vst.msk [vmem:[%s9180_s14 + $0x90] sm:$0xff] %vm439_vm0, %v5209_v12 }
 0x871   : > { %5242 = vst.msk [vmem:[%s9180_s14 + $0x98] sm:$0xff] %vm439_vm0, %v5210_v7  ;;  %5243 = vst.msk [vmem:[%s9180_s14 + $0xa0] sm:$0xff] %vm439_vm0, %v5211_v45 }
 0x872   : > { %5244 = vst.msk [vmem:[%s9180_s14 + $0xa8] sm:$0xff] %vm439_vm0, %v5212_v22  ;;  %5245 = vst.msk [vmem:[%s9180_s14 + $0xb0] sm:$0xff] %vm439_vm0, %v5213_v38 }
 0x873   : > { %5246 = vst.msk [vmem:[%s9180_s14 + $0xb8] sm:$0xff] %vm439_vm0, %v5214_v25  ;;  %5247 = vst.msk [vmem:[%s9180_s14 + $0xc0] sm:$0xff] %vm439_vm0, %v5215_v19 }
 0x874   : > { %5248 = vst.msk [vmem:[%s9180_s14 + $0xc8] sm:$0xff] %vm439_vm0, %v5216_v8  ;;  %5249 = vst.msk [vmem:[%s9180_s14 + $0xd0] sm:$0xff] %vm439_vm0, %v5217_v34 }
 0x875   : > { %5250 = vst.msk [vmem:[%s9180_s14 + $0xd8] sm:$0xff] %vm439_vm0, %v5218_v62  ;;  %5251 = vst.msk [vmem:[%s9180_s14 + $0xe0] sm:$0xff] %vm439_vm0, %v5219_v9 }
 0x876   : > { %5252 = vst.msk [vmem:[%s9180_s14 + $0xe8] sm:$0xff] %vm439_vm0, %v5220_v21  ;;  %5253 = vst.msk [vmem:[%s9180_s14 + $0xf0] sm:$0xff] %vm439_vm0, %v5221_v28 }
 0x877   : > { %5254 = vst.msk [vmem:[%s9180_s14 + $0xf8] sm:$0xff] %vm439_vm0, %v5222_v15 }
 0x878 PF: > { %s21_s17 = sadd.s32 1, %s5709_s17  }
 0x879   : > { %p18_p4 = scmp.ge.s32.totalorder %s21_s17, 4  }
 0x87b   :  { %20 = sbr.rel (!%p18_p4) target bundleno = 1 (0x1), region = 102 }

</bundles_post_ra>
